<compile_context>
chip_gen: v7x
topology: tpu7x:2x2x1
jax: 0.10.0
libtpu: 0.0.40
codegen_flags: <defaults>
</compile_context>

<pallas_src>
import functools

import numpy as np

import jax
import jax.numpy as jnp
from jax import lax
from jax.experimental import pallas as pl
from jax.experimental.pallas import tpu as pltpu


# ----------------------------------------------------------------------------
# Fused kernel: one grid step = TB images stacked along the matmul M dim.
# All activations are 2-D (stacked rows, width*channels) and never leave VMEM.
# ----------------------------------------------------------------------------
def _lenet5_kernel(x_ref, wt1_ref, b1_ref, r1_ref, wt2_ref, b2_ref, rh_ref,
                   wall_ref, fb1_ref, fw2_ref, fb2_ref, fw3_ref, fb3_ref,
                   o_ref, *, tb, c1, c2):
    f32, bf16 = jnp.float32, jnp.bfloat16
    KH = 5
    Hs = x_ref.shape[0] // tb               # 32: per-image padded slab height
    Wo1 = wt1_ref.shape[1] // c1            # 28: conv1 output width
    Wo2 = wt2_ref.shape[1] // c2            # 10: conv2 output width
    P1 = r1_ref.shape[0] // tb              # 14: valid pool1 rows per image
    nh = rh_ref.shape[0]                    # 5:  pool2 rows per image
    Mo1 = tb * Hs - (KH - 1)                # conv1 rows (incl. garbage rows)
    Mo2 = tb * P1 - (KH - 1)                # conv2 rows (incl. garbage rows)

    x = x_ref[...]                                              # (tb*32, 32*cin)

    # ---- conv1 + bias + relu: K-fused im2col (5 row-shifted views
    #      lane-concatenated), one MXU dot with K = 5*32*cin ----
    lhs1 = jnp.concatenate([x[kh:kh + Mo1, :] for kh in range(KH)],
                           axis=1).astype(bf16)                 # (Mo1, 160*cin)
    a1 = jnp.dot(lhs1, wt1_ref[...], preferred_element_type=f32)
    a1 = jnp.maximum(a1 + b1_ref[...], 0.0)                     # (Mo1, 28*c1)

    # ---- pool1: width/height pair max (VPU) + block-diagonal selector matmul
    #      that decimates rows AND drops cross-image garbage rows ----
    wm1 = jnp.maximum(a1[:, :(Wo1 - 1) * c1], a1[:, c1:])       # (Mo1, 162)
    hm1 = jnp.maximum(wm1[:-1, :], wm1[1:, :]).astype(bf16)     # (Mo1-1, 162)
    p1 = jnp.dot(r1_ref[...], hm1, preferred_element_type=f32)  # (tb*14, 162)
    # (pool1 width decimation is folded into the conv2 Toeplitz weights)

    # ---- conv2 + bias + relu: K-fused im2col, one MXU dot with K = 5*162 ----
    lhs2 = jnp.concatenate([p1[kh:kh + Mo2, :] for kh in range(KH)],
                           axis=1).astype(bf16)                 # (Mo2, 810)
    a2 = jnp.dot(lhs2, wt2_ref[...], preferred_element_type=f32)
    a2 = jnp.maximum(a2 + b2_ref[...], 0.0)                     # (Mo2, 10*c2)

    # ---- pool2: pair maxes (width decimation folded into the fc1 packing) ----
    wm2 = jnp.maximum(a2[:, :(Wo2 - 1) * c2], a2[:, c2:])       # (Mo2, 144)
    hm2 = jnp.maximum(wm2[:-1, :], wm2[1:, :]).astype(bf16)     # (Mo2-1, 144)

    # ---- fc1: per-image (C,H,W) flatten = nh tiny row selectors + lane concat
    #      (all 128-lane aligned), then one dot against the folded fc1 weight ----
    feat = jnp.concatenate(
        [jnp.dot(rh_ref[h], hm2, preferred_element_type=f32) for h in range(nh)],
        axis=1).astype(bf16)                                    # (tb, 720)
    h1 = jnp.maximum(jnp.dot(feat, wall_ref[...],
                             preferred_element_type=f32) + fb1_ref[...], 0.0)
    h2 = jnp.maximum(jnp.dot(h1.astype(bf16), fw2_ref[...],
                             preferred_element_type=f32) + fb2_ref[...], 0.0)
    o_ref[...] = (jnp.dot(h2.astype(bf16), fw3_ref[...],
                          preferred_element_type=f32) + fb3_ref[...])


# ----------------------------------------------------------------------------
# One-time host-side weight packing (pure numpy transforms of the weights).
# ----------------------------------------------------------------------------
def pack_params(p, image_hw=28):
    f32 = np.float32
    w1 = np.asarray(p["conv1_w"], f32)                 # (5,5,cin,6)  HWIO
    b1 = np.asarray(p["conv1_b"], f32).reshape(1, -1)
    w2 = np.asarray(p["conv2_w"], f32)                 # (5,5,6,16)
    b2 = np.asarray(p["conv2_b"], f32).reshape(1, -1)
    fw1 = np.asarray(p["fc1_w"], f32)                  # (400,120), (C,H,W) rows
    fb1 = np.asarray(p["fc1_b"], f32).reshape(1, -1)
    fw2 = np.asarray(p["fc2_w"], f32)                  # (120,84)
    fb2 = np.asarray(p["fc2_b"], f32).reshape(1, -1)
    fw3 = np.asarray(p["fc3_w"], f32)                  # (84,n_class)
    fb3 = np.asarray(p["fc3_b"], f32).reshape(1, -1)

    pad = 2
    H = W = image_hw
    KH, KW, cin, c1 = w1.shape
    KH2, KW2, _, c2 = w2.shape
    Hp, Wp = H + 2 * pad, W + 2 * pad                  # 32, 32
    Ho1, Wo1 = Hp - KH + 1, Wp - KW + 1                # 28, 28
    Hq1, Wq1 = Ho1 // 2, Wo1 // 2                      # 14, 14
    Ho2, Wo2 = Hq1 - KH2 + 1, Wq1 - KW2 + 1            # 10, 10
    Hq2, Wq2 = Ho2 // 2, Wo2 // 2                      # 5, 5
    d1 = fw1.shape[1]                                  # 120
    d2 = fw2.shape[1]                                  # 84
    n_class = fw3.shape[1]
    assert fw1.shape[0] == c2 * Hq2 * Wq2, "fc1 expects 16*5*5 = 28x28 input"
    d1p = ((d1 + 127) // 128) * 128                    # 128 (lane aligned)
    d2p = ((d2 + 127) // 128) * 128                    # 128
    npad = ((n_class + 127) // 128) * 128              # 128

    # conv1 K-fused Toeplitz (K = 5*Wp*cin), columns j*c1+co.
    wt1 = np.zeros((KH * Wp * cin, Wo1 * c1), f32)
    for kh in range(KH):
        for kw in range(KW):
            for j in range(Wo1):
                r0 = kh * Wp * cin + (j + kw) * cin
                wt1[r0:r0 + cin, j * c1:(j + 1) * c1] = w1[kh, kw]
    b1row = np.tile(b1, (1, Wo1))                                  # (1, 168)

    # conv2 K-fused Toeplitz reading the width-undecimated pool1 layout
    # (162 lanes per tap; pool1 width decimation folded in via the 2* stride).
    n_in2 = (Wo1 - 1) * c1                                         # 162
    wt2 = np.zeros((KH2 * n_in2, Wo2 * c2), f32)
    for kh in range(KH2):
        for kw in range(KW2):
            for j in range(Wo2):
                r0 = kh * n_in2 + 2 * (j + kw) * c1
                wt2[r0:r0 + c1, j * c2:(j + 1) * c2] = w2[kh, kw]
    b2row = np.tile(b2, (1, Wo2))                                  # (1, 160)

    # fc1 with PyTorch (C,H,W) flatten + pool2 width decimation folded in.
    # feat lane layout is h*144 + 2*w*c2 + c  (h = pool2 row block).
    n_in_f = (Wo2 - 1) * c2                                        # 144
    wall = np.zeros((Hq2 * n_in_f, d1p), f32)                      # (720, 128)
    for h in range(Hq2):
        for w_ in range(Wq2):
            for c in range(c2):
                wall[h * n_in_f + 2 * w_ * c2 + c, :d1] = \
                    fw1[c * Hq2 * Wq2 + h * Wq2 + w_, :]
    fb1p = np.zeros((1, d1p), f32); fb1p[:, :d1] = fb1

    fw2p = np.zeros((d1p, d2p), f32); fw2p[:d1, :d2] = fw2
    fb2p = np.zeros((1, d2p), f32);  fb2p[:, :d2] = fb2
    fw3p = np.zeros((d2p, npad), f32); fw3p[:d2, :n_class] = fw3
    fb3p = np.zeros((1, npad), f32);  fb3p[:, :n_class] = fb3

    bf16 = jnp.bfloat16
    return {
        "wt1": jnp.asarray(wt1, bf16), "b1": jnp.asarray(b1row),
        "wt2": jnp.asarray(wt2, bf16), "b2": jnp.asarray(b2row),
        "wall": jnp.asarray(wall, bf16), "fb1": jnp.asarray(fb1p),
        "fw2": jnp.asarray(fw2p, bf16), "fb2": jnp.asarray(fb2p),
        "fw3": jnp.asarray(fw3p, bf16), "fb3": jnp.asarray(fb3p),
        "meta": dict(cin=cin, c1=c1, c2=c2, pad=pad, H=H, W=W, Hp=Hp, Wp=Wp,
                     Hq1=Hq1, Hq2=Hq2, n_class=n_class, npad=npad,
                     d1p=d1p, d2p=d2p),
    }


# ----------------------------------------------------------------------------
# Block-diagonal 0/1 selectors (depend only on TB and geometry, built once).
# ----------------------------------------------------------------------------
@functools.lru_cache(maxsize=None)
def _selectors(tb, hs, p1_rows, p2_rows):
    kh = 5
    mo1 = tb * hs - (kh - 1)
    r1 = np.zeros((tb * p1_rows, mo1 - 1), np.float32)
    for b in range(tb):
        for q in range(p1_rows):
            r1[b * p1_rows + q, b * hs + 2 * q] = 1.0
    mo2 = tb * p1_rows - (kh - 1)
    rh = np.zeros((p2_rows, tb, mo2 - 1), np.float32)
    for h in range(p2_rows):
        for b in range(tb):
            rh[h, b, b * p1_rows + 2 * h] = 1.0
    return jnp.asarray(r1, jnp.bfloat16), jnp.asarray(rh, jnp.bfloat16)


# ----------------------------------------------------------------------------
# Wrapper: one fused pallas_call over a batch-blocked, batch-parallel grid.
# ----------------------------------------------------------------------------
def lenet5_forward(x_nchw, pk, tb=8):
    m = pk["meta"]
    cin, H, W, pad = m["cin"], m["H"], m["W"], m["pad"]
    Hp, Wp, npad = m["Hp"], m["Wp"], m["npad"]
    Hq1, Hq2 = m["Hq1"], m["Hq2"]
    assert tb > 0 and tb % 8 == 0, "tb must be a positive multiple of 8"

    B = x_nchw.shape[0]
    Bp = pl.cdiv(B, tb) * tb
    nsteps = Bp // tb

    # Host-side boundary prep (tiny XLA glue): NCHW -> channel-minor NHWC,
    # zero-pad spatially (conv1 padding=2) and pad batch to a multiple of tb,
    # then row-concatenate the images so the DMA'd block IS the conv1 LHS slab.
    x = jnp.transpose(x_nchw, (0, 2, 3, 1)).astype(jnp.float32)    # (B,28,28,cin)
    x = jnp.pad(x, ((0, Bp - B), (pad, pad), (pad, pad), (0, 0)))
    x = x.reshape(Bp * Hp, Wp * cin)                               # (Bp*32, 32*cin)

    r1, rh = _selectors(tb, Hp, Hq1, Hq2)

    kernel = functools.partial(_lenet5_kernel, tb=tb, c1=m["c1"], c2=m["c2"])
    args = (x, pk["wt1"], pk["b1"], r1, pk["wt2"], pk["b2"], rh,
            pk["wall"], pk["fb1"], pk["fw2"], pk["fb2"], pk["fw3"], pk["fb3"])

    def full_spec(a):
        nd = a.ndim
        return pl.BlockSpec(a.shape, lambda g: (0,) * nd)

    in_specs = [pl.BlockSpec((tb * Hp, Wp * cin), lambda g: (g, 0))]
    in_specs += [full_spec(a) for a in args[1:]]

    # Advisory cost estimate (helps XLA schedule the surrounding glue).
    mo1 = tb * Hp - 4
    mo2 = tb * Hq1 - 4
    k1, n1 = pk["wt1"].shape
    k2, n2 = pk["wt2"].shape
    macs = (mo1 * k1 * n1                                     # conv1
            + (tb * Hq1) * (mo1 - 1) * (n1 - m["c1"])         # pool1 selector
            + mo2 * k2 * n2                                   # conv2
            + Hq2 * tb * (mo2 - 1) * (n2 - m["c2"])           # fc1 row selectors
            + tb * pk["wall"].shape[0] * pk["wall"].shape[1]  # fc1
            + tb * pk["fw2"].shape[0] * pk["fw2"].shape[1]    # fc2
            + tb * pk["fw3"].shape[0] * pk["fw3"].shape[1])   # fc3
    weight_bytes = sum(int(a.size) * a.dtype.itemsize for a in args[1:])
    cost = pl.CostEstimate(flops=2 * macs * nsteps, transcendentals=0,
                           bytes_accessed=int(x.size) * 4 + weight_bytes
                           + Bp * npad * 4)

    out = pl.pallas_call(
        kernel,
        out_shape=jax.ShapeDtypeStruct((Bp, npad), jnp.float32),
        grid=(nsteps,),
        in_specs=in_specs,
        out_specs=pl.BlockSpec((tb, npad), lambda g: (g, 0)),
        compiler_params=pltpu.CompilerParams(
            dimension_semantics=("parallel",)),
        cost_estimate=cost,
    )(*args)
    return out[:B, :m["n_class"]]


# ----------------------------------------------------------------------------
# Pure-JAX reference (sanity check only).
# ----------------------------------------------------------------------------
def reference_forward(x_nchw, p):
    x = jnp.transpose(x_nchw, (0, 2, 3, 1)).astype(jnp.float32)
    dn = ("NHWC", "HWIO", "NHWC")
    y = lax.conv_general_dilated(x, p["conv1_w"], (1, 1), ((2, 2), (2, 2)),
                                 dimension_numbers=dn,
                                 precision=lax.Precision.HIGHEST)
    y = jnp.maximum(y + p["conv1_b"].reshape(1, 1, 1, -1), 0.0)
    y = lax.reduce_window(y, -jnp.inf, lax.max, (1, 2, 2, 1), (1, 2, 2, 1), "VALID")
    y = lax.conv_general_dilated(y, p["conv2_w"], (1, 1), "VALID",
                                 dimension_numbers=dn,
                                 precision=lax.Precision.HIGHEST)
    y = jnp.maximum(y + p["conv2_b"].reshape(1, 1, 1, -1), 0.0)
    y = lax.reduce_window(y, -jnp.inf, lax.max, (1, 2, 2, 1), (1, 2, 2, 1), "VALID")
    B = y.shape[0]
    y = jnp.transpose(y, (0, 3, 1, 2)).reshape(B, -1)
    h = jnp.maximum(y @ p["fc1_w"] + p["fc1_b"], 0.0)
    h = jnp.maximum(h @ p["fc2_w"] + p["fc2_b"], 0.0)
    return h @ p["fc3_w"] + p["fc3_b"]


# ----------------------------------------------------------------------------
# Deterministic synthetic parameter init (same shapes as the PyTorch module).
# ----------------------------------------------------------------------------
def init_params(key, in_dim, n_class):
    ks = jax.random.split(key, 10)

    def conv_w(k, kh, kw, cin, cout):
        std = (2.0 / (kh * kw * cin + kh * kw * cout)) ** 0.5
        return std * jax.random.normal(k, (kh, kw, cin, cout), jnp.float32)

    def lin_w(k, fin, fout):
        return jax.random.normal(k, (fin, fout), jnp.float32) / jnp.sqrt(float(fin))

    return {
        "conv1_w": conv_w(ks[0], 5, 5, in_dim, 6),
        "conv1_b": 0.1 * jax.random.normal(ks[1], (1, 6), jnp.float32),
        "conv2_w": conv_w(ks[2], 5, 5, 6, 16),
        "conv2_b": 0.1 * jax.random.normal(ks[3], (1, 16), jnp.float32),
        "fc1_w": lin_w(ks[4], 16 * 5 * 5, 120),
        "fc1_b": 0.1 * jax.random.normal(ks[5], (1, 120), jnp.float32),
        "fc2_w": lin_w(ks[6], 120, 84),
        "fc2_b": 0.1 * jax.random.normal(ks[7], (1, 84), jnp.float32),
        "fc3_w": lin_w(ks[8], 84, n_class),
        "fc3_b": 0.1 * jax.random.normal(ks[9], (1, n_class), jnp.float32),
    }


if __name__ == "__main__":
    in_dim, n_class, batch, tb = 1, 10, 32, 8   # grid = 4 steps (>=2 for v7x)
    key = jax.random.PRNGKey(0)
    pkey, xkey = jax.random.split(key)
    params = init_params(pkey, in_dim, n_class)
    packed = pack_params(params, image_hw=28)   # fc1 (16*5*5) implies 28x28 input

    x = jax.random.normal(xkey, (batch, in_dim, 28, 28), jnp.float32)

    fwd = jax.jit(lambda xx: lenet5_forward(xx, packed, tb=tb))
    out = jax.block_until_ready(fwd(x))
    ref = jax.block_until_ready(reference_forward(x, params))

    assert out.shape == (batch, n_class), out.shape
    if not bool(jnp.allclose(out, ref, rtol=5e-2, atol=5e-2)):
        raise AssertionError(
            f"Pallas LeNet5 mismatch vs reference; max abs err = "
            f"{float(jnp.max(jnp.abs(out - ref)))}")

    print("KERNEL_OK")
</pallas_src>

<mosaic_0001>
module attributes {stable_mosaic.version = 11 : i64} {
  func.func @_lenet5_kernel(%arg0: i32, %arg1: memref<256x32xf32, #tpu.memory_space<vmem>>, %arg2: memref<160x168xbf16, #tpu.memory_space<vmem>>, %arg3: memref<1x168xf32, #tpu.memory_space<vmem>>, %arg4: memref<112x251xbf16, #tpu.memory_space<vmem>>, %arg5: memref<810x160xbf16, #tpu.memory_space<vmem>>, %arg6: memref<1x160xf32, #tpu.memory_space<vmem>>, %arg7: memref<5x8x107xbf16, #tpu.memory_space<vmem>>, %arg8: memref<720x128xbf16, #tpu.memory_space<vmem>>, %arg9: memref<1x128xf32, #tpu.memory_space<vmem>>, %arg10: memref<128x128xbf16, #tpu.memory_space<vmem>>, %arg11: memref<1x128xf32, #tpu.memory_space<vmem>>, %arg12: memref<128x128xbf16, #tpu.memory_space<vmem>>, %arg13: memref<1x128xf32, #tpu.memory_space<vmem>>, %arg14: memref<8x128xf32, #tpu.memory_space<vmem>>) attributes {dimension_semantics = [#tpu.dimension_semantics<parallel>], iteration_bounds = array<i64: 4>, scalar_prefetch = 0 : i64, scratch_operands = 0 : i64, tpu.core_type = #tpu.core_type<tc>, window_params = [{transform_indices = @transform_0, window_bounds = array<i64: 256, 32>}, {pipeline_mode = #tpu.pipeline_mode<synchronous>, transform_indices = @transform_1, window_bounds = array<i64: 160, 168>}, {pipeline_mode = #tpu.pipeline_mode<synchronous>, transform_indices = @transform_2, window_bounds = array<i64: 1, 168>}, {pipeline_mode = #tpu.pipeline_mode<synchronous>, transform_indices = @transform_3, window_bounds = array<i64: 112, 251>}, {pipeline_mode = #tpu.pipeline_mode<synchronous>, transform_indices = @transform_4, window_bounds = array<i64: 810, 160>}, {pipeline_mode = #tpu.pipeline_mode<synchronous>, transform_indices = @transform_5, window_bounds = array<i64: 1, 160>}, {pipeline_mode = #tpu.pipeline_mode<synchronous>, transform_indices = @transform_6, window_bounds = array<i64: 5, 8, 107>}, {pipeline_mode = #tpu.pipeline_mode<synchronous>, transform_indices = @transform_7, window_bounds = array<i64: 720, 128>}, {pipeline_mode = #tpu.pipeline_mode<synchronous>, transform_indices = @transform_8, window_bounds = array<i64: 1, 128>}, {pipeline_mode = #tpu.pipeline_mode<synchronous>, transform_indices = @transform_9, window_bounds = array<i64: 128, 128>}, {pipeline_mode = #tpu.pipeline_mode<synchronous>, transform_indices = @transform_10, window_bounds = array<i64: 1, 128>}, {pipeline_mode = #tpu.pipeline_mode<synchronous>, transform_indices = @transform_11, window_bounds = array<i64: 128, 128>}, {pipeline_mode = #tpu.pipeline_mode<synchronous>, transform_indices = @transform_12, window_bounds = array<i64: 1, 128>}, {transform_indices = @transform_13, window_bounds = array<i64: 8, 128>}]} {
    %c0 = arith.constant 0 : index
    %c0_0 = arith.constant 0 : index
    %0 = vector.load %arg1[%c0, %c0_0] : memref<256x32xf32, #tpu.memory_space<vmem>>, vector<256x32xf32>
    %1 = vector.extract_strided_slice %0 {offsets = [0, 0], sizes = [252, 32], strides = [1, 1]} : vector<256x32xf32> to vector<252x32xf32>
    %2 = vector.extract_strided_slice %0 {offsets = [1, 0], sizes = [252, 32], strides = [1, 1]} : vector<256x32xf32> to vector<252x32xf32>
    %3 = vector.extract_strided_slice %0 {offsets = [2, 0], sizes = [252, 32], strides = [1, 1]} : vector<256x32xf32> to vector<252x32xf32>
    %4 = vector.extract_strided_slice %0 {offsets = [3, 0], sizes = [252, 32], strides = [1, 1]} : vector<256x32xf32> to vector<252x32xf32>
    %5 = vector.extract_strided_slice %0 {offsets = [4, 0], sizes = [252, 32], strides = [1, 1]} : vector<256x32xf32> to vector<252x32xf32>
    %6 = tpu.concatenate %1, %2, %3, %4, %5 in 1 : vector<252x32xf32>, vector<252x32xf32>, vector<252x32xf32>, vector<252x32xf32>, vector<252x32xf32> -> vector<252x160xf32>
    %7 = arith.truncf %6 : vector<252x160xf32> to vector<252x160xbf16>
    %c0_1 = arith.constant 0 : index
    %c0_2 = arith.constant 0 : index
    %8 = vector.load %arg2[%c0_1, %c0_2] : memref<160x168xbf16, #tpu.memory_space<vmem>>, vector<160x168xbf16>
    %cst = arith.constant dense<0.000000e+00> : vector<252x168xf32>
    %9 = tpu.matmul %7, %8, %cst {dimension_numbers = #tpu.dot_dimension_numbers<[1], [0], [0], [1], [0, 0, 1, 1], [], []>} : vector<252x160xbf16>, vector<160x168xbf16>, vector<252x168xf32> -> vector<252x168xf32>
    %c0_3 = arith.constant 0 : index
    %c0_4 = arith.constant 0 : index
    %10 = vector.load %arg3[%c0_3, %c0_4] : memref<1x168xf32, #tpu.memory_space<vmem>>, vector<1x168xf32>
    %11 = vector.broadcast %10 : vector<1x168xf32> to vector<252x168xf32>
    %12 = arith.addf %9, %11 : vector<252x168xf32>
    %cst_5 = arith.constant 0.000000e+00 : f32
    %13 = vector.broadcast %cst_5 : f32 to vector<252x168xf32>
    %14 = arith.maximumf %12, %13 : vector<252x168xf32>
    %15 = vector.extract_strided_slice %14 {offsets = [0, 0], sizes = [252, 162], strides = [1, 1]} : vector<252x168xf32> to vector<252x162xf32>
    %16 = vector.extract_strided_slice %14 {offsets = [0, 6], sizes = [252, 162], strides = [1, 1]} : vector<252x168xf32> to vector<252x162xf32>
    %17 = arith.maximumf %15, %16 : vector<252x162xf32>
    %18 = vector.extract_strided_slice %17 {offsets = [0, 0], sizes = [251, 162], strides = [1, 1]} : vector<252x162xf32> to vector<251x162xf32>
    %19 = vector.extract_strided_slice %17 {offsets = [1, 0], sizes = [251, 162], strides = [1, 1]} : vector<252x162xf32> to vector<251x162xf32>
    %20 = arith.maximumf %18, %19 : vector<251x162xf32>
    %21 = arith.truncf %20 : vector<251x162xf32> to vector<251x162xbf16>
    %c0_6 = arith.constant 0 : index
    %c0_7 = arith.constant 0 : index
    %22 = vector.load %arg4[%c0_6, %c0_7] : memref<112x251xbf16, #tpu.memory_space<vmem>>, vector<112x251xbf16>
    %cst_8 = arith.constant dense<0.000000e+00> : vector<112x162xf32>
    %23 = tpu.matmul %22, %21, %cst_8 {dimension_numbers = #tpu.dot_dimension_numbers<[1], [0], [0], [1], [0, 0, 1, 1], [], []>} : vector<112x251xbf16>, vector<251x162xbf16>, vector<112x162xf32> -> vector<112x162xf32>
    %24 = vector.extract_strided_slice %23 {offsets = [0, 0], sizes = [108, 162], strides = [1, 1]} : vector<112x162xf32> to vector<108x162xf32>
    %25 = vector.extract_strided_slice %23 {offsets = [1, 0], sizes = [108, 162], strides = [1, 1]} : vector<112x162xf32> to vector<108x162xf32>
    %26 = vector.extract_strided_slice %23 {offsets = [2, 0], sizes = [108, 162], strides = [1, 1]} : vector<112x162xf32> to vector<108x162xf32>
    %27 = vector.extract_strided_slice %23 {offsets = [3, 0], sizes = [108, 162], strides = [1, 1]} : vector<112x162xf32> to vector<108x162xf32>
    %28 = vector.extract_strided_slice %23 {offsets = [4, 0], sizes = [108, 162], strides = [1, 1]} : vector<112x162xf32> to vector<108x162xf32>
    %29 = tpu.concatenate %24, %25, %26, %27, %28 in 1 : vector<108x162xf32>, vector<108x162xf32>, vector<108x162xf32>, vector<108x162xf32>, vector<108x162xf32> -> vector<108x810xf32>
    %30 = arith.truncf %29 : vector<108x810xf32> to vector<108x810xbf16>
    %c0_9 = arith.constant 0 : index
    %c0_10 = arith.constant 0 : index
    %31 = vector.load %arg5[%c0_9, %c0_10] : memref<810x160xbf16, #tpu.memory_space<vmem>>, vector<810x160xbf16>
    %cst_11 = arith.constant dense<0.000000e+00> : vector<108x160xf32>
    %32 = tpu.matmul %30, %31, %cst_11 {dimension_numbers = #tpu.dot_dimension_numbers<[1], [0], [0], [1], [0, 0, 1, 1], [], []>} : vector<108x810xbf16>, vector<810x160xbf16>, vector<108x160xf32> -> vector<108x160xf32>
    %c0_12 = arith.constant 0 : index
    %c0_13 = arith.constant 0 : index
    %33 = vector.load %arg6[%c0_12, %c0_13] : memref<1x160xf32, #tpu.memory_space<vmem>>, vector<1x160xf32>
    %34 = vector.broadcast %33 : vector<1x160xf32> to vector<108x160xf32>
    %35 = arith.addf %32, %34 : vector<108x160xf32>
    %cst_14 = arith.constant 0.000000e+00 : f32
    %36 = vector.broadcast %cst_14 : f32 to vector<108x160xf32>
    %37 = arith.maximumf %35, %36 : vector<108x160xf32>
    %38 = vector.extract_strided_slice %37 {offsets = [0, 0], sizes = [108, 144], strides = [1, 1]} : vector<108x160xf32> to vector<108x144xf32>
    %39 = vector.extract_strided_slice %37 {offsets = [0, 16], sizes = [108, 144], strides = [1, 1]} : vector<108x160xf32> to vector<108x144xf32>
    %40 = arith.maximumf %38, %39 : vector<108x144xf32>
    %41 = vector.extract_strided_slice %40 {offsets = [0, 0], sizes = [107, 144], strides = [1, 1]} : vector<108x144xf32> to vector<107x144xf32>
    %42 = vector.extract_strided_slice %40 {offsets = [1, 0], sizes = [107, 144], strides = [1, 1]} : vector<108x144xf32> to vector<107x144xf32>
    %43 = arith.maximumf %41, %42 : vector<107x144xf32>
    %44 = arith.truncf %43 : vector<107x144xf32> to vector<107x144xbf16>
    %c0_15 = arith.constant 0 : index
    %c0_16 = arith.constant 0 : index
    %c0_17 = arith.constant 0 : index
    %45 = vector.load %arg7[%c0_15, %c0_16, %c0_17] : memref<5x8x107xbf16, #tpu.memory_space<vmem>>, vector<1x8x107xbf16>
    %46 = vector.shape_cast %45 : vector<1x8x107xbf16> to vector<8x107xbf16>
    %cst_18 = arith.constant dense<0.000000e+00> : vector<8x144xf32>
    %47 = tpu.matmul %46, %44, %cst_18 {dimension_numbers = #tpu.dot_dimension_numbers<[1], [0], [0], [1], [0, 0, 1, 1], [], []>} : vector<8x107xbf16>, vector<107x144xbf16>, vector<8x144xf32> -> vector<8x144xf32>
    %c1 = arith.constant 1 : index
    %c0_19 = arith.constant 0 : index
    %c0_20 = arith.constant 0 : index
    %48 = vector.load %arg7[%c1, %c0_19, %c0_20] : memref<5x8x107xbf16, #tpu.memory_space<vmem>>, vector<1x8x107xbf16>
    %49 = vector.shape_cast %48 : vector<1x8x107xbf16> to vector<8x107xbf16>
    %cst_21 = arith.constant dense<0.000000e+00> : vector<8x144xf32>
    %50 = tpu.matmul %49, %44, %cst_21 {dimension_numbers = #tpu.dot_dimension_numbers<[1], [0], [0], [1], [0, 0, 1, 1], [], []>} : vector<8x107xbf16>, vector<107x144xbf16>, vector<8x144xf32> -> vector<8x144xf32>
    %c2 = arith.constant 2 : index
    %c0_22 = arith.constant 0 : index
    %c0_23 = arith.constant 0 : index
    %51 = vector.load %arg7[%c2, %c0_22, %c0_23] : memref<5x8x107xbf16, #tpu.memory_space<vmem>>, vector<1x8x107xbf16>
    %52 = vector.shape_cast %51 : vector<1x8x107xbf16> to vector<8x107xbf16>
    %cst_24 = arith.constant dense<0.000000e+00> : vector<8x144xf32>
    %53 = tpu.matmul %52, %44, %cst_24 {dimension_numbers = #tpu.dot_dimension_numbers<[1], [0], [0], [1], [0, 0, 1, 1], [], []>} : vector<8x107xbf16>, vector<107x144xbf16>, vector<8x144xf32> -> vector<8x144xf32>
    %c3 = arith.constant 3 : index
    %c0_25 = arith.constant 0 : index
    %c0_26 = arith.constant 0 : index
    %54 = vector.load %arg7[%c3, %c0_25, %c0_26] : memref<5x8x107xbf16, #tpu.memory_space<vmem>>, vector<1x8x107xbf16>
    %55 = vector.shape_cast %54 : vector<1x8x107xbf16> to vector<8x107xbf16>
    %cst_27 = arith.constant dense<0.000000e+00> : vector<8x144xf32>
    %56 = tpu.matmul %55, %44, %cst_27 {dimension_numbers = #tpu.dot_dimension_numbers<[1], [0], [0], [1], [0, 0, 1, 1], [], []>} : vector<8x107xbf16>, vector<107x144xbf16>, vector<8x144xf32> -> vector<8x144xf32>
    %c4 = arith.constant 4 : index
    %c0_28 = arith.constant 0 : index
    %c0_29 = arith.constant 0 : index
    %57 = vector.load %arg7[%c4, %c0_28, %c0_29] : memref<5x8x107xbf16, #tpu.memory_space<vmem>>, vector<1x8x107xbf16>
    %58 = vector.shape_cast %57 : vector<1x8x107xbf16> to vector<8x107xbf16>
    %cst_30 = arith.constant dense<0.000000e+00> : vector<8x144xf32>
    %59 = tpu.matmul %58, %44, %cst_30 {dimension_numbers = #tpu.dot_dimension_numbers<[1], [0], [0], [1], [0, 0, 1, 1], [], []>} : vector<8x107xbf16>, vector<107x144xbf16>, vector<8x144xf32> -> vector<8x144xf32>
    %60 = tpu.concatenate %47, %50, %53, %56, %59 in 1 : vector<8x144xf32>, vector<8x144xf32>, vector<8x144xf32>, vector<8x144xf32>, vector<8x144xf32> -> vector<8x720xf32>
    %61 = arith.truncf %60 : vector<8x720xf32> to vector<8x720xbf16>
    %c0_31 = arith.constant 0 : index
    %c0_32 = arith.constant 0 : index
    %62 = vector.load %arg8[%c0_31, %c0_32] : memref<720x128xbf16, #tpu.memory_space<vmem>>, vector<720x128xbf16>
    %cst_33 = arith.constant dense<0.000000e+00> : vector<8x128xf32>
    %63 = tpu.matmul %61, %62, %cst_33 {dimension_numbers = #tpu.dot_dimension_numbers<[1], [0], [0], [1], [0, 0, 1, 1], [], []>} : vector<8x720xbf16>, vector<720x128xbf16>, vector<8x128xf32> -> vector<8x128xf32>
    %c0_34 = arith.constant 0 : index
    %c0_35 = arith.constant 0 : index
    %64 = vector.load %arg9[%c0_34, %c0_35] : memref<1x128xf32, #tpu.memory_space<vmem>>, vector<1x128xf32>
    %65 = vector.broadcast %64 : vector<1x128xf32> to vector<8x128xf32>
    %66 = arith.addf %63, %65 : vector<8x128xf32>
    %cst_36 = arith.constant 0.000000e+00 : f32
    %67 = vector.broadcast %cst_36 : f32 to vector<8x128xf32>
    %68 = arith.maximumf %66, %67 : vector<8x128xf32>
    %69 = arith.truncf %68 : vector<8x128xf32> to vector<8x128xbf16>
    %c0_37 = arith.constant 0 : index
    %c0_38 = arith.constant 0 : index
    %70 = vector.load %arg10[%c0_37, %c0_38] : memref<128x128xbf16, #tpu.memory_space<vmem>>, vector<128x128xbf16>
    %cst_39 = arith.constant dense<0.000000e+00> : vector<8x128xf32>
    %71 = tpu.matmul %69, %70, %cst_39 {dimension_numbers = #tpu.dot_dimension_numbers<[1], [0], [0], [1], [0, 0, 1, 1], [], []>} : vector<8x128xbf16>, vector<128x128xbf16>, vector<8x128xf32> -> vector<8x128xf32>
    %c0_40 = arith.constant 0 : index
    %c0_41 = arith.constant 0 : index
    %72 = vector.load %arg11[%c0_40, %c0_41] : memref<1x128xf32, #tpu.memory_space<vmem>>, vector<1x128xf32>
    %73 = vector.broadcast %72 : vector<1x128xf32> to vector<8x128xf32>
    %74 = arith.addf %71, %73 : vector<8x128xf32>
    %cst_42 = arith.constant 0.000000e+00 : f32
    %75 = vector.broadcast %cst_42 : f32 to vector<8x128xf32>
    %76 = arith.maximumf %74, %75 : vector<8x128xf32>
    %77 = arith.truncf %76 : vector<8x128xf32> to vector<8x128xbf16>
    %c0_43 = arith.constant 0 : index
    %c0_44 = arith.constant 0 : index
    %78 = vector.load %arg12[%c0_43, %c0_44] : memref<128x128xbf16, #tpu.memory_space<vmem>>, vector<128x128xbf16>
    %cst_45 = arith.constant dense<0.000000e+00> : vector<8x128xf32>
    %79 = tpu.matmul %77, %78, %cst_45 {dimension_numbers = #tpu.dot_dimension_numbers<[1], [0], [0], [1], [0, 0, 1, 1], [], []>} : vector<8x128xbf16>, vector<128x128xbf16>, vector<8x128xf32> -> vector<8x128xf32>
    %c0_46 = arith.constant 0 : index
    %c0_47 = arith.constant 0 : index
    %80 = vector.load %arg13[%c0_46, %c0_47] : memref<1x128xf32, #tpu.memory_space<vmem>>, vector<1x128xf32>
    %81 = vector.broadcast %80 : vector<1x128xf32> to vector<8x128xf32>
    %82 = arith.addf %79, %81 : vector<8x128xf32>
    %c0_48 = arith.constant 0 : index
    %c0_49 = arith.constant 0 : index
    %83 = vector.load %arg14[%c0_48, %c0_49] : memref<8x128xf32, #tpu.memory_space<vmem>>, vector<8x128xf32>
    tpu.vector_store %arg14[%c0_48, %c0_49], %82 {strides = array<i32>} : memref<8x128xf32, #tpu.memory_space<vmem>>, vector<8x128xf32>,
    return
  }
  func.func @transform_0(%arg0: i32) -> (i32, i32) {
    %c0_i32 = arith.constant 0 : i32
    %c0_i32_0 = arith.constant 0 : i32
    return %arg0, %c0_i32 : i32, i32
  }
  func.func @transform_1(%arg0: i32) -> (i32, i32) {
    %c0_i32 = arith.constant 0 : i32
    %c0_i32_0 = arith.constant 0 : i32
    %c0_i32_1 = arith.constant 0 : i32
    return %c0_i32, %c0_i32_0 : i32, i32
  }
  func.func @transform_2(%arg0: i32) -> (i32, i32) {
    %c0_i32 = arith.constant 0 : i32
    %c0_i32_0 = arith.constant 0 : i32
    %c0_i32_1 = arith.constant 0 : i32
    return %c0_i32, %c0_i32_0 : i32, i32
  }
  func.func @transform_3(%arg0: i32) -> (i32, i32) {
    %c0_i32 = arith.constant 0 : i32
    %c0_i32_0 = arith.constant 0 : i32
    %c0_i32_1 = arith.constant 0 : i32
    return %c0_i32, %c0_i32_0 : i32, i32
  }
  func.func @transform_4(%arg0: i32) -> (i32, i32) {
    %c0_i32 = arith.constant 0 : i32
    %c0_i32_0 = arith.constant 0 : i32
    %c0_i32_1 = arith.constant 0 : i32
    return %c0_i32, %c0_i32_0 : i32, i32
  }
  func.func @transform_5(%arg0: i32) -> (i32, i32) {
    %c0_i32 = arith.constant 0 : i32
    %c0_i32_0 = arith.constant 0 : i32
    %c0_i32_1 = arith.constant 0 : i32
    return %c0_i32, %c0_i32_0 : i32, i32
  }
  func.func @transform_6(%arg0: i32) -> (i32, i32, i32) {
    %c0_i32 = arith.constant 0 : i32
    %c0_i32_0 = arith.constant 0 : i32
    %c0_i32_1 = arith.constant 0 : i32
    %c0_i32_2 = arith.constant 0 : i32
    return %c0_i32, %c0_i32_0, %c0_i32_1 : i32, i32, i32
  }
  func.func @transform_7(%arg0: i32) -> (i32, i32) {
    %c0_i32 = arith.constant 0 : i32
    %c0_i32_0 = arith.constant 0 : i32
    %c0_i32_1 = arith.constant 0 : i32
    return %c0_i32, %c0_i32_0 : i32, i32
  }
  func.func @transform_8(%arg0: i32) -> (i32, i32) {
    %c0_i32 = arith.constant 0 : i32
    %c0_i32_0 = arith.constant 0 : i32
    %c0_i32_1 = arith.constant 0 : i32
    return %c0_i32, %c0_i32_0 : i32, i32
  }
  func.func @transform_9(%arg0: i32) -> (i32, i32) {
    %c0_i32 = arith.constant 0 : i32
    %c0_i32_0 = arith.constant 0 : i32
    %c0_i32_1 = arith.constant 0 : i32
    return %c0_i32, %c0_i32_0 : i32, i32
  }
  func.func @transform_10(%arg0: i32) -> (i32, i32) {
    %c0_i32 = arith.constant 0 : i32
    %c0_i32_0 = arith.constant 0 : i32
    %c0_i32_1 = arith.constant 0 : i32
    return %c0_i32, %c0_i32_0 : i32, i32
  }
  func.func @transform_11(%arg0: i32) -> (i32, i32) {
    %c0_i32 = arith.constant 0 : i32
    %c0_i32_0 = arith.constant 0 : i32
    %c0_i32_1 = arith.constant 0 : i32
    return %c0_i32, %c0_i32_0 : i32, i32
  }
  func.func @transform_12(%arg0: i32) -> (i32, i32) {
    %c0_i32 = arith.constant 0 : i32
    %c0_i32_0 = arith.constant 0 : i32
    %c0_i32_1 = arith.constant 0 : i32
    return %c0_i32, %c0_i32_0 : i32, i32
  }
  func.func @transform_13(%arg0: i32) -> (i32, i32) {
    %c0_i32 = arith.constant 0 : i32
    %c0_i32_0 = arith.constant 0 : i32
    return %arg0, %c0_i32 : i32, i32
  }
}

</mosaic_0001>

<bundles_post_ra>
// kernel: _lambda_.1
= control target key start
LH: loop header
LB: loop body
LE: loop exit
PB: predicated region body
PF: predicated region fallthrough
CT: control target
= control target key end

     0   :  { %s7416_s25 = smov 0   ;;  %s11130_s0 = inlined_call_operand.vmem [shape: f32[1024,32], index: 0, kind: input, shape index: {}]   ;;  %s11131_s1 = inlined_call_operand.vmem [shape: bf16[160,168], index: 1, kind: input, shape index: {}]   ;;  %s11132_s2 = inlined_call_operand.vmem [shape: f32[1,168], index: 2, kind: input, shape index: {}]   ;;  %s11133_s3 = inlined_call_operand.vmem [shape: bf16[112,251], index: 3, kind: input, shape index: {}]   ;;  %s11134_s4 = inlined_call_operand.vmem [shape: bf16[810,160], index: 4, kind: input, shape index: {}]   ;;  %s11135_s5 = inlined_call_operand.vmem [shape: f32[1,160], index: 5, kind: input, shape index: {}]   ;;  %s11136_s6 = inlined_call_operand.vmem [shape: bf16[5,8,107], index: 6, kind: input, shape index: {}]   ;;  %s11137_s7 = inlined_call_operand.vmem [shape: bf16[720,128], index: 7, kind: input, shape index: {}]   ;;  %s11138_s8 = inlined_call_operand.vmem [shape: f32[1,128], index: 8, kind: input, shape index: {}]   ;;  %s11139_s9 = inlined_call_operand.vmem [shape: bf16[128,128], index: 9, kind: input, shape index: {}]   ;;  %s11140_s10 = inlined_call_operand.vmem [shape: f32[1,128], index: 10, kind: input, shape index: {}]   ;;  %s11141_s11 = inlined_call_operand.vmem [shape: bf16[128,128], index: 11, kind: input, shape index: {}]   ;;  %s11142_s12 = inlined_call_operand.vmem [shape: f32[1,128], index: 12, kind: input, shape index: {}]   ;;  %s11143_s13 = inlined_call_operand.vmem [shape: f32[32,128], index: 13, kind: output, shape index: {}]  }
   0x1 LB: > { %s7422_s26 = sadd.s32 4294967295, %s7329_s25   ;;  %p5778_p0 = scmp.ge.s32.totalorder %s7329_s25, 1  ;;  %s7329_s25 = sphi %s7416_s25, %s23_s25  }
   0x2   : > { %p388_p1 = scmp.lt.s32.totalorder %s7329_s25, 5 }
   0x4   : > { %p389_p2 = pnand %p5778_p0, %p388_p1 }
   0x6   : > { %392 = sbr.rel (%p389_p2) target bundleno = 2664 (0xa68), region = 72 }
   0xd   : > { %s5779_s27 = sshll.u32 %s7422_s26, 5  ;;  %v7027_v0 = vld [vmem:[%s11131_s1 + $0x4] ss:$8 sps:$4 sm:$0xff]   ;;  %v7029_v1 = vld [vmem:[%s11131_s1] ss:$8 sps:$4 sm:$0xff]   ;;  %vm506_vm0 = vcmask 1046528  }
   0xe   : > { %p432_p3 = scmp.lt.s32.totalorder %s5779_s27, 127  ;;  %v7030_v2 = vld [vmem:[%s11131_s1 + $0x14] ss:$8 sps:$4 sm:$0xff]   ;;  %1393 = vmatprep.subr.bf16.mxu0 %v7027_v0  ;;  %v7032_v3 = vld [vmem:[%s11131_s1 + $0x10] ss:$8 sps:$4 sm:$0xff]   ;;  %vm826_vm1 = vcmask 1044480  }
   0xf   : > { %1394 = vmatpush1.bf16.msra.mxu0 %v7029_v1  ;;  %v7033_v4 = vld [vmem:[%s11131_s1 + $0x24] ss:$8 sps:$4 sm:$0xff]   ;;  %v7035_v5 = vld [vmem:[%s11131_s1 + $0x20] ss:$8 sps:$4 sm:$0xff]   ;;  %vm666_vm2 = vcmask 1045504   ;;  %s7331_s16 = smov 32  }
  0x10   : > { %s11671_s27 = smov (!%p432_p3, %s5779_s27), 127  ;;  %1395 = vmatprep.subr.bf16.mxu0 %v7030_v2  ;;  %v7036_v9 = vld [vmem:[%s11131_s1 + $0x34] ss:$8 sps:$4 sm:$0xff]   ;;  %v7038_v34 = vld [vmem:[%s11131_s1 + $0x30] ss:$8 sps:$4 sm:$0xff]   ;;  %s7333_s22 = smov 64  }
  0x11   : > { %s5780_s19 = sshll.u32 %s11671_s27, 3  ;;  %v7039_v39 = vld [vmem:[%s11131_s1 + $0x44] ss:$8 sps:$4 sm:$0xff]   ;;  %v7041_v53 = vld [vmem:[%s11131_s1 + $0x40] ss:$8 sps:$4 sm:$0xff]   ;;  %vm1082_vm3 = vcmask 261120  }
  0x12   : > { %s7445_s24 = scalar_lea.vmem %s11130_s0, %s5780_s19  ;;  %s7332_s19 = smov 96   ;;  %v7042_v0 = vld [vmem:[%s11131_s1 + $0x54] ss:$8 sps:$4 sm:$0xff]   ;;  %vm986_vm4 = vcmask 1043456   ;;  %vm1115_vm5 = vcmask 523264   ;;  %vm1148_vm6 = vcmask 785408  }
  0x13   : > { %v7451_v6 = vld [vmem:[%s7445_s24] sm:$0xff]  ;;  %v7454_v7 = vld [vmem:[%s7445_s24 + $0x8] sm:$0xff]  ;;  %v7457_v8 = vld [vmem:[%s7445_s24 + $0x10] sm:$0xff]  ;;  %1396 = vmatpush1.bf16.msra.mxu0 %v7032_v3  ;;  %s7334_s20 = smov 122   ;;  %vm1842_vm7 = vcmask 998400   ;;  %vm2430_vm8 = vcmask 1006592  }
  0x14   : > { %v507_v10 = vrot.slane %v7451_v6, 1  ;;  %v508_v11 = vrot.slane %v7454_v7, 1  ;;  %v510_v12 = vrot.slane %v7457_v8, 1  ;;  %v827_v13 = vrot.slane %v7451_v6, 3  ;;  %v445_v14 = vld [vmem:[%s7445_s24 + $0x18] sm:$0xff]  ;;  %v7472_v19 = vld [vmem:[%s7445_s24 + $0x20] sm:$0xff]  ;;  %1397 = vmatprep.subr.bf16.mxu0 %v7033_v4 }
  0x15   : > { %v828_v15 = vrot.slane %v7454_v7, 3  ;;  %v830_v16 = vrot.slane %v7457_v8, 3  ;;  %v667_v17 = vrot.slane %v7451_v6, 2  ;;  %v668_v18 = vrot.slane %v7454_v7, 2  ;;  %v447_v28 = vld [vmem:[%s7445_s24 + $0x28] sm:$0xff]  ;;  %v7482_v29 = vld [vmem:[%s7445_s24 + $0x30] sm:$0xff] }
  0x16   : > { %v509_v20 = vsel %vm506_vm0, %v507_v10, %v508_v11  ;;  %v511_v21 = vsel %vm506_vm0, %v508_v11, %v510_v12  ;;  %v670_v22 = vrot.slane %v7457_v8, 2  ;;  %v512_v23 = vrot.slane %v445_v14, 1  ;;  %v449_v48 = vld [vmem:[%s7445_s24 + $0x38] sm:$0xff]  ;;  %v7504_v49 = vld [vmem:[%s7445_s24 + $0x40] sm:$0xff]  ;;  %v451_v11 = vld [vmem:[%s7445_s24 + $0x48] sm:$0xff]  ;;  %s7336_s29 = smov 34  }
  0x17   : > { %v6262_v24 = vpack.i.bf16 %v511_v21, %v509_v20  ;;  %v829_v25 = vsel %vm826_vm1, %v827_v13, %v828_v15  ;;  %v831_v26 = vsel %vm826_vm1, %v828_v15, %v830_v16  ;;  %v669_v27 = vsel %vm666_vm2, %v667_v17, %v668_v18  ;;  %1398 = vmatpush1.bf16.msra.mxu0 %v7035_v5  ;;  %v7044_v3 = vld [vmem:[%s11131_s1 + $0x50] ss:$8 sps:$4 sm:$0xff]   ;;  %v7045_v17 = vld [vmem:[%s11131_s1 + $0x64] ss:$8 sps:$4 sm:$0xff]   ;;  %v7047_v20 = vld [vmem:[%s11131_s1 + $0x60] ss:$8 sps:$4 sm:$0xff]  }
  0x18   : > { %v6272_v30 = vpack.i.bf16 %v831_v26, %v829_v25  ;;  %v671_v31 = vsel %vm666_vm2, %v668_v18, %v670_v22  ;;  %v513_v32 = vsel %vm506_vm0, %v510_v12, %v512_v23  ;;  %v514_v33 = vrot.slane %v7472_v19, 1  ;;  %1399 = vmatprep.subr.bf16.mxu0 %v7036_v9  ;;  %v453_v25 = vld [vmem:[%s7445_s24 + $0x58] sm:$0xff]  ;;  %s7337_s27 = smov 68   ;;  %s7338_s30 = smov 102  }
  0x19   : > { %6263 = vrot.lane.b32.xlu0 %v6262_v24, %s7331_s16  ;;  %v6267_v35 = vpack.i.bf16 %v671_v31, %v669_v27  ;;  %v672_v36 = vrot.slane %v445_v14, 2  ;;  %v674_v37 = vrot.slane %v7472_v19, 2  ;;  %v832_v38 = vrot.slane %v445_v14, 3  ;;  %v7048_v26 = vld [vmem:[%s11131_s1 + $0x74] ss:$8 sps:$4 sm:$0xff]   ;;  %v7556_v31 = vld [vmem:[%s7445_s24 + $0x60] sm:$0xff] }
  0x1a   : > { %6273 = vrot.lane.b32.xlu1 %v6272_v30, %s7332_s19  ;;  %v515_v40 = vsel %vm506_vm0, %v512_v23, %v514_v33  ;;  %v834_v41 = vrot.slane %v7472_v19, 3  ;;  %v516_v42 = vrot.slane %v447_v28, 1  ;;  %v518_v43 = vrot.slane %v7482_v29, 1  ;;  %s7339_s14 = smov 8   ;;  %p437_p4 = scmp.lt.s32.totalorder %s7422_s26, 3 }
  0x1b   : > { %v6277_v44 = vpack.i.bf16 %v515_v40, %v513_v32  ;;  %v673_v45 = vsel %vm666_vm2, %v670_v22, %v672_v36  ;;  %v675_v46 = vsel %vm666_vm2, %v672_v36, %v674_v37  ;;  %v833_v47 = vsel %vm826_vm1, %v830_v16, %v832_v38  ;;  %1400 = vmatpush1.bf16.msra.mxu0 %v7038_v34  ;;  %v7535_v16 = vld [vmem:[%s7445_s24 + $0x50] sm:$0xff] }
  0x1c   : > { %v6282_v50 = vpack.i.bf16 %v675_v46, %v673_v45  ;;  %v835_v51 = vsel %vm826_vm1, %v832_v38, %v834_v41  ;;  %v517_v52 = vsel %vm506_vm0, %v514_v33, %v516_v42  ;;  %v519_v55 = vsel %vm506_vm0, %v516_v42, %v518_v43  ;;  %1401 = vmatprep.subr.bf16.mxu0 %v7039_v39  ;;  %v7050_v32 = vld [vmem:[%s11131_s1 + $0x70] ss:$8 sps:$4 sm:$0xff]   ;;  %v455_v45 = vld [vmem:[%s7445_s24 + $0x68] sm:$0xff]  ;;  %s11673_s26 = smov (!%p437_p4, %s7422_s26), 3 }
  0x1d   : > { %6268 = vrot.lane.b32.xlu0 %v6267_v35, %s7333_s22  ;;  %v6287_v54 = vpack.i.bf16 %v835_v51, %v833_v47  ;;  %v676_v56 = vrot.slane %v447_v28, 2  ;;  %v678_v57 = vrot.slane %v7482_v29, 2  ;;  %v836_v58 = vrot.slane %v447_v28, 3  ;;  %v7051_v35 = vld [vmem:[%s11131_s1 + $0x84] ss:$8 sps:$4 sm:$0xff]  }
  0x1e   : > { %6278 = vrot.lane.b32.xlu1 %v6277_v44, %s7331_s16  ;;  %v838_v59 = vrot.slane %v7482_v29, 3  ;;  %v520_v60 = vrot.slane %v449_v48, 1  ;;  %v522_v61 = vrot.slane %v7504_v49, 1  ;;  %v6292_v1 = vpack.i.bf16 %v519_v55, %v517_v52  ;;  %v7053_v44 = vld [vmem:[%s11131_s1 + $0x80] ss:$8 sps:$4 sm:$0xff]  }
  0x1f   : > { %v677_v62 = vsel %vm666_vm2, %v674_v37, %v676_v56  ;;  %v679_v63 = vsel %vm666_vm2, %v676_v56, %v678_v57  ;;  %v680_v2 = vrot.slane %v449_v48, 2  ;;  %1402 = vmatpush1.bf16.msra.mxu0 %v7041_v53  ;;  %v837_v5 = vsel %vm826_vm1, %v834_v41, %v836_v58  ;;  %v7054_v53 = vld [vmem:[%s11131_s1 + $0x94] ss:$8 sps:$4 sm:$0xff]  }
  0x20   : > { %v6297_v4 = vpack.i.bf16 %v679_v63, %v677_v62  ;;  %v839_v9 = vsel %vm826_vm1, %v836_v58, %v838_v59  ;;  %v682_v10 = vrot.slane %v7504_v49, 2  ;;  %v521_v12 = vsel %vm506_vm0, %v518_v43, %v520_v60  ;;  %1403 = vmatprep.subr.bf16.mxu0 %v7042_v0  ;;  %v7056_v58 = vld [vmem:[%s11131_s1 + $0x90] ss:$8 sps:$4 sm:$0xff]  }
  0x21   : > { %6283 = vrot.lane.b32.xlu0 %v6282_v50, %s7333_s22  ;;  %v523_v13 = vsel %vm506_vm0, %v520_v60, %v522_v61  ;;  %v840_v14 = vrot.slane %v449_v48, 3  ;;  %v842_v15 = vrot.slane %v7504_v49, 3  ;;  %v6302_v18 = vpack.i.bf16 %v839_v9, %v837_v5  ;;  %v7578_v48 = vld [vmem:[%s7445_s24 + $0x70] sm:$0xff]  ;;  %v458_v9 = vld [vmem:[%s7445_s24 + $0x80] sm:$0xff] }
  0x22   : > { %6288 = vrot.lane.b32.xlu1 %v6287_v54, %s7332_s19  ;;  %v681_v19 = vsel %vm666_vm2, %v678_v57, %v680_v2  ;;  %v6307_v21 = vpack.i.bf16 %v523_v13, %v521_v12  ;;  %v683_v22 = vsel %vm666_vm2, %v680_v2, %v682_v10  ;;  %v524_v23 = vrot.slane %v451_v11, 1 }
  0x23   : > { %1404 = vmatpush1.bf16.msra.mxu0 %v7044_v3  ;;  %v526_v24 = vrot.slane %v7535_v16, 1  ;;  %v841_v27 = vsel %vm826_vm1, %v838_v59, %v840_v14  ;;  %v843_v28 = vsel %vm826_vm1, %v840_v14, %v842_v15  ;;  %v684_v29 = vrot.slane %v451_v11, 2 }
  0x24   : > { %v686_v30 = vrot.slane %v7535_v16, 2  ;;  %1405 = vmatprep.subr.bf16.mxu0 %v7045_v17  ;;  %v6312_v33 = vpack.i.bf16 %v683_v22, %v681_v19  ;;  %v844_v34 = vrot.slane %v451_v11, 3  ;;  %v6317_v36 = vpack.i.bf16 %v843_v28, %v841_v27  ;;  %v459_v22 = vld [vmem:[%s7445_s24 + $0x88] sm:$0xff] }
  0x25   : > { %6293 = vrot.lane.b32.xlu0 %v6292_v1, %s7331_s16  ;;  %v525_v37 = vsel %vm506_vm0, %v522_v61, %v524_v23  ;;  %v527_v38 = vsel %vm506_vm0, %v524_v23, %v526_v24  ;;  %v846_v39 = vrot.slane %v7535_v16, 3  ;;  %v685_v40 = vsel %vm666_vm2, %v682_v10, %v684_v29  ;;  %v457_v1 = vld [vmem:[%s7445_s24 + $0x78] sm:$0xff]  ;;  %v460_v23 = vld [vmem:[%s7445_s24 + $0x90] sm:$0xff] }
  0x26   : > { %6298 = vrot.lane.b32.xlu1 %v6297_v4, %s7333_s22  ;;  %v687_v41 = vsel %vm666_vm2, %v684_v29, %v686_v30  ;;  %v528_v42 = vrot.slane %v453_v25, 1  ;;  %v530_v43 = vrot.slane %v7556_v31, 1  ;;  %v6322_v46 = vpack.i.bf16 %v527_v38, %v525_v37 }
  0x27   : > { %1406 = vmatpush1.bf16.msra.mxu0 %v7047_v20  ;;  %v845_v47 = vsel %vm826_vm1, %v842_v15, %v844_v34  ;;  %v6327_v49 = vpack.i.bf16 %v687_v41, %v685_v40  ;;  %v847_v50 = vsel %vm826_vm1, %v844_v34, %v846_v39  ;;  %v688_v51 = vrot.slane %v453_v25, 2 }
  0x28   : > { %1407 = vmatprep.subr.bf16.mxu0 %v7048_v26  ;;  %v690_v52 = vrot.slane %v7556_v31, 2  ;;  %v529_v54 = vsel %vm506_vm0, %v526_v24, %v528_v42  ;;  %v531_v55 = vsel %vm506_vm0, %v528_v42, %v530_v43  ;;  %v848_v56 = vrot.slane %v453_v25, 3  ;;  %v461_v42 = vld [vmem:[%s7445_s24 + $0x98] sm:$0xff] }
  0x29   : > { %6303 = vrot.lane.b32.xlu0 %v6302_v18, %s7332_s19  ;;  %v850_v57 = vrot.slane %v7556_v31, 3  ;;  %v6332_v59 = vpack.i.bf16 %v847_v50, %v845_v47  ;;  %v532_v60 = vrot.slane %v455_v45, 1  ;;  %v6337_v61 = vpack.i.bf16 %v531_v55, %v529_v54 }
  0x2a   : > { %6308 = vrot.lane.b32.xlu1 %v6307_v21, %s7331_s16  ;;  %v689_v62 = vsel %vm666_vm2, %v686_v30, %v688_v51  ;;  %v691_v63 = vsel %vm666_vm2, %v688_v51, %v690_v52  ;;  %v534_v0 = vrot.slane %v7578_v48, 1  ;;  %v849_v2 = vsel %vm826_vm1, %v846_v39, %v848_v56 }
  0x2b   : > { %1408 = vmatpush1.bf16.msra.mxu0 %v7050_v32  ;;  %v851_v3 = vsel %vm826_vm1, %v848_v56, %v850_v57  ;;  %v692_v4 = vrot.slane %v455_v45, 2  ;;  %v694_v5 = vrot.slane %v7578_v48, 2  ;;  %v6342_v10 = vpack.i.bf16 %v691_v63, %v689_v62 }
  0x2c   : > { %1409 = vmatprep.subr.bf16.mxu0 %v7051_v35  ;;  %v533_v11 = vsel %vm506_vm0, %v530_v43, %v532_v60  ;;  %v6347_v12 = vpack.i.bf16 %v851_v3, %v849_v2  ;;  %v535_v13 = vsel %vm506_vm0, %v532_v60, %v534_v0  ;;  %v852_v14 = vrot.slane %v455_v45, 3  ;;  %v462_v43 = vld [vmem:[%s7445_s24 + $0xa0] sm:$0xff]  ;;  %v7642_v2 = vld [vmem:[%s7445_s24 + $0xb8] sm:$0xff] }
  0x2d   : > { %6313 = vrot.lane.b32.xlu0 %v6312_v33, %s7333_s22  ;;  %v854_v15 = vrot.slane %v7578_v48, 3  ;;  %v693_v16 = vsel %vm666_vm2, %v690_v52, %v692_v4  ;;  %v695_v17 = vsel %vm666_vm2, %v692_v4, %v694_v5  ;;  %v536_v18 = vrot.slane %v457_v1, 1  ;;  %v7645_v3 = vld [vmem:[%s7445_s24 + $0xc0] sm:$0xff] }
  0x2e   : > { %6318 = vrot.lane.b32.xlu1 %v6317_v36, %s7332_s19  ;;  %v538_v19 = vrot.slane %v458_v9, 1  ;;  %v6352_v20 = vpack.i.bf16 %v535_v13, %v533_v11  ;;  %v696_v21 = vrot.slane %v457_v1, 2  ;;  %v6357_v24 = vpack.i.bf16 %v695_v17, %v693_v16 }
  0x2f   : > { %1410 = vmatpush1.bf16.msra.mxu0 %v7053_v44  ;;  %v853_v25 = vsel %vm826_vm1, %v850_v57, %v852_v14  ;;  %v855_v26 = vsel %vm826_vm1, %v852_v14, %v854_v15  ;;  %v698_v27 = vrot.slane %v458_v9, 2  ;;  %v537_v28 = vsel %vm506_vm0, %v534_v0, %v536_v18 }
  0x30   : > { %1411 = vmatprep.subr.bf16.mxu0 %v7054_v53  ;;  %v539_v29 = vsel %vm506_vm0, %v536_v18, %v538_v19  ;;  %v856_v30 = vrot.slane %v457_v1, 3  ;;  %v858_v31 = vrot.slane %v458_v9, 3  ;;  %v6362_v32 = vpack.i.bf16 %v855_v26, %v853_v25 }
  0x31   : > { %6323 = vrot.lane.b32.xlu0 %v6322_v46, %s7331_s16  ;;  %v697_v33 = vsel %vm666_vm2, %v694_v5, %v696_v21  ;;  %v6367_v34 = vpack.i.bf16 %v539_v29, %v537_v28  ;;  %v699_v35 = vsel %vm666_vm2, %v696_v21, %v698_v27  ;;  %v540_v36 = vrot.slane %v459_v22, 1  ;;  %v463_v46 = vld [vmem:[%s7445_s24 + $0xa8] sm:$0xff] }
  0x32   : > { %6328 = vrot.lane.b32.xlu1 %v6327_v49, %s7333_s22  ;;  %v542_v37 = vrot.slane %v460_v23, 1  ;;  %v857_v38 = vsel %vm826_vm1, %v854_v15, %v856_v30  ;;  %v859_v39 = vsel %vm826_vm1, %v856_v30, %v858_v31  ;;  %v700_v40 = vrot.slane %v459_v22, 2  ;;  %v7629_v49 = vld [vmem:[%s7445_s24 + $0xb0] sm:$0xff] }
  0x33   : > { %1412 = vmatpush1.bf16.msra.mxu0 %v7056_v58  ;;  %v702_v41 = vrot.slane %v460_v23, 2  ;;  %v860_v44 = vrot.slane %v459_v22, 3  ;;  %v862_v45 = vrot.slane %v460_v23, 3  ;;  %v6372_v47 = vpack.i.bf16 %v699_v35, %v697_v33  ;;  %v7662_v23 = vld [vmem:[%s7445_s24 + $0xc8] sm:$0xff] }
  0x34   : > { %v6377_v48 = vpack.i.bf16 %v859_v39, %v857_v38  ;;  %v541_v50 = vsel %vm506_vm0, %v538_v19, %v540_v36  ;;  %v543_v51 = vsel %vm506_vm0, %v540_v36, %v542_v37  ;;  %v701_v52 = vsel %vm666_vm2, %v698_v27, %v700_v40  ;;  %v7682_v38 = vld [vmem:[%s7445_s24 + $0xd8] sm:$0xff] }
  0x35   : > { %6333 = vrot.lane.b32.xlu0 %v6332_v59, %s7332_s19  ;;  %v703_v53 = vsel %vm666_vm2, %v700_v40, %v702_v41  ;;  %v861_v54 = vsel %vm826_vm1, %v858_v31, %v860_v44  ;;  %v544_v55 = vrot.slane %v461_v42, 1  ;;  %v546_v56 = vrot.slane %v462_v43, 1 }
  0x36   : > { %6338 = vrot.lane.b32.xlu1 %v6337_v61, %s7331_s16  ;;  %v704_v57 = vrot.slane %v461_v42, 2  ;;  %v863_v58 = vsel %vm826_vm1, %v860_v44, %v862_v45  ;;  %v706_v59 = vrot.slane %v462_v43, 2  ;;  %v864_v60 = vrot.slane %v461_v42, 3  ;;  %v7691_v44 = vld [vmem:[%s7445_s24 + $0xe0] sm:$0xff] }
  0x37   : > { %v866_v61 = vrot.slane %v462_v43, 3  ;;  %v6382_v62 = vpack.i.bf16 %v543_v51, %v541_v50  ;;  %v548_v63 = vrot.slane %v463_v46, 1  ;;  %v550_v0 = vrot.slane %v7629_v49, 1 }
  0x38   : > { %v6387_v1 = vpack.i.bf16 %v703_v53, %v701_v52  ;;  %v6392_v4 = vpack.i.bf16 %v863_v58, %v861_v54  ;;  %v545_v5 = vsel %vm506_vm0, %v542_v37, %v544_v55  ;;  %v547_v9 = vsel %vm506_vm0, %v544_v55, %v546_v56 }
  0x39   : > { %6343 = vrot.lane.b32.xlu0 %v6342_v10, %s7333_s22  ;;  %v705_v10 = vsel %vm666_vm2, %v702_v41, %v704_v57  ;;  %v707_v11 = vsel %vm666_vm2, %v704_v57, %v706_v59  ;;  %v867_v13 = vsel %vm826_vm1, %v864_v60, %v866_v61  ;;  %v549_v14 = vsel %vm506_vm0, %v546_v56, %v548_v63  ;;  %v7709_v57 = vld [vmem:[%s7445_s24 + $0xf0] sm:$0xff] }
  0x3a   : > { %6348 = vrot.lane.b32.xlu1 %v6347_v12, %s7332_s19  ;;  %v865_v12 = vsel %vm826_vm1, %v862_v45, %v864_v60  ;;  %v551_v15 = vsel %vm506_vm0, %v548_v63, %v550_v0  ;;  %v708_v16 = vrot.slane %v463_v46, 2  ;;  %v710_v17 = vrot.slane %v7629_v49, 2 }
  0x3b   : > { %v6397_v18 = vpack.i.bf16 %v547_v9, %v545_v5  ;;  %v868_v19 = vrot.slane %v463_v46, 3  ;;  %v552_v21 = vrot.slane %v7642_v2, 1  ;;  %v554_v22 = vrot.slane %v7645_v3, 1 }
  0x3c   : > { %v6402_v25 = vpack.i.bf16 %v707_v11, %v705_v10  ;;  %v6407_v26 = vpack.i.bf16 %v867_v13, %v865_v12  ;;  %v6412_v27 = vpack.i.bf16 %v551_v15, %v549_v14  ;;  %v709_v28 = vsel %vm666_vm2, %v706_v59, %v708_v16  ;;  %v7726_v10 = vld [vmem:[%s7445_s24 + $0xf8] sm:$0xff] }
  0x3d   : > { %6353 = vrot.lane.b32.xlu0 %v6352_v20, %s7331_s16  ;;  %v870_v20 = vrot.slane %v7629_v49, 3  ;;  %v711_v29 = vsel %vm666_vm2, %v708_v16, %v710_v17  ;;  %v712_v30 = vrot.slane %v7642_v2, 2  ;;  %v987_v31 = vrot.slane %v7451_v6, 4 }
  0x3e   : > { %6358 = vrot.lane.b32.xlu1 %v6357_v24, %s7333_s22  ;;  %v7665_v24 = vld [vmem:[%s7445_s24 + $0xd0] sm:$0xff]  ;;  %v872_v35 = vrot.slane %v7642_v2, 3  ;;  %v553_v36 = vsel %vm506_vm0, %v550_v0, %v552_v21  ;;  %v555_v37 = vsel %vm506_vm0, %v552_v21, %v554_v22  ;;  %v988_v6 = vrot.slane %v7454_v7, 4  ;;  %v7697_v7 = vld [vmem:[%s7445_s24 + $0xe8] sm:$0xff] }
  0x3f   : > { %v871_v33 = vsel %vm826_vm1, %v868_v19, %v870_v20  ;;  %v990_v39 = vrot.slane %v7457_v8, 4  ;;  %v874_v40 = vrot.slane %v7645_v3, 3  ;;  %v556_v41 = vrot.slane %v7662_v23, 1 }
  0x40   : > { %v558_v42 = vrot.slane %v7665_v24, 1  ;;  %v716_v43 = vrot.slane %v7662_v23, 2  ;;  %v718_v45 = vrot.slane %v7665_v24, 2  ;;  %v876_v46 = vrot.slane %v7662_v23, 3 }
  0x41   : > { %6363 = vrot.lane.b32.xlu0 %v6362_v32, %s7332_s19  ;;  %v869_v32 = vsel %vm826_vm1, %v866_v61, %v868_v19  ;;  %v6417_v49 = vpack.i.bf16 %v711_v29, %v709_v28  ;;  %v713_v52 = vsel %vm666_vm2, %v710_v17, %v712_v30  ;;  %v6427_v53 = vpack.i.bf16 %v555_v37, %v553_v36 }
  0x42   : > { %6368 = vrot.lane.b32.xlu1 %v6367_v34, %s7331_s16  ;;  %v714_v34 = vrot.slane %v7645_v3, 2  ;;  %v6422_v51 = vpack.i.bf16 %v871_v33, %v869_v32  ;;  %v878_v55 = vrot.slane %v7665_v24, 3  ;;  %v560_v56 = vrot.slane %v7682_v38, 1 }
  0x43   : > { %v562_v58 = vrot.slane %v7691_v44, 1  ;;  %v720_v59 = vrot.slane %v7682_v38, 2  ;;  %v722_v60 = vrot.slane %v7691_v44, 2  ;;  %v880_v61 = vrot.slane %v7682_v38, 3 }
  0x44   : > { %v715_v54 = vsel %vm666_vm2, %v712_v30, %v714_v34  ;;  %v875_v63 = vsel %vm826_vm1, %v872_v35, %v874_v40  ;;  %v882_v0 = vrot.slane %v7691_v44, 3  ;;  %v566_v5 = vrot.slane %v7709_v57, 1 }
  0x45   : > { %6373 = vrot.lane.b32.xlu0 %v6372_v47, %s7333_s22  ;;  %v989_v47 = vsel %vm986_vm4, %v987_v31, %v988_v6  ;;  %v6432_v2 = vpack.i.bf16 %v715_v54, %v713_v52  ;;  %v724_v9 = vrot.slane %v7697_v7, 2  ;;  %v557_v11 = vsel %vm506_vm0, %v554_v22, %v556_v41 }
  0x46   : > { %6378 = vrot.lane.b32.xlu1 %v6377_v48, %s7332_s19  ;;  %v991_v48 = vsel %vm986_vm4, %v988_v6, %v990_v39  ;;  %v559_v12 = vsel %vm506_vm0, %v556_v41, %v558_v42  ;;  %v726_v13 = vrot.slane %v7709_v57, 2  ;;  %v884_v14 = vrot.slane %v7697_v7, 3 }
  0x47   : > { %v1182_v50 = vpack.c.bf16 %v991_v48, %v989_v47  ;;  %v717_v15 = vsel %vm666_vm2, %v714_v34, %v716_v43  ;;  %v719_v16 = vsel %vm666_vm2, %v716_v43, %v718_v45  ;;  %v6442_v17 = vpack.i.bf16 %v559_v12, %v557_v11 }
  0x48   : > { %v6447_v3 = vpack.i.bf16 %v719_v16, %v717_v15  ;;  %v879_v19 = vsel %vm826_vm1, %v876_v46, %v878_v55  ;;  %v568_v21 = vrot.slane %v7726_v10, 1  ;;  %v561_v22 = vsel %vm506_vm0, %v558_v42, %v560_v56  ;;  %v7296_v15 = vld [vmem:[%s7445_s24 + $0x28] sm:$0xff] }
  0x49   : > { %6383 = vrot.lane.b32.xlu0 %v6382_v62, %s7331_s16  ;;  %5802 = vmatprep.mubr.msk.bf16.mxu0 %vm1082_vm3, %v1182_v50  ;;  %v873_v62 = vsel %vm826_vm1, %v870_v20, %v872_v35  ;;  %v886_v20 = vrot.slane %v7709_v57, 3  ;;  %v563_v23 = vsel %vm506_vm0, %v560_v56, %v562_v58  ;;  %v881_v28 = vsel %vm826_vm1, %v878_v55, %v880_v61 }
  0x4a   : > { %6388 = vrot.lane.b32.xlu1 %v6387_v1, %s7333_s22  ;;  %v564_v1 = vrot.slane %v7697_v7, 1  ;;  %v883_v29 = vsel %vm826_vm1, %v880_v61, %v882_v0  ;;  %v728_v34 = vrot.slane %v7726_v10, 2  ;;  %v888_v35 = vrot.slane %v7726_v10, 3 }
  0x4b   : > { %v6467_v32 = vpack.i.bf16 %v883_v29, %v881_v28  ;;  %v725_v36 = vsel %vm666_vm2, %v722_v60, %v724_v9  ;;  %v727_v37 = vsel %vm666_vm2, %v724_v9, %v726_v13  ;;  %v885_v41 = vsel %vm826_vm1, %v882_v0, %v884_v14  ;;  %v7295_v9 = vld [vmem:[%s7445_s24] sm:$0xff] }
  0x4c   : > { %v565_v31 = vsel %vm506_vm0, %v562_v58, %v564_v1  ;;  %v567_v33 = vsel %vm506_vm0, %v564_v1, %v566_v5  ;;  %v887_v42 = vsel %vm826_vm1, %v884_v14, %v886_v20  ;;  %v569_v43 = vsel %vm506_vm0, %v566_v5, %v568_v21 }
  0x4d   : > { %6393 = vrot.lane.b32.xlu0 %v6392_v4, %s7332_s19  ;;  %v6437_v4 = vpack.i.bf16 %v875_v63, %v873_v62  ;;  %v6472_v6 = vpack.i.bf16 %v567_v33, %v565_v31  ;;  %v729_v7 = vsel %vm666_vm2, %v726_v13, %v728_v34  ;;  %v889_v47 = vsel %vm826_vm1, %v886_v20, %v888_v35 }
  0x4e   : > { %6398 = vrot.lane.b32.xlu1 %v6397_v18, %s7331_s16  ;;  %v877_v18 = vsel %vm826_vm1, %v874_v40, %v876_v46  ;;  %v6477_v40 = vpack.i.bf16 %v727_v37, %v725_v36  ;;  %v6487_v46 = vpack.i.bf16 %v568_v21, %v569_v43  ;;  %v6492_v48 = vpack.i.bf16 %v728_v34, %v729_v7 }
  0x4f   : > { %v6452_v24 = vpack.i.bf16 %v879_v19, %v877_v18  ;;  %v996_v16 = vrot.slane %v7296_v15, 4  ;;  %v7297_v18 = vld [vmem:[%s7445_s24 + $0x10] sm:$0xff]  ;;  %vm2701_vm9 = vcmask 277504   ;;  %vm2854_vm10 = vcmask 556032  }
  0x50   : > { %vm3007_vm11 = vcmask 834560   ;;  %vm3174_vm12 = vcmask 64512   ;;  %vm3944_vm13 = vcmask 343040   ;;  %vm4496_vm14 = vcmask 916480  }
  0x51   : > { %6403 = vrot.lane.b32.xlu0 %v6402_v25, %s7333_s22  ;;  %v6457_v25 = vpack.i.bf16 %v563_v23, %v561_v22  ;;  %vm4720_vm15 = vcmask 875520  }
  0x52   : > { %6408 = vrot.lane.b32.xlu1 %v6407_v26, %s7332_s19  ;;  %v721_v26 = vsel %vm666_vm2, %v718_v45, %v720_v59  ;;  %v6482_v45 = vpack.i.bf16 %v887_v42, %v885_v41 }
  0x55   : > { %6413 = vrot.lane.b32.xlu0 %v6412_v27, %s7331_s16  ;;  %v723_v27 = vsel %vm666_vm2, %v720_v59, %v722_v60 }
  0x56   : > { %6418 = vrot.lane.b32.xlu1 %v6417_v49, %s7333_s22  ;;  %v6462_v30 = vpack.i.bf16 %v723_v27, %v721_v26  ;;  %v6497_v49 = vpack.i.bf16 %v888_v35, %v889_v47  ;;  %v7298_v26 = vld [vmem:[%s7445_s24 + $0x30] sm:$0xff] }
  0x57   : > { %v998_v27 = vrot.slane %v7298_v26, 4 }
  0x59   : > { %6423 = vrot.lane.b32.xlu0 %v6422_v51, %s7332_s19  ;;  %v7292_v51 = vld [vmem:[%s7445_s24 + $0x18] sm:$0xff]  ;;  %v999_v37 = vsel %vm986_vm4, %v996_v16, %v998_v27 }
  0x5a   : > { %6428 = vrot.lane.b32.xlu1 %v6427_v53, %s7331_s16  ;;  %v992_v52 = vrot.slane %v7292_v51, 4  ;;  %v7293_v53 = vld [vmem:[%s7445_s24 + $0x20] sm:$0xff] }
  0x5b   : > { %v994_v54 = vrot.slane %v7293_v53, 4 }
  0x5c   : > { %v993_v62 = vsel %vm986_vm4, %v990_v39, %v992_v52 }
  0x5d   : > { %6433 = vrot.lane.b32.xlu0 %v6432_v2, %s7333_s22  ;;  %v995_v63 = vsel %vm986_vm4, %v992_v52, %v994_v54  ;;  %v997_v36 = vsel %vm986_vm4, %v994_v54, %v996_v16 }
  0x5e   : > { %6438 = vrot.lane.b32.xlu1 %v6437_v4, %s7332_s19  ;;  %v7294_v4 = vld [vmem:[%s7445_s24 + $0x8] sm:$0xff]  ;;  %v1184_v14 = vpack.c.bf16 %v995_v63, %v993_v62  ;;  %v1186_v7 = vpack.c.bf16 %v999_v37, %v997_v36  ;;  %v7304_v36 = vld [vmem:[%s7445_s24 + $0x60] sm:$0xff] }
  0x5f   : > { %v1010_v37 = vrot.slane %v7304_v36, 4 }
  0x61   : > { %6443 = vrot.lane.b32.xlu0 %v6442_v17, %s7331_s16 }
  0x62   : > { %6448 = vrot.lane.b32.xlu1 %v6447_v3, %s7333_s22 }
  0x65   : > { %6453 = vrot.lane.b32.xlu0 %v6452_v24, %s7332_s19 }
  0x66   : > { %6458 = vrot.lane.b32.xlu1 %v6457_v25, %s7331_s16 }
  0x69   : > { %6463 = vrot.lane.b32.xlu0 %v6462_v30, %s7333_s22 }
  0x6a   : > { %6468 = vrot.lane.b32.xlu1 %v6467_v32, %s7332_s19 }
  0x6d   : > { %6473 = vrot.lane.b32.xlu0 %v6472_v6, %s7331_s16 }
  0x6e   : > { %6478 = vrot.lane.b32.xlu1 %v6477_v40, %s7333_s22 }
  0x71   : > { %6483 = vrot.lane.b32.xlu0 %v6482_v45, %s7332_s19 }
  0x72   : > { %6488 = vrot.lane.b32.xlu1 %v6487_v46, %s7331_s16 }
  0x75   : > { %6493 = vrot.lane.b32.xlu0 %v6492_v48, %s7333_s22 }
  0x76   : > { %6498 = vrot.lane.b32.xlu1 %v6497_v49, %s7332_s19  ;;  %v7299_v49 = vld [vmem:[%s7445_s24 + $0x38] sm:$0xff]  ;;  %s7342_s19 = smov 16  }
  0x8b   : > { %v6264_v50 = vpop.permute.xlu0 %6263 }
  0x8c   : > { %v6274_v55 = vpop.permute.xlu1 %6273  ;;  %v6266_v56 = vunpack.i.h.bf16 %v6264_v50  ;;  %v6265_v58 = vunpack.i.l.bf16 %v6264_v50  ;;  %v1000_v50 = vrot.slane %v7299_v49, 4 }
  0x8d   : > { %v6276_v59 = vunpack.i.h.bf16 %v6274_v55  ;;  %v6275_v60 = vunpack.i.l.bf16 %v6274_v55 }
  0x8e   : > { %v1084_v5 = vsel %vm1082_vm3, %v7294_v4, %v6266_v56  ;;  %v1083_v11 = vsel %vm1082_vm3, %v7295_v9, %v6265_v58 }
  0x8f   : > { %v6269_v61 = vpop.permute.xlu0 %6268 }
  0x90   : > { %v6271_v0 = vunpack.i.h.bf16 %v6269_v61  ;;  %v6270_v1 = vunpack.i.l.bf16 %v6269_v61  ;;  %v6279_v2 = vpop.permute.xlu1 %6278 }
  0x91   : > { %v6281_v12 = vunpack.i.h.bf16 %v6279_v2  ;;  %v6280_v13 = vunpack.i.l.bf16 %v6279_v2 }
  0x92   : > { %v1116_v8 = vsel %vm1115_vm5, %v1083_v11, %v6270_v1  ;;  %v1117_v39 = vsel %vm1115_vm5, %v1084_v5, %v6271_v0 }
  0x93   : > { %v1086_v17 = vsel %vm1082_vm3, %v7292_v51, %v6281_v12  ;;  %v1085_v3 = vsel %vm1082_vm3, %v7297_v18, %v6280_v13  ;;  %v6284_v19 = vpop.permute.xlu0 %6283  ;;  %v1149_v20 = vsel %vm1148_vm6, %v1116_v8, %v6275_v60  ;;  %v1150_v21 = vsel %vm1148_vm6, %v1117_v39, %v6276_v59  ;;  %v7300_v51 = vld [vmem:[%s7445_s24 + $0x40] sm:$0xff]  ;;  %v7301_v8 = vld [vmem:[%s7445_s24 + $0x48] sm:$0xff] }
  0x94   : > { %v6286_v22 = vunpack.i.h.bf16 %v6284_v19  ;;  %v6285_v23 = vunpack.i.l.bf16 %v6284_v19  ;;  %v6289_v24 = vpop.permute.xlu1 %6288  ;;  %v1181_v25 = vpack.c.bf16 %v1150_v21, %v1149_v20  ;;  %v1002_v52 = vrot.slane %v7300_v51, 4 }
  0x95   : > { %v6291_v28 = vunpack.i.h.bf16 %v6289_v24  ;;  %v6290_v29 = vunpack.i.l.bf16 %v6289_v24  ;;  %v1004_v39 = vrot.slane %v7301_v8, 4 }
  0x96   : > { %1426 = vmatmul.mubr.bf16.vlgmr.msra.gmra.mrb[0].mxu0 %v1181_v25  ;;  %v1118_v30 = vsel %vm1115_vm5, %v1085_v3, %v6285_v23  ;;  %v1119_v31 = vsel %vm1115_vm5, %v1086_v17, %v6286_v22  ;;  %v1003_v62 = vsel %vm986_vm4, %v1000_v50, %v1002_v52 }
  0x97   : > { %v6294_v32 = vpop.permute.xlu0 %6293  ;;  %5803 = vmatprep.mubr.msk.bf16.mxu0 %vm1082_vm3, %v1184_v14  ;;  %v1151_v6 = vsel %vm1148_vm6, %v1118_v30, %v6290_v29  ;;  %v1152_v40 = vsel %vm1148_vm6, %v1119_v31, %v6291_v28  ;;  %v7302_v14 = vld [vmem:[%s7445_s24 + $0x50] sm:$0xff]  ;;  %v1005_v22 = vsel %vm986_vm4, %v1002_v52, %v1004_v39 }
  0x98   : > { %v6296_v33 = vunpack.i.h.bf16 %v6294_v32  ;;  %v6295_v34 = vunpack.i.l.bf16 %v6294_v32  ;;  %v6299_v35 = vpop.permute.xlu1 %6298  ;;  %v1183_v47 = vpack.c.bf16 %v1152_v40, %v1151_v6 }
  0x99   : > { %v6301_v41 = vunpack.i.h.bf16 %v6299_v35  ;;  %v6300_v42 = vunpack.i.l.bf16 %v6299_v35 }
  0x9a   : > { %v1088_v43 = vsel %vm1082_vm3, %v7296_v15, %v6296_v33  ;;  %v1087_v45 = vsel %vm1082_vm3, %v7293_v53, %v6295_v34  ;;  %v1001_v53 = vsel %vm986_vm4, %v998_v27, %v1000_v50  ;;  %v1006_v15 = vrot.slane %v7302_v14, 4  ;;  %v7303_v34 = vld [vmem:[%s7445_s24 + $0x58] sm:$0xff] }
  0x9b   : > { %v6304_v46 = vpop.permute.xlu0 %6303  ;;  %v1120_v56 = vsel %vm1115_vm5, %v1087_v45, %v6300_v42  ;;  %v1121_v58 = vsel %vm1115_vm5, %v1088_v43, %v6301_v41  ;;  %v1188_v11 = vpack.c.bf16 %v1003_v62, %v1001_v53  ;;  %v1008_v35 = vrot.slane %v7303_v34, 4  ;;  %v7306_v53 = vld [vmem:[%s7445_s24 + $0x70] sm:$0xff] }
  0x9c   : > { %v6309_v48 = vpop.permute.xlu1 %6308  ;;  %v6306_v54 = vunpack.i.h.bf16 %v6304_v46  ;;  %v6305_v55 = vunpack.i.l.bf16 %v6304_v46  ;;  %v1007_v23 = vsel %vm986_vm4, %v1004_v39, %v1006_v15  ;;  %v1014_v62 = vrot.slane %v7306_v53, 4 }
  0x9d   : > { %v6311_v59 = vunpack.i.h.bf16 %v6309_v48  ;;  %v6310_v60 = vunpack.i.l.bf16 %v6309_v48  ;;  %v1190_v31 = vpack.c.bf16 %v1007_v23, %v1005_v22  ;;  %v7308_v22 = vld [vmem:[%s7445_s24 + $0x80] sm:$0xff] }
  0x9e   : > { %1436 = vmatmul.mubr.bf16.gmra.mrb[4].mxu0 %v1183_v47  ;;  %v1153_v63 = vsel %vm1148_vm6, %v1120_v56, %v6305_v55  ;;  %v1154_v0 = vsel %vm1148_vm6, %v1121_v58, %v6306_v54  ;;  %v1011_v47 = vsel %vm986_vm4, %v1008_v35, %v1010_v37  ;;  %v1018_v23 = vrot.slane %v7308_v22, 4 }
  0x9f   : > { %v6314_v61 = vpop.permute.xlu0 %6313  ;;  %5804 = vmatprep.mubr.msk.bf16.mxu0 %vm1082_vm3, %v1186_v7  ;;  %v1090_v5 = vsel %vm1082_vm3, %v7299_v49, %v6311_v59  ;;  %v1089_v9 = vsel %vm1082_vm3, %v7298_v26, %v6310_v60  ;;  %v1185_v12 = vpack.c.bf16 %v1154_v0, %v1153_v63  ;;  %v1009_v7 = vsel %vm986_vm4, %v1006_v15, %v1008_v35  ;;  %v7305_v60 = vld [vmem:[%s7445_s24 + $0x68] sm:$0xff] }
  0xa0   : > { %v6316_v1 = vunpack.i.h.bf16 %v6314_v61  ;;  %v6315_v2 = vunpack.i.l.bf16 %v6314_v61  ;;  %v6319_v4 = vpop.permute.xlu1 %6318  ;;  %v1192_v56 = vpack.c.bf16 %v1011_v47, %v1009_v7  ;;  %v1012_v61 = vrot.slane %v7305_v60, 4  ;;  %v7310_v7 = vld [vmem:[%s7445_s24 + $0x90] sm:$0xff] }
  0xa1   : > { %v6321_v16 = vunpack.i.h.bf16 %v6319_v4  ;;  %v6320_v17 = vunpack.i.l.bf16 %v6319_v4  ;;  %v1022_v47 = vrot.slane %v7310_v7, 4 }
  0xa2   : > { %v1122_v3 = vsel %vm1115_vm5, %v1089_v9, %v6315_v2  ;;  %v1123_v19 = vsel %vm1115_vm5, %v1090_v5, %v6316_v1 }
  0xa3   : > { %v6324_v13 = vpop.permute.xlu0 %6323  ;;  %v1155_v24 = vsel %vm1148_vm6, %v1122_v3, %v6320_v17  ;;  %v1156_v25 = vsel %vm1148_vm6, %v1123_v19, %v6321_v16 }
  0xa4   : > { %v6329_v18 = vpop.permute.xlu1 %6328  ;;  %v6326_v20 = vunpack.i.h.bf16 %v6324_v13  ;;  %v6325_v21 = vunpack.i.l.bf16 %v6324_v13  ;;  %v1187_v32 = vpack.c.bf16 %v1156_v25, %v1155_v24 }
  0xa5   : > { %v6331_v26 = vunpack.i.h.bf16 %v6329_v18  ;;  %v6330_v27 = vunpack.i.l.bf16 %v6329_v18 }
  0xa6   : > { %1446 = vmatmul.mubr.bf16.gmra.mrb[8].mxu0 %v1185_v12  ;;  %v1092_v29 = vsel %vm1082_vm3, %v7301_v8, %v6326_v20  ;;  %v1091_v30 = vsel %vm1082_vm3, %v7300_v51, %v6325_v21  ;;  %v1015_v12 = vsel %vm986_vm4, %v1012_v61, %v1014_v62  ;;  %v7307_v20 = vld [vmem:[%s7445_s24 + $0x78] sm:$0xff] }
  0xa7   : > { %5805 = vmatprep.mubr.msk.bf16.mxu0 %vm1082_vm3, %v1188_v11  ;;  %v6334_v28 = vpop.permute.xlu0 %6333  ;;  %v1124_v42 = vsel %vm1115_vm5, %v1091_v30, %v6330_v27  ;;  %v1125_v43 = vsel %vm1115_vm5, %v1092_v29, %v6331_v26  ;;  %v1013_v11 = vsel %vm986_vm4, %v1010_v37, %v1012_v61  ;;  %v1016_v21 = vrot.slane %v7307_v20, 4 }
  0xa8   : > { %v6339_v33 = vpop.permute.xlu1 %6338  ;;  %v6336_v6 = vunpack.i.h.bf16 %v6334_v28  ;;  %v6335_v40 = vunpack.i.l.bf16 %v6334_v28  ;;  %v1194_v18 = vpack.c.bf16 %v1015_v12, %v1013_v11  ;;  %v7312_v11 = vld [vmem:[%s7445_s24 + $0xa0] sm:$0xff] }
  0xa9   : > { %v6341_v45 = vunpack.i.h.bf16 %v6339_v33  ;;  %v6340_v46 = vunpack.i.l.bf16 %v6339_v33  ;;  %v1026_v12 = vrot.slane %v7312_v11, 4 }
  0xaa   : > { %v1157_v48 = vsel %vm1148_vm6, %v1124_v42, %v6335_v40  ;;  %v1158_v49 = vsel %vm1148_vm6, %v1125_v43, %v6336_v6 }
  0xab   : > { %v6344_v41 = vpop.permute.xlu0 %6343  ;;  %v1094_v54 = vsel %vm1082_vm3, %v7303_v34, %v6341_v45  ;;  %v1093_v55 = vsel %vm1082_vm3, %v7302_v14, %v6340_v46  ;;  %v1189_v58 = vpack.c.bf16 %v1158_v49, %v1157_v48  ;;  %v7309_v45 = vld [vmem:[%s7445_s24 + $0x88] sm:$0xff] }
  0xac   : > { %v6346_v50 = vunpack.i.h.bf16 %v6344_v41  ;;  %v6345_v51 = vunpack.i.l.bf16 %v6344_v41  ;;  %v6349_v52 = vpop.permute.xlu1 %6348  ;;  %v1020_v46 = vrot.slane %v7309_v45, 4 }
  0xad   : > { %v6351_v63 = vunpack.i.h.bf16 %v6349_v52  ;;  %v6350_v0 = vunpack.i.l.bf16 %v6349_v52 }
  0xae   : > { %1456 = vmatmul.mubr.bf16.gmra.mrb[12].mxu0 %v1187_v32  ;;  %v1126_v2 = vsel %vm1115_vm5, %v1093_v55, %v6345_v51  ;;  %v1127_v4 = vsel %vm1115_vm5, %v1094_v54, %v6346_v50  ;;  %v1019_v32 = vsel %vm986_vm4, %v1016_v21, %v1018_v23 }
  0xaf   : > { %5806 = vmatprep.mubr.msk.bf16.mxu0 %vm1082_vm3, %v1190_v31  ;;  %v6354_v59 = vpop.permute.xlu0 %6353  ;;  %v1159_v13 = vsel %vm1148_vm6, %v1126_v2, %v6350_v0  ;;  %v1160_v8 = vsel %vm1148_vm6, %v1127_v4, %v6351_v63  ;;  %v1017_v31 = vsel %vm986_vm4, %v1014_v62, %v1016_v21 }
  0xb0   : > { %v6359_v1 = vpop.permute.xlu1 %6358  ;;  %v6356_v5 = vunpack.i.h.bf16 %v6354_v59  ;;  %v6355_v9 = vunpack.i.l.bf16 %v6354_v59  ;;  %v1191_v3 = vpack.c.bf16 %v1160_v8, %v1159_v13  ;;  %v1196_v41 = vpack.c.bf16 %v1019_v32, %v1017_v31  ;;  %v7314_v31 = vld [vmem:[%s7445_s24 + $0xb0] sm:$0xff] }
  0xb1   : > { %v6361_v39 = vunpack.i.h.bf16 %v6359_v1  ;;  %v6360_v14 = vunpack.i.l.bf16 %v6359_v1  ;;  %v1030_v32 = vrot.slane %v7314_v31, 4 }
  0xb2   : > { %v1096_v16 = vsel %vm1082_vm3, %v7305_v60, %v6356_v5  ;;  %v1095_v17 = vsel %vm1082_vm3, %v7304_v36, %v6355_v9  ;;  %v7311_v5 = vld [vmem:[%s7445_s24 + $0x98] sm:$0xff] }
  0xb3   : > { %v6364_v15 = vpop.permute.xlu0 %6363  ;;  %v1128_v27 = vsel %vm1115_vm5, %v1095_v17, %v6360_v14  ;;  %v1129_v28 = vsel %vm1115_vm5, %v1096_v16, %v6361_v39  ;;  %v1024_v9 = vrot.slane %v7311_v5, 4 }
  0xb4   : > { %v6369_v19 = vpop.permute.xlu1 %6368  ;;  %v6366_v24 = vunpack.i.h.bf16 %v6364_v15  ;;  %v6365_v25 = vunpack.i.l.bf16 %v6364_v15 }
  0xb5   : > { %v6371_v29 = vunpack.i.h.bf16 %v6369_v19  ;;  %v6370_v30 = vunpack.i.l.bf16 %v6369_v19 }
  0xb6   : > { %1466 = vmatmul.mubr.bf16.gmra.mrb[16].mxu0 %v1189_v58  ;;  %v1161_v33 = vsel %vm1148_vm6, %v1128_v27, %v6365_v25  ;;  %v1162_v34 = vsel %vm1148_vm6, %v1129_v28, %v6366_v24  ;;  %v1023_v58 = vsel %vm986_vm4, %v1020_v46, %v1022_v47 }
  0xb7   : > { %5807 = vmatprep.mubr.msk.bf16.mxu0 %vm1082_vm3, %v1192_v56  ;;  %v6374_v26 = vpop.permute.xlu0 %6373  ;;  %v1098_v6 = vsel %vm1082_vm3, %v7307_v20, %v6371_v29  ;;  %v1097_v40 = vsel %vm1082_vm3, %v7306_v53, %v6370_v30  ;;  %v1193_v42 = vpack.c.bf16 %v1162_v34, %v1161_v33  ;;  %v1021_v56 = vsel %vm986_vm4, %v1018_v23, %v1020_v46  ;;  %v7313_v29 = vld [vmem:[%s7445_s24 + $0xa8] sm:$0xff] }
  0xb8   : > { %v6376_v35 = vunpack.i.h.bf16 %v6374_v26  ;;  %v6375_v36 = vunpack.i.l.bf16 %v6374_v26  ;;  %v6379_v37 = vpop.permute.xlu1 %6378  ;;  %v1198_v1 = vpack.c.bf16 %v1023_v58, %v1021_v56  ;;  %v1028_v30 = vrot.slane %v7313_v29, 4  ;;  %v7316_v56 = vld [vmem:[%s7445_s24 + $0xc0] sm:$0xff] }
  0xb9   : > { %v6381_v48 = vunpack.i.h.bf16 %v6379_v37  ;;  %v6380_v49 = vunpack.i.l.bf16 %v6379_v37  ;;  %v1034_v58 = vrot.slane %v7316_v56, 4 }
  0xba   : > { %v1130_v51 = vsel %vm1115_vm5, %v1097_v40, %v6375_v36  ;;  %v1131_v52 = vsel %vm1115_vm5, %v1098_v6, %v6376_v35 }
  0xbb   : > { %v6384_v43 = vpop.permute.xlu0 %6383  ;;  %v1163_v59 = vsel %vm1148_vm6, %v1130_v51, %v6380_v49  ;;  %v1164_v60 = vsel %vm1148_vm6, %v1131_v52, %v6381_v48 }
  0xbc   : > { %v6389_v50 = vpop.permute.xlu1 %6388  ;;  %v6386_v54 = vunpack.i.h.bf16 %v6384_v43  ;;  %v6385_v55 = vunpack.i.l.bf16 %v6384_v43  ;;  %v1195_v2 = vpack.c.bf16 %v1164_v60, %v1163_v59 }
  0xbd   : > { %v6391_v61 = vunpack.i.h.bf16 %v6389_v50  ;;  %v6390_v53 = vunpack.i.l.bf16 %v6389_v50 }
  0xbe   : > { %1476 = vmatmul.mubr.bf16.gmra.mrb[20].mxu0 %v1191_v3  ;;  %v1100_v63 = vsel %vm1082_vm3, %v7309_v45, %v6386_v54  ;;  %v1099_v0 = vsel %vm1082_vm3, %v7308_v22, %v6385_v55  ;;  %v1027_v3 = vsel %vm986_vm4, %v1024_v9, %v1026_v12  ;;  %v7315_v54 = vld [vmem:[%s7445_s24 + $0xb8] sm:$0xff] }
  0xbf   : > { %5808 = vmatprep.mubr.msk.bf16.mxu0 %vm1082_vm3, %v1194_v18  ;;  %v6394_v62 = vpop.permute.xlu0 %6393  ;;  %v1132_v14 = vsel %vm1115_vm5, %v1099_v0, %v6390_v53  ;;  %v1133_v15 = vsel %vm1115_vm5, %v1100_v63, %v6391_v61  ;;  %v1025_v18 = vsel %vm986_vm4, %v1022_v47, %v1024_v9  ;;  %v1032_v55 = vrot.slane %v7315_v54, 4 }
  0xc0   : > { %v6399_v4 = vpop.permute.xlu1 %6398  ;;  %v6396_v13 = vunpack.i.h.bf16 %v6394_v62  ;;  %v6395_v8 = vunpack.i.l.bf16 %v6394_v62  ;;  %v1200_v26 = vpack.c.bf16 %v1027_v3, %v1025_v18  ;;  %v7318_v18 = vld [vmem:[%s7445_s24 + $0xd0] sm:$0xff] }
  0xc1   : > { %v6401_v16 = vunpack.i.h.bf16 %v6399_v4  ;;  %v6400_v17 = vunpack.i.l.bf16 %v6399_v4  ;;  %v1038_v3 = vrot.slane %v7318_v18, 4 }
  0xc2   : > { %v1165_v19 = vsel %vm1148_vm6, %v1132_v14, %v6395_v8  ;;  %v1166_v20 = vsel %vm1148_vm6, %v1133_v15, %v6396_v13 }
  0xc3   : > { %v6404_v39 = vpop.permute.xlu0 %6403  ;;  %v1102_v24 = vsel %vm1082_vm3, %v7311_v5, %v6401_v16  ;;  %v1101_v25 = vsel %vm1082_vm3, %v7310_v7, %v6400_v17  ;;  %v1197_v27 = vpack.c.bf16 %v1166_v20, %v1165_v19  ;;  %v7317_v16 = vld [vmem:[%s7445_s24 + $0xc8] sm:$0xff] }
  0xc4   : > { %v6406_v21 = vunpack.i.h.bf16 %v6404_v39  ;;  %v6405_v22 = vunpack.i.l.bf16 %v6404_v39  ;;  %v6409_v23 = vpop.permute.xlu1 %6408  ;;  %v1036_v17 = vrot.slane %v7317_v16, 4 }
  0xc5   : > { %v6411_v33 = vunpack.i.h.bf16 %v6409_v23  ;;  %v6410_v34 = vunpack.i.l.bf16 %v6409_v23 }
  0xc6   : > { %1486 = vmatmul.mubr.bf16.gmra.mrb[24].mxu0 %v1193_v42  ;;  %v1134_v36 = vsel %vm1115_vm5, %v1101_v25, %v6405_v22  ;;  %v1135_v37 = vsel %vm1115_vm5, %v1102_v24, %v6406_v21  ;;  %v1031_v42 = vsel %vm986_vm4, %v1028_v30, %v1030_v32 }
  0xc7   : > { %5809 = vmatprep.mubr.msk.bf16.mxu0 %vm1082_vm3, %v1196_v41  ;;  %v6414_v28 = vpop.permute.xlu0 %6413  ;;  %v1029_v41 = vsel %vm986_vm4, %v1026_v12, %v1028_v30  ;;  %v1167_v43 = vsel %vm1148_vm6, %v1134_v36, %v6410_v34  ;;  %v1168_v45 = vsel %vm1148_vm6, %v1135_v37, %v6411_v33 }
  0xc8   : > { %v6419_v35 = vpop.permute.xlu1 %6418  ;;  %v6416_v6 = vunpack.i.h.bf16 %v6414_v28  ;;  %v6415_v40 = vunpack.i.l.bf16 %v6414_v28  ;;  %v1202_v50 = vpack.c.bf16 %v1031_v42, %v1029_v41  ;;  %v1199_v51 = vpack.c.bf16 %v1168_v45, %v1167_v43 }
  0xc9   : > { %v6421_v46 = vunpack.i.h.bf16 %v6419_v35  ;;  %v6420_v7 = vunpack.i.l.bf16 %v6419_v35 }
  0xca   : > { %v1104_v48 = vsel %vm1082_vm3, %v7313_v29, %v6416_v6  ;;  %v1103_v49 = vsel %vm1082_vm3, %v7312_v11, %v6415_v40  ;;  %v1040_v6 = vrot.slane %v7682_v38, 4  ;;  %v1042_v40 = vrot.slane %v7691_v44, 4 }
  0xcb   : > { %v6424_v47 = vpop.permute.xlu0 %6423  ;;  %v1136_v53 = vsel %vm1115_vm5, %v1103_v49, %v6420_v7  ;;  %v1137_v62 = vsel %vm1115_vm5, %v1104_v48, %v6421_v46 }
  0xcc   : > { %v6429_v52 = vpop.permute.xlu1 %6428  ;;  %v6426_v59 = vunpack.i.h.bf16 %v6424_v47  ;;  %v6425_v60 = vunpack.i.l.bf16 %v6424_v47  ;;  %v1041_v48 = vsel %vm986_vm4, %v1038_v3, %v1040_v6  ;;  %v1043_v38 = vsel %vm986_vm4, %v1040_v6, %v1042_v40 }
  0xcd   : > { %v6431_v63 = vunpack.i.h.bf16 %v6429_v52  ;;  %v6430_v0 = vunpack.i.l.bf16 %v6429_v52 }
  0xce   : > { %1496 = vmatmul.mubr.bf16.gmra.mrb[28].mxu0 %v1195_v2  ;;  %v1035_v2 = vsel %vm986_vm4, %v1032_v55, %v1034_v58  ;;  %v1169_v4 = vsel %vm1148_vm6, %v1136_v53, %v6425_v60  ;;  %v1170_v5 = vsel %vm1148_vm6, %v1137_v62, %v6426_v59  ;;  %v1046_v62 = vrot.slane %v7709_v57, 4 }
  0xcf   : > { %5810 = vmatprep.mubr.msk.bf16.mxu0 %vm1082_vm3, %v1198_v1  ;;  %v6434_v61 = vpop.permute.xlu0 %6433  ;;  %v1033_v1 = vsel %vm986_vm4, %v1030_v32, %v1032_v55  ;;  %v1106_v13 = vsel %vm1082_vm3, %v7315_v54, %v6431_v63  ;;  %v1105_v8 = vsel %vm1082_vm3, %v7314_v31, %v6430_v0  ;;  %v1201_v14 = vpack.c.bf16 %v1170_v5, %v1169_v4  ;;  %v7319_v54 = vld [vmem:[%s7445_s24 + $0xd8] sm:$0xff] }
  0xd0   : > { %v6436_v9 = vunpack.i.h.bf16 %v6434_v61  ;;  %v6435_v11 = vunpack.i.l.bf16 %v6434_v61  ;;  %v6439_v12 = vpop.permute.xlu1 %6438  ;;  %v1204_v39 = vpack.c.bf16 %v1035_v2, %v1033_v1  ;;  %v7320_v61 = vld [vmem:[%s7445_s24 + $0xe8] sm:$0xff] }
  0xd1   : > { %v6441_v19 = vunpack.i.h.bf16 %v6439_v12  ;;  %v6440_v20 = vunpack.i.l.bf16 %v6439_v12  ;;  %v1044_v53 = vrot.slane %v7320_v61, 4 }
  0xd2   : > { %v1138_v22 = vsel %vm1115_vm5, %v1105_v8, %v6435_v11  ;;  %v1139_v23 = vsel %vm1115_vm5, %v1106_v13, %v6436_v9 }
  0xd3   : > { %v6444_v15 = vpop.permute.xlu0 %6443  ;;  %v1171_v28 = vsel %vm1148_vm6, %v1138_v22, %v6440_v20  ;;  %v1172_v29 = vsel %vm1148_vm6, %v1139_v23, %v6441_v19  ;;  %v1045_v11 = vsel %vm986_vm4, %v1042_v40, %v1044_v53  ;;  %v1047_v12 = vsel %vm986_vm4, %v1044_v53, %v1046_v62 }
  0xd4   : > { %v6449_v21 = vpop.permute.xlu1 %6448  ;;  %v6446_v24 = vunpack.i.h.bf16 %v6444_v15  ;;  %v6445_v25 = vunpack.i.l.bf16 %v6444_v15  ;;  %v1203_v36 = vpack.c.bf16 %v1172_v29, %v1171_v28  ;;  %v1048_v20 = vrot.slane %v7726_v10, 4 }
  0xd5   : > { %v6451_v30 = vunpack.i.h.bf16 %v6449_v21  ;;  %v6450_v31 = vunpack.i.l.bf16 %v6449_v21 }
  0xd6   : > { %1506 = vmatmul.mubr.bf16.gmra.mrb[32].mxu0 %v1197_v27  ;;  %v1039_v27 = vsel %vm986_vm4, %v1036_v17, %v1038_v3  ;;  %v1108_v33 = vsel %vm1082_vm3, %v7317_v16, %v6446_v24  ;;  %v1107_v34 = vsel %vm1082_vm3, %v7316_v56, %v6445_v25  ;;  %v7321_v16 = vld [vmem:[%s7445_s24 + $0xe0] sm:$0xff]  ;;  %v1049_v28 = vsel %vm986_vm4, %v1046_v62, %v1048_v20 }
  0xd7   : > { %5811 = vmatprep.mubr.msk.bf16.mxu0 %vm1082_vm3, %v1200_v26  ;;  %v1037_v26 = vsel %vm986_vm4, %v1034_v58, %v1036_v17  ;;  %v6454_v32 = vpop.permute.xlu0 %6453  ;;  %v1140_v45 = vsel %vm1115_vm5, %v1107_v34, %v6450_v31  ;;  %v1141_v46 = vsel %vm1115_vm5, %v1108_v33, %v6451_v30  ;;  %v1208_v58 = vpack.c.bf16 %v1043_v38, %v1041_v48  ;;  %v1233_v38 = vld [vmem:[%s11132_s2] sm:$0x3] }
  0xd8   : > { %v1206_v35 = vpack.c.bf16 %v1039_v27, %v1037_v26  ;;  %v6459_v37 = vpop.permute.xlu1 %6458  ;;  %v6456_v41 = vunpack.i.h.bf16 %v6454_v32  ;;  %v6455_v42 = vunpack.i.l.bf16 %v6454_v32 }
  0xd9   : > { %v6461_v7 = vunpack.i.h.bf16 %v6459_v37  ;;  %v6460_v47 = vunpack.i.l.bf16 %v6459_v37  ;;  %v1212_v37 = vpack.c.bf16 %v1048_v20, %v1049_v28 }
  0xda   : > { %v1173_v44 = vsel %vm1148_vm6, %v1140_v45, %v6455_v42  ;;  %v1174_v49 = vsel %vm1148_vm6, %v1141_v46, %v6456_v41 }
  0xdb   : > { %v6464_v43 = vpop.permute.xlu0 %6463  ;;  %v1110_v55 = vsel %vm1082_vm3, %v7319_v54, %v6461_v7  ;;  %v1109_v56 = vsel %vm1082_vm3, %v7318_v18, %v6460_v47  ;;  %v1205_v59 = vpack.c.bf16 %v1174_v49, %v1173_v44  ;;  %v1210_v18 = vpack.c.bf16 %v1047_v12, %v1045_v11 }
  0xdc   : > { %v6469_v52 = vpop.permute.xlu1 %6468 }
  0xdd   : > { %v6471_v63 = vunpack.i.h.bf16 %v6469_v52  ;;  %v6470_v0 = vunpack.i.l.bf16 %v6469_v52 }
  0xde   : > { %1516 = vmatmul.mubr.bf16.gmra.mrb[36].mxu0 %v1199_v51  ;;  %v6465_v51 = vunpack.i.l.bf16 %v6464_v43 }
  0xdf   : > { %5812 = vmatprep.mubr.msk.bf16.mxu0 %vm1082_vm3, %v1202_v50  ;;  %v6466_v50 = vunpack.i.h.bf16 %v6464_v43  ;;  %v6474_v60 = vpop.permute.xlu0 %6473 }
  0xe0   : > { %v6479_v1 = vpop.permute.xlu1 %6478  ;;  %v1142_v2 = vsel %vm1115_vm5, %v1109_v56, %v6465_v51  ;;  %v6476_v5 = vunpack.i.h.bf16 %v6474_v60  ;;  %v6475_v9 = vunpack.i.l.bf16 %v6474_v60 }
  0xe1   : > { %v1143_v4 = vsel %vm1115_vm5, %v1110_v55, %v6466_v50  ;;  %v1175_v13 = vsel %vm1148_vm6, %v1142_v2, %v6470_v0  ;;  %v6481_v8 = vunpack.i.h.bf16 %v6479_v1 }
  0xe2   : > { %v1176_v57 = vsel %vm1148_vm6, %v1143_v4, %v6471_v63  ;;  %v1112_v15 = vsel %vm1082_vm3, %v7320_v61, %v6476_v5  ;;  %v1111_v17 = vsel %vm1082_vm3, %v7321_v16, %v6475_v9 }
  0xe3   : > { %v1207_v3 = vpack.c.bf16 %v1176_v57, %v1175_v13  ;;  %v1145_v24 = vsel %vm1115_vm5, %v1112_v15, %v6481_v8 }
  0xe4   : > { %v6489_v19 = vpop.permute.xlu1 %6488 }
  0xe5   : > { %v6491_v25 = vunpack.i.h.bf16 %v6489_v19  ;;  %v6490_v26 = vunpack.i.l.bf16 %v6489_v19 }
  0xe6   : > { %1526 = vmatmul.mubr.bf16.gmra.mrb[40].mxu0 %v1201_v14  ;;  %v6484_v14 = vpop.permute.xlu0 %6483 }
  0xe7   : > { %5813 = vmatprep.mubr.msk.bf16.mxu0 %vm1082_vm3, %v1204_v39  ;;  %v6480_v39 = vunpack.i.l.bf16 %v6479_v1  ;;  %v6486_v21 = vunpack.i.h.bf16 %v6484_v14  ;;  %v6485_v22 = vunpack.i.l.bf16 %v6484_v14  ;;  %v1114_v34 = vsel %vm1082_vm3, %v7726_v10, %v6491_v25 }
  0xe8   : > { %v6499_v33 = vpop.permute.xlu1 %6498  ;;  %v1235_v10 = vlaneseq }
  0xe9   : > { %v1144_v23 = vsel %vm1115_vm5, %v1111_v17, %v6480_v39  ;;  %v1178_v30 = vsel %vm1148_vm6, %v1145_v24, %v6486_v21  ;;  %v6501_v40 = vunpack.i.h.bf16 %v6499_v33  ;;  %v6500_v41 = vunpack.i.l.bf16 %v6499_v33 }
  0xea   : > { %v6494_v27 = vpop.permute.xlu0 %6493  ;;  %v1177_v29 = vsel %vm1148_vm6, %v1144_v23, %v6485_v22  ;;  %v7950_v47 = vshrl.u32 %v1235_v10, 7 }
  0xeb   : > { %v6496_v31 = vunpack.i.h.bf16 %v6494_v27  ;;  %v6495_v32 = vunpack.i.l.bf16 %v6494_v27  ;;  %v1209_v6 = vpack.c.bf16 %v1178_v30, %v1177_v29 }
  0xec   : > { %11309 = vst [vmem:[#allocation2_spill] sm:$0xff] %v7950_v47  ;;  %v11145_v48 = vsub.s32 0, %v7950_v47  ;;  %v11144_v44 = vsub.s32 1, %v7950_v47 }
  0xed   : > { %v1147_v43 = vsel %vm1115_vm5, %v1114_v34, %v6496_v31 }
  0xee   : > { %1536 = vmatmul.mubr.bf16.gmra.mrb[44].mxu0 %v1203_v36  ;;  %v1180_v46 = vsel %vm1148_vm6, %v1147_v43, %v6501_v40  ;;  %v7959_v49 = vrot.slane %v1233_v38, %v11145_v48  ;;  %v7963_v50 = vrot.slane %v1233_v38, %v11144_v44 }
  0xef   : > { %5814 = vmatprep.mubr.msk.bf16.mxu0 %vm1082_vm3, %v1206_v35  ;;  %v7322_v35 = vld [vmem:[%s7445_s24 + $0xf0] sm:$0xff] }
  0xf0   : > { %v1113_v36 = vsel %vm1082_vm3, %v7322_v35, %v6490_v26 }
  0xf1   : > { %v1146_v42 = vsel %vm1115_vm5, %v1113_v36, %v6495_v32 }
  0xf2   : > { %v1179_v45 = vsel %vm1148_vm6, %v1146_v42, %v6500_v41 }
  0xf3   : > { %v1211_v7 = vpack.c.bf16 %v1180_v46, %v1179_v45 }
  0xf6   : > { %1546 = vmatmul.mubr.bf16.gmra.mrb[48].mxu0 %v1205_v59 }
  0xf7   : > { %5815 = vmatprep.mubr.msk.bf16.mxu0 %vm1082_vm3, %v1208_v58 }
  0xfe   : > { %1556 = vmatmul.mubr.bf16.gmra.mrb[52].mxu0 %v1207_v3 }
  0xff   : > { %5816 = vmatprep.mubr.msk.bf16.mxu0 %vm1082_vm3, %v1210_v18 }
 0x106   : > { %1566 = vmatmul.mubr.bf16.gmra.mrb[56].mxu0 %v1209_v6 }
 0x107   : > { %5817 = vmatprep.mubr.msk.bf16.mxu0 %vm1082_vm3, %v1212_v37 }
 0x10e   : > { %1576 = vmatmul.mubr.bf16.gmra.mrb[60].mxu0 %v1211_v7 }
 0x169   : > { %v1427_v51 = vpop.f32.mrb[0].mxu0 }
 0x16a   : > { %v7966_v52 = vadd.f32 %v1427_v51, %v7959_v49  ;;  %v1429_v54 = vpop.f32.mrb[1].mxu0 }
 0x16b   : > { %v7969_v55 = vadd.f32 %v1429_v54, %v7963_v50  ;;  %v1431_v56 = vpop.f32.mrb[2].mxu0 }
 0x16c   : > { %v11186_v58 = vmax.f32 %v7966_v52, 0.0  ;;  %v7973_v59 = vadd.f32 %v1431_v56, %v7959_v49  ;;  %v1433_v60 = vpop.f32.mrb[3].mxu0 }
 0x16d   : > { %v11190_v61 = vmax.f32 %v7969_v55, 0.0  ;;  %v7977_v53 = vadd.f32 %v1433_v60, %v7963_v50 }
 0x16e   : > { %v11187_v62 = vmax.f32 %v7973_v59, 0.0 }
 0x16f   : > { %v6502_v63 = vpack.i.bf16 %v11190_v61, %v11186_v58  ;;  %v11193_v0 = vmax.f32 %v7977_v53, 0.0 }
 0x171   : > { %v6507_v1 = vpack.i.bf16 %v11193_v0, %v11187_v62  ;;  %v1437_v2 = vpop.f32.mrb[4].mxu0  ;;  %6503 = vrot.lane.b32.xlu0 %v6502_v63, %s7334_s20 }
 0x172   : > { %v7991_v4 = vadd.f32 %v1437_v2, %v7959_v49  ;;  %v1439_v5 = vpop.f32.mrb[5].mxu0 }
 0x173   : > { %v7994_v9 = vadd.f32 %v1439_v5, %v7963_v50  ;;  %v1441_v11 = vpop.f32.mrb[6].mxu0  ;;  %6508 = vrot.lane.b32.xlu1 %v6507_v1, %s7334_s20 }
 0x174   : > { %v11182_v12 = vmax.f32 %v7991_v4, 0.0  ;;  %v7999_v13 = vadd.f32 %v1441_v11, %v7959_v49  ;;  %v1443_v57 = vpop.f32.mrb[7].mxu0 }
 0x175   : > { %v11185_v8 = vmax.f32 %v7994_v9, 0.0  ;;  %v8003_v39 = vadd.f32 %v1443_v57, %v7963_v50 }
 0x176   : > { %v11178_v14 = vmax.f32 %v7999_v13, 0.0 }
 0x177   : > { %v6512_v15 = vpack.i.bf16 %v11185_v8, %v11182_v12  ;;  %v11179_v16 = vmax.f32 %v8003_v39, 0.0 }
 0x179   : > { %v6517_v17 = vpack.i.bf16 %v11179_v16, %v11178_v14  ;;  %v1447_v18 = vpop.f32.mrb[8].mxu0  ;;  %6513 = vrot.lane.b32.xlu0 %v6512_v15, %s7334_s20 }
 0x17a   : > { %v8017_v3 = vadd.f32 %v1447_v18, %v7959_v49  ;;  %v1449_v19 = vpop.f32.mrb[9].mxu0 }
 0x17b   : > { %v8020_v20 = vadd.f32 %v1449_v19, %v7963_v50  ;;  %v1451_v21 = vpop.f32.mrb[10].mxu0  ;;  %6518 = vrot.lane.b32.xlu1 %v6517_v17, %s7334_s20 }
 0x17c   : > { %v11174_v22 = vmax.f32 %v8017_v3, 0.0  ;;  %v8025_v23 = vadd.f32 %v1451_v21, %v7959_v49  ;;  %v1453_v24 = vpop.f32.mrb[11].mxu0 }
 0x17d   : > { %v11177_v25 = vmax.f32 %v8020_v20, 0.0  ;;  %v8029_v26 = vadd.f32 %v1453_v24, %v7963_v50 }
 0x17e   : > { %v11170_v27 = vmax.f32 %v8025_v23, 0.0 }
 0x17f   : > { %v6522_v28 = vpack.i.bf16 %v11177_v25, %v11174_v22  ;;  %v11171_v29 = vmax.f32 %v8029_v26, 0.0 }
 0x181   : > { %v6527_v30 = vpack.i.bf16 %v11171_v29, %v11170_v27  ;;  %v1457_v31 = vpop.f32.mrb[12].mxu0  ;;  %6523 = vrot.lane.b32.xlu0 %v6522_v28, %s7334_s20 }
 0x182   : > { %v8043_v32 = vadd.f32 %v1457_v31, %v7959_v49  ;;  %v1459_v33 = vpop.f32.mrb[13].mxu0 }
 0x183   : > { %v8046_v34 = vadd.f32 %v1459_v33, %v7963_v50  ;;  %v1461_v35 = vpop.f32.mrb[14].mxu0  ;;  %6528 = vrot.lane.b32.xlu1 %v6527_v30, %s7334_s20 }
 0x184   : > { %v11166_v36 = vmax.f32 %v8043_v32, 0.0  ;;  %v8051_v37 = vadd.f32 %v1461_v35, %v7959_v49  ;;  %v1463_v6 = vpop.f32.mrb[15].mxu0 }
 0x185   : > { %v11169_v40 = vmax.f32 %v8046_v34, 0.0  ;;  %v8055_v41 = vadd.f32 %v1463_v6, %v7963_v50 }
 0x186   : > { %v11162_v42 = vmax.f32 %v8051_v37, 0.0 }
 0x187   : > { %v6532_v43 = vpack.i.bf16 %v11169_v40, %v11166_v36  ;;  %v11163_v45 = vmax.f32 %v8055_v41, 0.0 }
 0x189   : > { %v6537_v46 = vpack.i.bf16 %v11163_v45, %v11162_v42  ;;  %v1467_v7 = vpop.f32.mrb[16].mxu0  ;;  %6533 = vrot.lane.b32.xlu0 %v6532_v43, %s7334_s20 }
 0x18a   : > { %v8069_v10 = vadd.f32 %v1467_v7, %v7959_v49  ;;  %v1469_v38 = vpop.f32.mrb[17].mxu0 }
 0x18b   : > { %v8072_v51 = vadd.f32 %v1469_v38, %v7963_v50  ;;  %v1471_v54 = vpop.f32.mrb[18].mxu0  ;;  %6538 = vrot.lane.b32.xlu1 %v6537_v46, %s7334_s20 }
 0x18c   : > { %v11158_v56 = vmax.f32 %v8069_v10, 0.0  ;;  %v8077_v60 = vadd.f32 %v1471_v54, %v7959_v49  ;;  %v1473_v63 = vpop.f32.mrb[19].mxu0 }
 0x18d   : > { %v11161_v1 = vmax.f32 %v8072_v51, 0.0  ;;  %v8081_v2 = vadd.f32 %v1473_v63, %v7963_v50 }
 0x18e   : > { %v11154_v5 = vmax.f32 %v8077_v60, 0.0 }
 0x18f   : > { %v6542_v11 = vpack.i.bf16 %v11161_v1, %v11158_v56  ;;  %v11155_v57 = vmax.f32 %v8081_v2, 0.0 }
 0x191   : > { %v6547_v15 = vpack.i.bf16 %v11155_v57, %v11154_v5  ;;  %v1477_v17 = vpop.f32.mrb[20].mxu0  ;;  %6543 = vrot.lane.b32.xlu0 %v6542_v11, %s7334_s20 }
 0x192   : > { %v8095_v18 = vadd.f32 %v1477_v17, %v7959_v49  ;;  %v1479_v19 = vpop.f32.mrb[21].mxu0 }
 0x193   : > { %v8098_v21 = vadd.f32 %v1479_v19, %v7963_v50  ;;  %v1481_v24 = vpop.f32.mrb[22].mxu0  ;;  %6548 = vrot.lane.b32.xlu1 %v6547_v15, %s7334_s20 }
 0x194   : > { %v11150_v28 = vmax.f32 %v8095_v18, 0.0  ;;  %v8103_v30 = vadd.f32 %v1481_v24, %v7959_v49  ;;  %v1483_v31 = vpop.f32.mrb[23].mxu0 }
 0x195   : > { %v11153_v33 = vmax.f32 %v8098_v21, 0.0  ;;  %v8107_v35 = vadd.f32 %v1483_v31, %v7963_v50 }
 0x196   : > { %v11146_v6 = vmax.f32 %v8103_v30, 0.0 }
 0x197   : > { %v6552_v43 = vpack.i.bf16 %v11153_v33, %v11150_v28  ;;  %v11147_v46 = vmax.f32 %v8107_v35, 0.0 }
 0x199   : > { %v6557_v7 = vpack.i.bf16 %v11147_v46, %v11146_v6  ;;  %v1487_v38 = vpop.f32.mrb[24].mxu0  ;;  %6553 = vrot.lane.b32.xlu0 %v6552_v43, %s7334_s20 }
 0x19a   : > { %v8121_v54 = vadd.f32 %v1487_v38, %v7959_v49  ;;  %v1489_v63 = vpop.f32.mrb[25].mxu0 }
 0x19b   : > { %v8124_v11 = vadd.f32 %v1489_v63, %v7963_v50  ;;  %v1491_v15 = vpop.f32.mrb[26].mxu0  ;;  %6558 = vrot.lane.b32.xlu1 %v6557_v7, %s7334_s20 }
 0x19c   : > { %v11148_v17 = vmax.f32 %v8121_v54, 0.0  ;;  %v8129_v19 = vadd.f32 %v1491_v15, %v7959_v49  ;;  %v1493_v24 = vpop.f32.mrb[27].mxu0 }
 0x19d   : > { %v11149_v31 = vmax.f32 %v8124_v11, 0.0  ;;  %v8133_v43 = vadd.f32 %v1493_v24, %v7963_v50 }
 0x19e   : > { %v11151_v38 = vmax.f32 %v8129_v19, 0.0 }
 0x19f   : > { %v6562_v63 = vpack.i.bf16 %v11149_v31, %v11148_v17  ;;  %v11152_v7 = vmax.f32 %v8133_v43, 0.0 }
 0x1a1   : > { %v6567_v15 = vpack.i.bf16 %v11152_v7, %v11151_v38  ;;  %v1497_v44 = vpop.f32.mrb[28].mxu0  ;;  %6563 = vrot.lane.b32.xlu0 %v6562_v63, %s7334_s20 }
 0x1a2   : > { %v8147_v24 = vadd.f32 %v1497_v44, %v7959_v49  ;;  %v1499_v48 = vpop.f32.mrb[29].mxu0 }
 0x1a3   : > { %v8150_v6 = vadd.f32 %v1499_v48, %v7963_v50  ;;  %v1501_v46 = vpop.f32.mrb[30].mxu0  ;;  %6568 = vrot.lane.b32.xlu1 %v6567_v15, %s7334_s20 }
 0x1a4   : > { %v11156_v17 = vmax.f32 %v8147_v24, 0.0  ;;  %v8155_v31 = vadd.f32 %v1501_v46, %v7959_v49  ;;  %v1503_v28 = vpop.f32.mrb[31].mxu0 }
 0x1a5   : > { %v11157_v38 = vmax.f32 %v8150_v6, 0.0  ;;  %v8159_v63 = vadd.f32 %v1503_v28, %v7963_v50 }
 0x1a6   : > { %v11159_v44 = vmax.f32 %v8155_v31, 0.0 }
 0x1a7   : > { %v6572_v48 = vpack.i.bf16 %v11157_v38, %v11156_v17  ;;  %v11160_v15 = vmax.f32 %v8159_v63, 0.0 }
 0x1a9   : > { %v6577_v46 = vpack.i.bf16 %v11160_v15, %v11159_v44  ;;  %v1507_v7 = vpop.f32.mrb[32].mxu0  ;;  %6573 = vrot.lane.b32.xlu0 %v6572_v48, %s7334_s20 }
 0x1aa   : > { %v8173_v28 = vadd.f32 %v1507_v7, %v7959_v49  ;;  %v1509_v33 = vpop.f32.mrb[33].mxu0 }
 0x1ab   : > { %v8176_v5 = vadd.f32 %v1509_v33, %v7963_v50  ;;  %v1511_v57 = vpop.f32.mrb[34].mxu0  ;;  %6578 = vrot.lane.b32.xlu1 %v6577_v46, %s7334_s20 }
 0x1ac   : > { %v11164_v17 = vmax.f32 %v8173_v28, 0.0  ;;  %v8181_v38 = vadd.f32 %v1511_v57, %v7959_v49  ;;  %v1513_v56 = vpop.f32.mrb[35].mxu0 }
 0x1ad   : > { %v11165_v44 = vmax.f32 %v8176_v5, 0.0  ;;  %v8185_v48 = vadd.f32 %v1513_v56, %v7963_v50 }
 0x1ae   : > { %v11167_v7 = vmax.f32 %v8181_v38, 0.0 }
 0x1af   : > { %v6582_v33 = vpack.i.bf16 %v11165_v44, %v11164_v17  ;;  %v11168_v46 = vmax.f32 %v8185_v48, 0.0 }
 0x1b1   : > { %v6587_v57 = vpack.i.bf16 %v11168_v46, %v11167_v7  ;;  %v1517_v15 = vpop.f32.mrb[36].mxu0  ;;  %6583 = vrot.lane.b32.xlu0 %v6582_v33, %s7334_s20 }
 0x1b2   : > { %v8199_v56 = vadd.f32 %v1517_v15, %v7959_v49  ;;  %v1519_v1 = vpop.f32.mrb[37].mxu0 }
 0x1b3   : > { %v8202_v42 = vadd.f32 %v1519_v1, %v7963_v50  ;;  %v1521_v45 = vpop.f32.mrb[38].mxu0  ;;  %6588 = vrot.lane.b32.xlu1 %v6587_v57, %s7334_s20 }
 0x1b4   : > { %v11172_v17 = vmax.f32 %v8199_v56, 0.0  ;;  %v8207_v44 = vadd.f32 %v1521_v45, %v7959_v49  ;;  %v1523_v36 = vpop.f32.mrb[39].mxu0 }
 0x1b5   : > { %v11173_v7 = vmax.f32 %v8202_v42, 0.0  ;;  %v8211_v33 = vadd.f32 %v1523_v36, %v7963_v50 }
 0x1b6   : > { %v11175_v15 = vmax.f32 %v8207_v44, 0.0 }
 0x1b7   : > { %v6592_v1 = vpack.i.bf16 %v11173_v7, %v11172_v17  ;;  %v11176_v57 = vmax.f32 %v8211_v33, 0.0 }
 0x1b9   : > { %v6597_v45 = vpack.i.bf16 %v11176_v57, %v11175_v15  ;;  %v1527_v46 = vpop.f32.mrb[40].mxu0  ;;  %6593 = vrot.lane.b32.xlu0 %v6592_v1, %s7334_s20 }
 0x1ba   : > { %v8225_v36 = vadd.f32 %v1527_v46, %v7959_v49  ;;  %v1529_v40 = vpop.f32.mrb[41].mxu0 }
 0x1bb   : > { %v8228_v27 = vadd.f32 %v1529_v40, %v7963_v50  ;;  %v1531_v29 = vpop.f32.mrb[42].mxu0  ;;  %6598 = vrot.lane.b32.xlu1 %v6597_v45, %s7334_s20 }
 0x1bc   : > { %11310 = vst [vmem:[#allocation3_spill] sm:$0xff] %v8225_v36  ;;  %v11180_v17 = vmax.f32 %v8225_v36, 0.0  ;;  %v8233_v7 = vadd.f32 %v1531_v29, %v7959_v49  ;;  %v1533_v22 = vpop.f32.mrb[43].mxu0 }
 0x1bd   : > { %v11181_v15 = vmax.f32 %v8228_v27, 0.0  ;;  %v8237_v1 = vadd.f32 %v1533_v22, %v7963_v50 }
 0x1be   : > { %11311 = vst [vmem:[#allocation4_spill] sm:$0xff] %v8233_v7  ;;  %v11183_v46 = vmax.f32 %v8233_v7, 0.0 }
 0x1bf   : > { %11312 = vst [vmem:[#allocation5_spill] sm:$0xff] %v8237_v1  ;;  %v6602_v40 = vpack.i.bf16 %v11181_v15, %v11180_v17  ;;  %v11184_v45 = vmax.f32 %v8237_v1, 0.0 }
 0x1c1   : > { %v6607_v29 = vpack.i.bf16 %v11184_v45, %v11183_v46  ;;  %v1537_v57 = vpop.f32.mrb[44].mxu0  ;;  %6603 = vrot.lane.b32.xlu0 %v6602_v40, %s7334_s20 }
 0x1c2   : > { %v8251_v22 = vadd.f32 %v1537_v57, %v7959_v49  ;;  %v1539_v25 = vpop.f32.mrb[45].mxu0 }
 0x1c3   : > { %v8254_v14 = vadd.f32 %v1539_v25, %v7963_v50  ;;  %v1541_v16 = vpop.f32.mrb[46].mxu0  ;;  %6608 = vrot.lane.b32.xlu1 %v6607_v29, %s7334_s20 }
 0x1c4   : > { %11313 = vst [vmem:[#allocation6_spill] sm:$0xff] %v8251_v22  ;;  %v11188_v17 = vmax.f32 %v8251_v22, 0.0  ;;  %v8259_v15 = vadd.f32 %v1541_v16, %v7959_v49  ;;  %v1543_v12 = vpop.f32.mrb[47].mxu0 }
 0x1c5   : > { %11314 = vst [vmem:[#allocation7_spill] sm:$0xff] %v8254_v14  ;;  %v11189_v46 = vmax.f32 %v8254_v14, 0.0  ;;  %v8263_v40 = vadd.f32 %v1543_v12, %v7963_v50 }
 0x1c6   : > { %11315 = vst [vmem:[#allocation8_spill] sm:$0xff] %v8259_v15  ;;  %v11191_v57 = vmax.f32 %v8259_v15, 0.0 }
 0x1c7   : > { %11316 = vst [vmem:[#allocation9_spill] sm:$0xff] %v8263_v40  ;;  %v6612_v25 = vpack.i.bf16 %v11189_v46, %v11188_v17  ;;  %v11192_v29 = vmax.f32 %v8263_v40, 0.0 }
 0x1c9   : > { %v6617_v16 = vpack.i.bf16 %v11192_v29, %v11191_v57  ;;  %v1547_v45 = vpop.f32.mrb[48].mxu0  ;;  %6613 = vrot.lane.b32.xlu0 %v6612_v25, %s7334_s20 }
 0x1ca   : > { %v8277_v12 = vadd.f32 %v1547_v45, %v7959_v49  ;;  %v1549_v8 = vpop.f32.mrb[49].mxu0 }
 0x1cb   : > { %v8280_v58 = vadd.f32 %v1549_v8, %v7963_v50  ;;  %v1551_v62 = vpop.f32.mrb[50].mxu0  ;;  %6618 = vrot.lane.b32.xlu1 %v6617_v16, %s7334_s20 }
 0x1cc   : > { %11317 = vst [vmem:[#allocation10_spill] sm:$0xff] %v8277_v12  ;;  %v11197_v17 = vmax.f32 %v8277_v12, 0.0  ;;  %v8285_v46 = vadd.f32 %v1551_v62, %v7959_v49  ;;  %v1553_v61 = vpop.f32.mrb[51].mxu0 }
 0x1cd   : > { %11318 = vst [vmem:[#allocation11_spill] sm:$0xff] %v8280_v58  ;;  %v11198_v57 = vmax.f32 %v8280_v58, 0.0  ;;  %v8289_v25 = vadd.f32 %v1553_v61, %v7963_v50 }
 0x1ce   : > { %11319 = vst [vmem:[#allocation12_spill] sm:$0xff] %v8285_v46  ;;  %v11200_v45 = vmax.f32 %v8285_v46, 0.0 }
 0x1cf   : > { %11320 = vst [vmem:[#allocation13_spill] sm:$0xff] %v8289_v25  ;;  %v6622_v8 = vpack.i.bf16 %v11198_v57, %v11197_v17  ;;  %v11201_v16 = vmax.f32 %v8289_v25, 0.0 }
 0x1d1   : > { %v6627_v62 = vpack.i.bf16 %v11201_v16, %v11200_v45  ;;  %v1557_v29 = vpop.f32.mrb[52].mxu0  ;;  %6623 = vrot.lane.b32.xlu0 %v6622_v8, %s7334_s20 }
 0x1d2   : > { %v8303_v61 = vadd.f32 %v1557_v29, %v7959_v49  ;;  %v1559_v0 = vpop.f32.mrb[53].mxu0 }
 0x1d3   : > { %v8306_v47 = vadd.f32 %v1559_v0, %v7963_v50  ;;  %v1561_v12 = vpop.f32.mrb[54].mxu0  ;;  %6628 = vrot.lane.b32.xlu1 %v6627_v62, %s7334_s20 }
 0x1d4   : > { %11321 = vst [vmem:[#allocation14_spill] sm:$0xff] %v8303_v61  ;;  %v11205_v17 = vmax.f32 %v8303_v61, 0.0  ;;  %v8311_v57 = vadd.f32 %v1561_v12, %v7959_v49  ;;  %v1563_v46 = vpop.f32.mrb[55].mxu0 }
 0x1d5   : > { %11322 = vst [vmem:[#allocation15_spill] sm:$0xff] %v8306_v47  ;;  %v11206_v45 = vmax.f32 %v8306_v47, 0.0  ;;  %v8315_v8 = vadd.f32 %v1563_v46, %v7963_v50 }
 0x1d6   : > { %11323 = vst [vmem:[#allocation16_spill] sm:$0xff] %v8311_v57  ;;  %v11208_v29 = vmax.f32 %v8311_v57, 0.0 }
 0x1d7   : > { %11324 = vst [vmem:[#allocation17_spill] sm:$0xff] %v8315_v8  ;;  %v6632_v0 = vpack.i.bf16 %v11206_v45, %v11205_v17  ;;  %v11209_v62 = vmax.f32 %v8315_v8, 0.0 }
 0x1d9   : > { %v6637_v12 = vpack.i.bf16 %v11209_v62, %v11208_v29  ;;  %v1567_v16 = vpop.f32.mrb[56].mxu0  ;;  %6633 = vrot.lane.b32.xlu0 %v6632_v0, %s7334_s20 }
 0x1da   : > { %v8329_v46 = vadd.f32 %v1567_v16, %v7959_v49  ;;  %v1569_v25 = vpop.f32.mrb[57].mxu0 }
 0x1db   : > { %v8332_v58 = vadd.f32 %v1569_v25, %v7963_v50  ;;  %v1571_v61 = vpop.f32.mrb[58].mxu0  ;;  %6638 = vrot.lane.b32.xlu1 %v6637_v12, %s7334_s20 }
 0x1dc   : > { %11325 = vst [vmem:[#allocation18_spill] sm:$0xff] %v8329_v46  ;;  %v11213_v17 = vmax.f32 %v8329_v46, 0.0  ;;  %v8337_v45 = vadd.f32 %v1571_v61, %v7959_v49  ;;  %v1573_v57 = vpop.f32.mrb[59].mxu0 }
 0x1dd   : > { %11326 = vst [vmem:[#allocation19_spill] sm:$0xff] %v8332_v58  ;;  %v11214_v29 = vmax.f32 %v8332_v58, 0.0  ;;  %v8341_v0 = vadd.f32 %v1573_v57, %v7963_v50 }
 0x1de   : > { %11327 = vst [vmem:[#allocation20_spill] sm:$0xff] %v8337_v45  ;;  %v11216_v16 = vmax.f32 %v8337_v45, 0.0 }
 0x1df   : > { %11328 = vst [vmem:[#allocation21_spill] sm:$0xff] %v8341_v0  ;;  %v6642_v25 = vpack.i.bf16 %v11214_v29, %v11213_v17  ;;  %v11217_v12 = vmax.f32 %v8341_v0, 0.0 }
 0x1e1   : > { %v6647_v61 = vpack.i.bf16 %v11217_v12, %v11216_v16  ;;  %v1577_v62 = vpop.f32.mrb[60].mxu0  ;;  %6643 = vrot.lane.b32.xlu0 %v6642_v25, %s7334_s20 }
 0x1e2   : > { %v8355_v57 = vadd.f32 %v1577_v62, %v7959_v49  ;;  %v1579_v8 = vpop.f32.mrb[61].mxu0 }
 0x1e3   : > { %v8358_v47 = vadd.f32 %v1579_v8, %v7963_v50  ;;  %v1581_v46 = vpop.f32.mrb[62].mxu0  ;;  %6648 = vrot.lane.b32.xlu1 %v6647_v61, %s7334_s20  ;;  %v6504_v17 = vpop.permute.xlu0 %6503 }
 0x1e4   : > { %11329 = vst [vmem:[#allocation22_spill] sm:$0xff] %v8355_v57  ;;  %v11224_v29 = vmax.f32 %v8355_v57, 0.0  ;;  %v8363_v45 = vadd.f32 %v1581_v46, %v7959_v49  ;;  %v6506_v16 = vunpack.i.h.bf16 %v6504_v17  ;;  %v6505_v12 = vunpack.i.l.bf16 %v6504_v17  ;;  %v1583_v0 = vpop.f32.mrb[63].mxu0 }
 0x1e5   : > { %11330 = vst [vmem:[#allocation23_spill] sm:$0xff] %v8358_v47  ;;  %v11225_v25 = vmax.f32 %v8358_v47, 0.0  ;;  %v8367_v62 = vadd.f32 %v1583_v0, %v7963_v50  ;;  %v6509_v58 = vpop.permute.xlu1 %6508  ;;  %v11333_v17 = vmax.f32 %v7977_v53, 0.0 }
 0x1e6   : > { %11331 = vst [vmem:[#allocation24_spill] sm:$0xff] %v8363_v45  ;;  %v11227_v8 = vmax.f32 %v8363_v45, 0.0  ;;  %v6511_v15 = vunpack.i.h.bf16 %v6509_v58  ;;  %v6510_v61 = vunpack.i.l.bf16 %v6509_v58  ;;  %v1843_v22 = vsel %vm1842_vm7, %v6505_v12, %v6506_v16 }
 0x1e7   : > { %11332 = vst [vmem:[#allocation25_spill] sm:$0xff] %v8367_v62  ;;  %v6652_v49 = vpack.i.bf16 %v11225_v25, %v11224_v29  ;;  %v11228_v46 = vmax.f32 %v8367_v62, 0.0  ;;  %v11334_v58 = vmax.f32 %v7969_v55, 0.0  ;;  %v11335_v29 = vmax.f32 %v7973_v59, 0.0 }
 0x1e8   : > { %v1942_v40 = vmax.f32 %v11333_v17, %v6511_v15  ;;  %v1844_v50 = vsel %vm1842_vm7, %v6510_v61, %v6511_v15  ;;  %v11336_v12 = vmax.f32 %v7966_v52, 0.0  ;;  %v11337_v59 = vmax.f32 %v7994_v9, 0.0 }
 0x1e9   : > { %v6657_v0 = vpack.i.bf16 %v11228_v46, %v11227_v8  ;;  %6653 = vrot.lane.b32.xlu0 %v6652_v49, %s7334_s20  ;;  %v1940_v57 = vmax.f32 %v11334_v58, %v6506_v16  ;;  %v1941_v25 = vmax.f32 %v11335_v29, %v1844_v50  ;;  %v7059_v8 = vld [vmem:[%s11133_s3 + $0x4] ss:$8 sps:$4 sm:$0xff]   ;;  %v11338_v52 = vmax.f32 %v7991_v4, 0.0 }
 0x1ea   : > { %v1939_v17 = vmax.f32 %v11336_v12, %v1843_v22  ;;  %v2071_v45 = vrot.slane %v1942_v40, 1  ;;  %5832 = vmatprep.mubr.msk.bf16.mxu1 %vm2430_vm8, %v7059_v8  ;;  %v11339_v12 = vmax.f32 %v8003_v39, 0.0 }
 0x1eb   : > { %6658 = vrot.lane.b32.xlu1 %v6657_v0, %s7334_s20  ;;  %v6514_v53 = vpop.permute.xlu0 %6513  ;;  %v2070_v55 = vrot.slane %v1940_v57, 1  ;;  %v2068_v16 = vrot.slane %v1941_v25, 1 }
 0x1ec   : > { %v6516_v15 = vunpack.i.h.bf16 %v6514_v53  ;;  %v6515_v61 = vunpack.i.l.bf16 %v6514_v53  ;;  %v2067_v53 = vrot.slane %v1939_v17, 1 }
 0x1ed   : > { %v6519_v49 = vpop.permute.xlu1 %6518  ;;  %v2072_v47 = vsel %vm506_vm0, %v2070_v55, %v2071_v45 }
 0x1ee   : > { %v1944_v29 = vmax.f32 %v11337_v59, %v6516_v15  ;;  %v1845_v50 = vsel %vm1842_vm7, %v6515_v61, %v6516_v15  ;;  %v6521_v0 = vunpack.i.h.bf16 %v6519_v49  ;;  %v6520_v58 = vunpack.i.l.bf16 %v6519_v49 }
 0x1ef   : > { %v1943_v22 = vmax.f32 %v11338_v52, %v1845_v50  ;;  %v11340_v59 = vmax.f32 %v7999_v13, 0.0  ;;  %v2069_v8 = vsel %vm506_vm0, %v2067_v53, %v2068_v16  ;;  %v2258_v4 = vmax.f32 %v1940_v57, %v2072_v47 }
 0x1f0   : > { %v1946_v46 = vmax.f32 %v11339_v12, %v6521_v0  ;;  %v1846_v62 = vsel %vm1842_vm7, %v6520_v58, %v6521_v0  ;;  %v2075_v14 = vrot.slane %v1944_v29, 1  ;;  %v2257_v1 = vmax.f32 %v1939_v17, %v2069_v8 }
 0x1f1   : > { %v2073_v9 = vrot.slane %v1943_v22, 1  ;;  %v1945_v15 = vmax.f32 %v11340_v59, %v1846_v62  ;;  %v11341_v13 = vmax.f32 %v8020_v20, 0.0  ;;  %v11342_v47 = vmax.f32 %v8017_v3, 0.0 }
 0x1f2   : > { %v2076_v61 = vsel %vm506_vm0, %v2071_v45, %v2075_v14  ;;  %v2079_v39 = vrot.slane %v1946_v46, 1  ;;  %v11344_v20 = vmax.f32 %v8025_v23, 0.0  ;;  %v11345_v23 = vmax.f32 %v8046_v34, 0.0 }
 0x1f3   : > { %v6524_v49 = vpop.permute.xlu0 %6523  ;;  %v2260_v50 = vmax.f32 %v1942_v40, %v2076_v61  ;;  %v2074_v52 = vsel %vm506_vm0, %v2068_v16, %v2073_v9  ;;  %v2077_v36 = vrot.slane %v1945_v15, 1  ;;  %v11343_v61 = vmax.f32 %v8029_v26, 0.0 }
 0x1f4   : > { %v6526_v12 = vunpack.i.h.bf16 %v6524_v49  ;;  %v6525_v7 = vunpack.i.l.bf16 %v6524_v49  ;;  %v2259_v0 = vmax.f32 %v1941_v25, %v2074_v52  ;;  %v2080_v17 = vsel %vm506_vm0, %v2075_v14, %v2079_v39 }
 0x1f5   : > { %v6529_v58 = vpop.permute.xlu1 %6528  ;;  %v2322_v55 = vpack.c.bf16 %v2260_v50, %v2258_v4  ;;  %v2078_v3 = vsel %vm506_vm0, %v2073_v9, %v2077_v36  ;;  %v2262_v52 = vmax.f32 %v1944_v29, %v2080_v17  ;;  %v11346_v29 = vmax.f32 %v8043_v32, 0.0 }
 0x1f6   : > { %v1948_v62 = vmax.f32 %v11341_v13, %v6526_v12  ;;  %v1847_v45 = vsel %vm1842_vm7, %v6525_v7, %v6526_v12  ;;  %v6531_v59 = vunpack.i.h.bf16 %v6529_v58  ;;  %v6530_v53 = vunpack.i.l.bf16 %v6529_v58 }
 0x1f7   : > { %v1947_v40 = vmax.f32 %v11342_v47, %v1847_v45  ;;  %2460 = vmatprep.subr.bf16.mxu1 %v2322_v55  ;;  %v2321_v57 = vpack.c.bf16 %v2259_v0, %v2257_v1  ;;  %v2261_v45 = vmax.f32 %v1943_v22, %v2078_v3  ;;  %v11348_v34 = vmax.f32 %v8051_v37, 0.0 }
 0x1f8   : > { %v2083_v16 = vrot.slane %v1948_v62, 1  ;;  %v1950_v25 = vmax.f32 %v11343_v61, %v6531_v59  ;;  %v1848_v49 = vsel %vm1842_vm7, %v6530_v53, %v6531_v59  ;;  %v11347_v61 = vmax.f32 %v8055_v41, 0.0 }
 0x1f9   : > { %v2081_v8 = vrot.slane %v1947_v40, 1  ;;  %2461 = vmatpush1.bf16.msra.mxu1 %v2321_v57  ;;  %v1949_v7 = vmax.f32 %v11344_v20, %v1848_v49  ;;  %v11349_v37 = vmax.f32 %v8072_v51, 0.0  ;;  %v11352_v51 = vmax.f32 %v8077_v60, 0.0 }
 0x1fa   : > { %v2084_v4 = vsel %vm506_vm0, %v2079_v39, %v2083_v16  ;;  %v2087_v26 = vrot.slane %v1950_v25, 1  ;;  %v11353_v60 = vmax.f32 %v8098_v21, 0.0  ;;  %v11356_v21 = vmax.f32 %v8103_v30, 0.0 }
 0x1fb   : > { %v6534_v50 = vpop.permute.xlu0 %6533  ;;  %v2264_v1 = vmax.f32 %v1946_v46, %v2084_v4  ;;  %v2082_v12 = vsel %vm506_vm0, %v2077_v36, %v2081_v8  ;;  %v2085_v59 = vrot.slane %v1949_v7, 1  ;;  %v11357_v30 = vmax.f32 %v8124_v11, 0.0 }
 0x1fc   : > { %v6536_v0 = vunpack.i.h.bf16 %v6534_v50  ;;  %v6535_v58 = vunpack.i.l.bf16 %v6534_v50  ;;  %v2263_v55 = vmax.f32 %v1945_v15, %v2082_v12  ;;  %v2088_v22 = vsel %vm506_vm0, %v2083_v16, %v2087_v26 }
 0x1fd   : > { %v6539_v13 = vpop.permute.xlu1 %6538  ;;  %v2324_v14 = vpack.c.bf16 %v2264_v1, %v2262_v52  ;;  %v2086_v32 = vsel %vm506_vm0, %v2081_v8, %v2085_v59  ;;  %v2266_v50 = vmax.f32 %v1948_v62, %v2088_v22  ;;  %v11350_v62 = vmax.f32 %v8069_v10, 0.0 }
 0x1fe   : > { %v1952_v53 = vmax.f32 %v11345_v23, %v6536_v0  ;;  %v1849_v39 = vsel %vm1842_vm7, %v6535_v58, %v6536_v0  ;;  %v6541_v47 = vunpack.i.h.bf16 %v6539_v13  ;;  %v6540_v9 = vunpack.i.l.bf16 %v6539_v13 }
 0x1ff   : > { %v1951_v46 = vmax.f32 %v11346_v29, %v1849_v39  ;;  %2462 = vmatprep.subr.bf16.mxu1 %v2324_v14  ;;  %v2323_v36 = vpack.c.bf16 %v2263_v55, %v2261_v45  ;;  %v2265_v13 = vmax.f32 %v1947_v40, %v2086_v32  ;;  %v11360_v11 = vmax.f32 %v8129_v19, 0.0 }
 0x200   : > { %v2091_v57 = vrot.slane %v1952_v53, 1  ;;  %v1954_v15 = vmax.f32 %v11347_v61, %v6541_v47  ;;  %v1850_v49 = vsel %vm1842_vm7, %v6540_v9, %v6541_v47  ;;  %v11351_v47 = vmax.f32 %v8081_v2, 0.0 }
 0x201   : > { %v2089_v17 = vrot.slane %v1951_v46, 1  ;;  %2463 = vmatpush1.bf16.msra.mxu1 %v2323_v36  ;;  %v1953_v20 = vmax.f32 %v11348_v34, %v1850_v49  ;;  %v11361_v19 = vmax.f32 %v8150_v6, 0.0  ;;  %v11364_v6 = vmax.f32 %v8155_v31, 0.0 }
 0x202   : > { %v2092_v4 = vsel %vm506_vm0, %v2087_v26, %v2091_v57  ;;  %v2095_v41 = vrot.slane %v1954_v15, 1  ;;  %v11365_v31 = vmax.f32 %v8176_v5, 0.0  ;;  %v11368_v5 = vmax.f32 %v8181_v38, 0.0 }
 0x203   : > { %v6544_v3 = vpop.permute.xlu0 %6543  ;;  %v2268_v52 = vmax.f32 %v1950_v25, %v2092_v4  ;;  %v2090_v1 = vsel %vm506_vm0, %v2085_v59, %v2089_v17  ;;  %v2093_v14 = vrot.slane %v1953_v20, 1  ;;  %v11369_v38 = vmax.f32 %v8202_v42, 0.0 }
 0x204   : > { %v6546_v12 = vunpack.i.h.bf16 %v6544_v3  ;;  %v6545_v0 = vunpack.i.l.bf16 %v6544_v3  ;;  %v2267_v58 = vmax.f32 %v1949_v7, %v2090_v1  ;;  %v2096_v40 = vsel %vm506_vm0, %v2091_v57, %v2095_v41 }
 0x205   : > { %v6549_v55 = vpop.permute.xlu1 %6548  ;;  %v2326_v16 = vpack.c.bf16 %v2268_v52, %v2266_v50  ;;  %v2094_v10 = vsel %vm506_vm0, %v2089_v17, %v2093_v14  ;;  %v2270_v22 = vmax.f32 %v1952_v53, %v2096_v40  ;;  %v11354_v53 = vmax.f32 %v8095_v18, 0.0 }
 0x206   : > { %v1956_v45 = vmax.f32 %v11349_v37, %v6546_v12  ;;  %v1851_v26 = vsel %vm1842_vm7, %v6545_v0, %v6546_v12  ;;  %v6551_v23 = vunpack.i.h.bf16 %v6549_v55  ;;  %v6550_v8 = vunpack.i.l.bf16 %v6549_v55 }
 0x207   : > { %v1955_v25 = vmax.f32 %v11350_v62, %v1851_v26  ;;  %2464 = vmatprep.subr.bf16.mxu1 %v2326_v16  ;;  %v2325_v59 = vpack.c.bf16 %v2267_v58, %v2265_v13  ;;  %v2269_v12 = vmax.f32 %v1951_v46, %v2094_v10  ;;  %v11355_v13 = vmax.f32 %v8107_v35, 0.0 }
 0x208   : > { %v2099_v39 = vrot.slane %v1956_v45, 1  ;;  %v1958_v7 = vmax.f32 %v11351_v47, %v6551_v23  ;;  %v1852_v9 = vsel %vm1842_vm7, %v6550_v8, %v6551_v23  ;;  %v11372_v42 = vmax.f32 %v8207_v44, 0.0 }
 0x209   : > { %v2097_v29 = vrot.slane %v1955_v25, 1  ;;  %v1957_v36 = vmax.f32 %v11352_v51, %v1852_v9  ;;  %2465 = vmatpush1.bf16.msra.mxu1 %v2325_v59  ;;  %v11373_v44 = vmax.f32 %v8228_v27, 0.0  ;;  %v11378_v27 = vld [vmem:[#allocation4_spill] sm:$0xff] }
 0x20a   : > { %v2100_v61 = vsel %vm506_vm0, %v2095_v41, %v2099_v39  ;;  %v2103_v2 = vrot.slane %v1958_v7, 1 }
 0x20b   : > { %v6554_v49 = vpop.permute.xlu0 %6553  ;;  %v2272_v34 = vmax.f32 %v1954_v15, %v2100_v61  ;;  %v2098_v4 = vsel %vm506_vm0, %v2093_v14, %v2097_v29  ;;  %v2101_v52 = vrot.slane %v1957_v36, 1 }
 0x20c   : > { %v6556_v32 = vunpack.i.h.bf16 %v6554_v49  ;;  %v6555_v3 = vunpack.i.l.bf16 %v6554_v49  ;;  %v2271_v50 = vmax.f32 %v1953_v20, %v2098_v4  ;;  %v2104_v46 = vsel %vm506_vm0, %v2099_v39, %v2103_v2 }
 0x20d   : > { %v6559_v57 = vpop.permute.xlu1 %6558  ;;  %v2328_v1 = vpack.c.bf16 %v2272_v34, %v2270_v22  ;;  %v2102_v18 = vsel %vm506_vm0, %v2097_v29, %v2101_v52  ;;  %v2274_v62 = vmax.f32 %v1956_v45, %v2104_v46  ;;  %v11358_v45 = vmax.f32 %v8121_v54, 0.0 }
 0x20e   : > { %v1960_v0 = vmax.f32 %v11353_v60, %v6556_v32  ;;  %v1853_v41 = vsel %vm1842_vm7, %v6555_v3, %v6556_v32  ;;  %v6561_v58 = vunpack.i.h.bf16 %v6559_v57  ;;  %v6560_v17 = vunpack.i.l.bf16 %v6559_v57 }
 0x20f   : > { %v1959_v15 = vmax.f32 %v11354_v53, %v1853_v41  ;;  %2466 = vmatprep.subr.bf16.mxu1 %v2328_v1  ;;  %v2327_v55 = vpack.c.bf16 %v2271_v50, %v2269_v12  ;;  %v2273_v49 = vmax.f32 %v1955_v25, %v2102_v18  ;;  %v11359_v3 = vmax.f32 %v8133_v43, 0.0 }
 0x210   : > { %v2107_v16 = vrot.slane %v1960_v0, 1  ;;  %v1962_v20 = vmax.f32 %v11355_v13, %v6561_v58  ;;  %v1854_v14 = vsel %vm1842_vm7, %v6560_v17, %v6561_v58 }
 0x211   : > { %v2105_v37 = vrot.slane %v1959_v15, 1  ;;  %v1961_v26 = vmax.f32 %v11356_v21, %v1854_v14  ;;  %2467 = vmatpush1.bf16.msra.mxu1 %v2327_v55 }
 0x212   : > { %v2108_v23 = vsel %vm506_vm0, %v2103_v2, %v2107_v16  ;;  %v2111_v35 = vrot.slane %v1962_v20, 1 }
 0x213   : > { %v6564_v8 = vpop.permute.xlu0 %6563  ;;  %v2276_v59 = vmax.f32 %v1958_v7, %v2108_v23  ;;  %v2106_v47 = vsel %vm506_vm0, %v2101_v52, %v2105_v37  ;;  %v2109_v61 = vrot.slane %v1961_v26, 1 }
 0x214   : > { %v6566_v9 = vunpack.i.h.bf16 %v6564_v8  ;;  %v6565_v40 = vunpack.i.l.bf16 %v6564_v8  ;;  %v2275_v51 = vmax.f32 %v1957_v36, %v2106_v47  ;;  %v2112_v25 = vsel %vm506_vm0, %v2107_v16, %v2111_v35 }
 0x215   : > { %v6569_v39 = vpop.permute.xlu1 %6568  ;;  %v2330_v10 = vpack.c.bf16 %v2276_v59, %v2274_v62  ;;  %v2110_v54 = vsel %vm506_vm0, %v2105_v37, %v2109_v61  ;;  %v2278_v60 = vmax.f32 %v1960_v0, %v2112_v25  ;;  %v11362_v0 = vmax.f32 %v8147_v24, 0.0 }
 0x216   : > { %v1964_v22 = vmax.f32 %v11357_v30, %v6566_v9  ;;  %v1855_v34 = vsel %vm1842_vm7, %v6565_v40, %v6566_v9  ;;  %v6571_v4 = vunpack.i.h.bf16 %v6569_v39  ;;  %v6570_v29 = vunpack.i.l.bf16 %v6569_v39 }
 0x217   : > { %v1963_v7 = vmax.f32 %v11358_v45, %v1855_v34  ;;  %2468 = vmatprep.subr.bf16.mxu1 %v2330_v10  ;;  %v2329_v2 = vpack.c.bf16 %v2275_v51, %v2273_v49  ;;  %v2277_v46 = vmax.f32 %v1959_v15, %v2110_v54  ;;  %v11363_v59 = vmax.f32 %v8159_v63, 0.0 }
 0x218   : > { %v2115_v32 = vrot.slane %v1964_v22, 1  ;;  %v1966_v36 = vmax.f32 %v11359_v3, %v6571_v4  ;;  %v1856_v50 = vsel %vm1842_vm7, %v6570_v29, %v6571_v4 }
 0x219   : > { %v2113_v52 = vrot.slane %v1963_v7, 1  ;;  %v1965_v57 = vmax.f32 %v11360_v11, %v1856_v50  ;;  %2469 = vmatpush1.bf16.msra.mxu1 %v2329_v2 }
 0x21a   : > { %v2116_v1 = vsel %vm506_vm0, %v2111_v35, %v2115_v32  ;;  %v2119_v43 = vrot.slane %v1966_v36, 1 }
 0x21b   : > { %v6574_v12 = vpop.permute.xlu0 %6573  ;;  %v2280_v41 = vmax.f32 %v1962_v20, %v2116_v1  ;;  %v2114_v58 = vsel %vm506_vm0, %v2109_v61, %v2113_v52  ;;  %v2117_v13 = vrot.slane %v1965_v57, 1  ;;  %v11367_v1 = vmax.f32 %v8185_v48, 0.0 }
 0x21c   : > { %v6576_v17 = vunpack.i.h.bf16 %v6574_v12  ;;  %v6575_v53 = vunpack.i.l.bf16 %v6574_v12  ;;  %v2279_v55 = vmax.f32 %v1961_v26, %v2114_v58  ;;  %v2120_v15 = vsel %vm506_vm0, %v2115_v32, %v2119_v43 }
 0x21d   : > { %v6579_v16 = vpop.permute.xlu1 %6578  ;;  %v2332_v14 = vpack.c.bf16 %v2280_v41, %v2278_v60  ;;  %v2118_v24 = vsel %vm506_vm0, %v2113_v52, %v2117_v13  ;;  %v2282_v61 = vmax.f32 %v1964_v22, %v2120_v15  ;;  %v11366_v22 = vmax.f32 %v8173_v28, 0.0 }
 0x21e   : > { %v1968_v21 = vmax.f32 %v11361_v19, %v6576_v17  ;;  %v1857_v23 = vsel %vm1842_vm7, %v6575_v53, %v6576_v17  ;;  %v6581_v18 = vunpack.i.h.bf16 %v6579_v16  ;;  %v6580_v37 = vunpack.i.l.bf16 %v6579_v16 }
 0x21f   : > { %v1967_v20 = vmax.f32 %v11362_v0, %v1857_v23  ;;  %2470 = vmatprep.subr.bf16.mxu1 %v2332_v14  ;;  %v2331_v8 = vpack.c.bf16 %v2279_v55, %v2277_v46  ;;  %v2281_v2 = vmax.f32 %v1963_v7, %v2118_v24 }
 0x220   : > { %v2123_v62 = vrot.slane %v1968_v21, 1  ;;  %v1970_v26 = vmax.f32 %v11363_v59, %v6581_v18  ;;  %v1858_v47 = vsel %vm1842_vm7, %v6580_v37, %v6581_v18 }
 0x221   : > { %v2121_v35 = vrot.slane %v1967_v20, 1  ;;  %v1969_v9 = vmax.f32 %v11364_v6, %v1858_v47  ;;  %2471 = vmatpush1.bf16.msra.mxu1 %v2331_v8  ;;  %v11371_v47 = vmax.f32 %v8211_v33, 0.0 }
 0x222   : > { %v2124_v40 = vsel %vm506_vm0, %v2119_v43, %v2123_v62  ;;  %v2127_v63 = vrot.slane %v1970_v26, 1 }
 0x223   : > { %v6584_v51 = vpop.permute.xlu0 %6583  ;;  %v2284_v39 = vmax.f32 %v1966_v36, %v2124_v40  ;;  %v2122_v10 = vsel %vm506_vm0, %v2117_v13, %v2121_v35  ;;  %v2125_v4 = vrot.slane %v1969_v9, 1 }
 0x224   : > { %v6586_v49 = vunpack.i.h.bf16 %v6584_v51  ;;  %v6585_v30 = vunpack.i.l.bf16 %v6584_v51  ;;  %v2283_v34 = vmax.f32 %v1965_v57, %v2122_v10  ;;  %v2128_v7 = vsel %vm506_vm0, %v2123_v62, %v2127_v63 }
 0x225   : > { %v6589_v29 = vpop.permute.xlu1 %6588  ;;  %v2334_v45 = vpack.c.bf16 %v2284_v39, %v2282_v61  ;;  %v2126_v28 = vsel %vm506_vm0, %v2121_v35, %v2125_v4  ;;  %v2286_v43 = vmax.f32 %v1968_v21, %v2128_v7  ;;  %v11370_v21 = vmax.f32 %v8199_v56, 0.0 }
 0x226   : > { %v1972_v32 = vmax.f32 %v11365_v31, %v6586_v49  ;;  %v1859_v3 = vsel %vm1842_vm7, %v6585_v30, %v6586_v49  ;;  %v6591_v50 = vunpack.i.h.bf16 %v6589_v29  ;;  %v6590_v25 = vunpack.i.l.bf16 %v6589_v29 }
 0x227   : > { %v1971_v36 = vmax.f32 %v11366_v22, %v1859_v3  ;;  %2472 = vmatprep.subr.bf16.mxu1 %v2334_v45  ;;  %v2333_v52 = vpack.c.bf16 %v2283_v34, %v2281_v2  ;;  %v2285_v23 = vmax.f32 %v1967_v20, %v2126_v28 }
 0x228   : > { %v2131_v11 = vrot.slane %v1972_v32, 1  ;;  %v1974_v57 = vmax.f32 %v11367_v1, %v6591_v50  ;;  %v1860_v54 = vsel %vm1842_vm7, %v6590_v25, %v6591_v50  ;;  %v11374_v50 = vld [vmem:[#allocation3_spill] sm:$0xff] }
 0x229   : > { %v2129_v12 = vrot.slane %v1971_v36, 1  ;;  %v1973_v60 = vmax.f32 %v11368_v5, %v1860_v54  ;;  %2473 = vmatpush1.bf16.msra.mxu1 %v2333_v52 }
 0x22a   : > { %v2132_v41 = vsel %vm506_vm0, %v2127_v63, %v2131_v11  ;;  %v2135_v48 = vrot.slane %v1974_v57, 1 }
 0x22b   : > { %v6594_v58 = vpop.permute.xlu0 %6593  ;;  %v2288_v17 = vmax.f32 %v1970_v26, %v2132_v41  ;;  %v2130_v53 = vsel %vm506_vm0, %v2125_v4, %v2129_v12  ;;  %v2133_v14 = vrot.slane %v1973_v60, 1 }
 0x22c   : > { %v6596_v55 = vunpack.i.h.bf16 %v6594_v58  ;;  %v6595_v13 = vunpack.i.l.bf16 %v6594_v58  ;;  %v2287_v16 = vmax.f32 %v1969_v9, %v2130_v53  ;;  %v2136_v20 = vsel %vm506_vm0, %v2131_v11, %v2135_v48  ;;  %v11376_v11 = vld [vmem:[#allocation5_spill] sm:$0xff] }
 0x22d   : > { %v6599_v46 = vpop.permute.xlu1 %6598  ;;  %v2336_v19 = vpack.c.bf16 %v2288_v17, %v2286_v43  ;;  %v2134_v56 = vsel %vm506_vm0, %v2129_v12, %v2133_v14  ;;  %v2290_v51 = vmax.f32 %v1972_v32, %v2136_v20  ;;  %v11375_v32 = vmax.f32 %v11374_v50, 0.0 }
 0x22e   : > { %v1976_v18 = vmax.f32 %v11369_v38, %v6596_v55  ;;  %v1861_v37 = vsel %vm1842_vm7, %v6595_v13, %v6596_v55  ;;  %v6601_v0 = vunpack.i.h.bf16 %v6599_v46  ;;  %v6600_v8 = vunpack.i.l.bf16 %v6599_v46 }
 0x22f   : > { %v1975_v62 = vmax.f32 %v11370_v21, %v1861_v37  ;;  %2474 = vmatprep.subr.bf16.mxu1 %v2336_v19  ;;  %v2335_v59 = vpack.c.bf16 %v2287_v16, %v2285_v23  ;;  %v2289_v29 = vmax.f32 %v1971_v36, %v2134_v56  ;;  %v11377_v1 = vmax.f32 %v11376_v11, 0.0  ;;  %v11380_v23 = vld [vmem:[#allocation7_spill] sm:$0xff] }
 0x230   : > { %v2139_v26 = vrot.slane %v1976_v18, 1  ;;  %v1978_v15 = vmax.f32 %v11371_v47, %v6601_v0  ;;  %v1862_v35 = vsel %vm1842_vm7, %v6600_v8, %v6601_v0  ;;  %v11379_v12 = vmax.f32 %v11378_v27, 0.0 }
 0x231   : > { %v2137_v6 = vrot.slane %v1975_v62, 1  ;;  %v1977_v9 = vmax.f32 %v11372_v42, %v1862_v35  ;;  %2475 = vmatpush1.bf16.msra.mxu1 %v2335_v59  ;;  %v11381_v38 = vmax.f32 %v11380_v23, 0.0  ;;  %v11382_v59 = vld [vmem:[#allocation6_spill] sm:$0xff]  ;;  %v11384_v35 = vld [vmem:[#allocation9_spill] sm:$0xff] }
 0x232   : > { %v2140_v40 = vsel %vm506_vm0, %v2135_v48, %v2139_v26  ;;  %v2143_v33 = vrot.slane %v1978_v15, 1  ;;  %v11385_v20 = vmax.f32 %v11384_v35, 0.0 }
 0x233   : > { %v6604_v24 = vpop.permute.xlu0 %6603  ;;  %v2292_v61 = vmax.f32 %v1974_v57, %v2140_v40  ;;  %v2138_v39 = vsel %vm506_vm0, %v2133_v14, %v2137_v6  ;;  %v2141_v30 = vrot.slane %v1977_v9, 1  ;;  %v11386_v40 = vld [vmem:[#allocation8_spill] sm:$0xff] }
 0x234   : > { %v6606_v10 = vunpack.i.h.bf16 %v6604_v24  ;;  %v6605_v63 = vunpack.i.l.bf16 %v6604_v24  ;;  %v2291_v49 = vmax.f32 %v1973_v60, %v2138_v39  ;;  %v2144_v36 = vsel %vm506_vm0, %v2139_v26, %v2143_v33 }
 0x235   : > { %v6609_v34 = vpop.permute.xlu1 %6608  ;;  %v2338_v4 = vpack.c.bf16 %v2292_v61, %v2290_v51  ;;  %v2142_v41 = vsel %vm506_vm0, %v2137_v6, %v2141_v30  ;;  %v2294_v58 = vmax.f32 %v1976_v18, %v2144_v36  ;;  %v11383_v18 = vmax.f32 %v11382_v59, 0.0 }
 0x236   : > { %v1980_v45 = vmax.f32 %v11373_v44, %v6606_v10  ;;  %v1863_v2 = vsel %vm1842_vm7, %v6605_v63, %v6606_v10  ;;  %v6611_v31 = vunpack.i.h.bf16 %v6609_v34  ;;  %v6610_v3 = vunpack.i.l.bf16 %v6609_v34 }
 0x237   : > { %v1979_v25 = vmax.f32 %v11375_v32, %v1863_v2  ;;  %2476 = vmatprep.subr.bf16.mxu1 %v2338_v4  ;;  %v2337_v22 = vpack.c.bf16 %v2291_v49, %v2289_v29  ;;  %v2293_v19 = vmax.f32 %v1975_v62, %v2142_v41  ;;  %v11387_v56 = vmax.f32 %v11386_v40, 0.0  ;;  %v11394_v41 = vld [vmem:[#allocation12_spill] sm:$0xff] }
 0x238   : > { %v2147_v52 = vrot.slane %v1980_v45, 1  ;;  %v1982_v57 = vmax.f32 %v11377_v1, %v6611_v31  ;;  %v1864_v54 = vsel %vm1842_vm7, %v6610_v3, %v6611_v31  ;;  %v11388_v3 = vld [vmem:[#allocation11_spill] sm:$0xff]  ;;  %v11390_v1 = vld [vmem:[#allocation10_spill] sm:$0xff] }
 0x239   : > { %v2145_v7 = vrot.slane %v1979_v25, 1  ;;  %v1981_v5 = vmax.f32 %v11379_v12, %v1864_v54  ;;  %2477 = vmatpush1.bf16.msra.mxu1 %v2337_v22  ;;  %v11389_v50 = vmax.f32 %v11388_v3, 0.0 }
 0x23a   : > { %v2148_v60 = vsel %vm506_vm0, %v2143_v33, %v2147_v52  ;;  %v2151_v53 = vrot.slane %v1982_v57, 1 }
 0x23b   : > { %v6614_v28 = vpop.permute.xlu0 %6613  ;;  %v2296_v43 = vmax.f32 %v1978_v15, %v2148_v60  ;;  %v2146_v17 = vsel %vm506_vm0, %v2141_v30, %v2145_v7  ;;  %v2149_v16 = vrot.slane %v1981_v5, 1 }
 0x23c   : > { %v6616_v48 = vunpack.i.h.bf16 %v6614_v28  ;;  %v6615_v55 = vunpack.i.l.bf16 %v6614_v28  ;;  %v2295_v13 = vmax.f32 %v1977_v9, %v2146_v17  ;;  %v2152_v62 = vsel %vm506_vm0, %v2147_v52, %v2151_v53 }
 0x23d   : > { %v6619_v14 = vpop.permute.xlu1 %6618  ;;  %v2340_v46 = vpack.c.bf16 %v2296_v43, %v2294_v58  ;;  %v2150_v61 = vsel %vm506_vm0, %v2145_v7, %v2149_v16  ;;  %v2298_v33 = vmax.f32 %v1980_v45, %v2152_v62  ;;  %v11391_v45 = vmax.f32 %v11390_v1, 0.0  ;;  %v11392_v7 = vld [vmem:[#allocation13_spill] sm:$0xff] }
 0x23e   : > { %v1984_v37 = vmax.f32 %v11381_v38, %v6616_v48  ;;  %v1865_v0 = vsel %vm1842_vm7, %v6615_v55, %v6616_v48  ;;  %v6621_v8 = vunpack.i.h.bf16 %v6619_v14  ;;  %v6620_v21 = vunpack.i.l.bf16 %v6619_v14 }
 0x23f   : > { %v1983_v26 = vmax.f32 %v11383_v18, %v1865_v0  ;;  %2478 = vmatprep.subr.bf16.mxu1 %v2340_v46  ;;  %v2339_v47 = vpack.c.bf16 %v2295_v13, %v2293_v19  ;;  %v2297_v31 = vmax.f32 %v1979_v25, %v2150_v61  ;;  %v11393_v27 = vmax.f32 %v11392_v7, 0.0  ;;  %v11402_v61 = vld [vmem:[#allocation16_spill] sm:$0xff] }
 0x240   : > { %v2155_v15 = vrot.slane %v1984_v37, 1  ;;  %v1986_v6 = vmax.f32 %v11385_v20, %v6621_v8  ;;  %v1866_v42 = vsel %vm1842_vm7, %v6620_v21, %v6621_v8  ;;  %v11395_v28 = vmax.f32 %v11394_v41, 0.0  ;;  %v11396_v21 = vld [vmem:[#allocation15_spill] sm:$0xff]  ;;  %v11398_v20 = vld [vmem:[#allocation14_spill] sm:$0xff] }
 0x241   : > { %v2153_v9 = vrot.slane %v1983_v26, 1  ;;  %v1985_v24 = vmax.f32 %v11387_v56, %v1866_v42  ;;  %2479 = vmatpush1.bf16.msra.mxu1 %v2339_v47  ;;  %v11397_v59 = vmax.f32 %v11396_v21, 0.0 }
 0x242   : > { %v2156_v51 = vsel %vm506_vm0, %v2151_v53, %v2155_v15  ;;  %v2159_v49 = vrot.slane %v1986_v6, 1 }
 0x243   : > { %v6624_v39 = vpop.permute.xlu0 %6623  ;;  %v2300_v10 = vmax.f32 %v1982_v57, %v2156_v51  ;;  %v2154_v63 = vsel %vm506_vm0, %v2149_v16, %v2153_v9  ;;  %v2157_v29 = vrot.slane %v1985_v24, 1 }
 0x244   : > { %v6626_v30 = vunpack.i.h.bf16 %v6624_v39  ;;  %v6625_v34 = vunpack.i.l.bf16 %v6624_v39  ;;  %v2299_v4 = vmax.f32 %v1981_v5, %v2154_v63  ;;  %v2160_v25 = vsel %vm506_vm0, %v2155_v15, %v2159_v49 }
 0x245   : > { %v6629_v44 = vpop.permute.xlu1 %6628  ;;  %v2342_v2 = vpack.c.bf16 %v2300_v10, %v2298_v33  ;;  %v2158_v17 = vsel %vm506_vm0, %v2153_v9, %v2157_v29  ;;  %v2302_v48 = vmax.f32 %v1984_v37, %v2160_v25  ;;  %v11399_v37 = vmax.f32 %v11398_v20, 0.0  ;;  %v11400_v9 = vld [vmem:[#allocation17_spill] sm:$0xff] }
 0x246   : > { %v1988_v32 = vmax.f32 %v11389_v50, %v6626_v30  ;;  %v1867_v22 = vsel %vm1842_vm7, %v6625_v34, %v6626_v30  ;;  %v6631_v52 = vunpack.i.h.bf16 %v6629_v44  ;;  %v6630_v11 = vunpack.i.l.bf16 %v6629_v44 }
 0x247   : > { %v1987_v57 = vmax.f32 %v11391_v45, %v1867_v22  ;;  %2480 = vmatprep.subr.bf16.mxu1 %v2342_v2  ;;  %v2341_v54 = vpack.c.bf16 %v2299_v4, %v2297_v31  ;;  %v2301_v8 = vmax.f32 %v1983_v26, %v2158_v17  ;;  %v11401_v40 = vmax.f32 %v11400_v9, 0.0  ;;  %v11410_v17 = vld [vmem:[#allocation20_spill] sm:$0xff] }
 0x248   : > { %v2163_v36 = vrot.slane %v1988_v32, 1  ;;  %v1990_v12 = vmax.f32 %v11393_v27, %v6631_v52  ;;  %v1868_v5 = vsel %vm1842_vm7, %v6630_v11, %v6631_v52  ;;  %v11403_v39 = vmax.f32 %v11402_v61, 0.0  ;;  %v11404_v11 = vld [vmem:[#allocation19_spill] sm:$0xff]  ;;  %v11406_v27 = vld [vmem:[#allocation18_spill] sm:$0xff] }
 0x249   : > { %v2161_v60 = vrot.slane %v1987_v57, 1  ;;  %v1989_v58 = vmax.f32 %v11395_v28, %v1868_v5  ;;  %2481 = vmatpush1.bf16.msra.mxu1 %v2341_v54  ;;  %v11405_v1 = vmax.f32 %v11404_v11, 0.0 }
 0x24a   : > { %v2164_v43 = vsel %vm506_vm0, %v2159_v49, %v2163_v36  ;;  %v2167_v16 = vrot.slane %v1990_v12, 1 }
 0x24b   : > { %v6634_v53 = vpop.permute.xlu0 %6633  ;;  %v2304_v55 = vmax.f32 %v1986_v6, %v2164_v43  ;;  %v2162_v13 = vsel %vm506_vm0, %v2157_v29, %v2161_v60  ;;  %v2165_v23 = vrot.slane %v1989_v58, 1 }
 0x24c   : > { %v6636_v14 = vunpack.i.h.bf16 %v6634_v53  ;;  %v6635_v46 = vunpack.i.l.bf16 %v6634_v53  ;;  %v2303_v19 = vmax.f32 %v1985_v24, %v2162_v13  ;;  %v2168_v26 = vsel %vm506_vm0, %v2163_v36, %v2167_v16 }
 0x24d   : > { %v6639_v38 = vpop.permute.xlu1 %6638  ;;  %v2344_v0 = vpack.c.bf16 %v2304_v55, %v2302_v48  ;;  %v2166_v63 = vsel %vm506_vm0, %v2161_v60, %v2165_v23  ;;  %v2306_v30 = vmax.f32 %v1988_v32, %v2168_v26  ;;  %v11407_v32 = vmax.f32 %v11406_v27, 0.0  ;;  %v11408_v60 = vld [vmem:[#allocation21_spill] sm:$0xff] }
 0x24e   : > { %v1992_v18 = vmax.f32 %v11397_v59, %v6636_v14  ;;  %v1869_v47 = vsel %vm1842_vm7, %v6635_v46, %v6636_v14  ;;  %v6641_v15 = vunpack.i.h.bf16 %v6639_v38  ;;  %v6640_v35 = vunpack.i.l.bf16 %v6639_v38 }
 0x24f   : > { %v1991_v6 = vmax.f32 %v11399_v37, %v1869_v47  ;;  %2482 = vmatprep.subr.bf16.mxu1 %v2344_v0  ;;  %v2343_v42 = vpack.c.bf16 %v2303_v19, %v2301_v8  ;;  %v2305_v52 = vmax.f32 %v1987_v57, %v2166_v63  ;;  %v11409_v41 = vmax.f32 %v11408_v60, 0.0  ;;  %v11418_v63 = vld [vmem:[#allocation24_spill] sm:$0xff] }
 0x250   : > { %v2171_v62 = vrot.slane %v1992_v18, 1  ;;  %v1994_v56 = vmax.f32 %v11401_v40, %v6641_v15  ;;  %v1870_v24 = vsel %vm1842_vm7, %v6640_v35, %v6641_v15  ;;  %v11411_v53 = vmax.f32 %v11410_v17, 0.0  ;;  %v11412_v35 = vld [vmem:[#allocation23_spill] sm:$0xff]  ;;  %v11414_v40 = vld [vmem:[#allocation22_spill] sm:$0xff] }
 0x251   : > { %v2169_v51 = vrot.slane %v1991_v6, 1  ;;  %v1993_v33 = vmax.f32 %v11403_v39, %v1870_v24  ;;  %2483 = vmatpush1.bf16.msra.mxu1 %v2343_v42  ;;  %v11413_v20 = vmax.f32 %v11412_v35, 0.0  ;;  %v7063_v17 = vld [vmem:[%s11133_s3 + $0x24] ss:$8 sps:$4 sm:$0xff]   ;;  %v7089_v35 = vld [vmem:[%s11134_s4 + $0x34] ss:$8 sps:$4 sm:$0xff]  }
 0x252   : > { %v2172_v10 = vsel %vm506_vm0, %v2167_v16, %v2171_v62  ;;  %v2175_v29 = vrot.slane %v1994_v56, 1 }
 0x253   : > { %v6644_v49 = vpop.permute.xlu0 %6643  ;;  %v2308_v34 = vmax.f32 %v1990_v12, %v2172_v10  ;;  %v2170_v4 = vsel %vm506_vm0, %v2165_v23, %v2169_v51  ;;  %v2173_v3 = vrot.slane %v1993_v33, 1 }
 0x254   : > { %v6646_v44 = vunpack.i.h.bf16 %v6644_v49  ;;  %v6645_v2 = vunpack.i.l.bf16 %v6644_v49  ;;  %v2307_v31 = vmax.f32 %v1989_v58, %v2170_v4  ;;  %v2176_v57 = vsel %vm506_vm0, %v2171_v62, %v2175_v29 }
 0x255   : > { %v6649_v50 = vpop.permute.xlu1 %6648  ;;  %v2346_v22 = vpack.c.bf16 %v2308_v34, %v2306_v30  ;;  %v2174_v13 = vsel %vm506_vm0, %v2169_v51, %v2173_v3  ;;  %v2310_v14 = vmax.f32 %v1992_v18, %v2176_v57  ;;  %v11415_v18 = vmax.f32 %v11414_v40, 0.0  ;;  %v11416_v51 = vld [vmem:[#allocation25_spill] sm:$0xff]  ;;  %v7098_v40 = vld [vmem:[%s11134_s4 + $0x64] ss:$8 sps:$4 sm:$0xff]  }
 0x256   : > { %v1996_v45 = vmax.f32 %v11405_v1, %v6646_v44  ;;  %v1871_v54 = vsel %vm1842_vm7, %v6645_v2, %v6646_v44  ;;  %v6651_v36 = vunpack.i.h.bf16 %v6649_v50  ;;  %v6650_v7 = vunpack.i.l.bf16 %v6649_v50  ;;  %v7060_v57 = vld [vmem:[%s11133_s3 + $0x14] ss:$8 sps:$4 sm:$0xff]  }
 0x257   : > { %v1995_v12 = vmax.f32 %v11407_v32, %v1871_v54  ;;  %2484 = vmatprep.subr.bf16.mxu1 %v2346_v22  ;;  %v2345_v5 = vpack.c.bf16 %v2307_v31, %v2305_v52  ;;  %v2309_v15 = vmax.f32 %v1991_v6, %v2174_v13  ;;  %v11417_v61 = vmax.f32 %v11416_v51, 0.0  ;;  %v7069_v13 = vld [vmem:[%s11133_s3 + $0x44] ss:$8 sps:$4 sm:$0xff]   ;;  %v7105_v51 = vld [vmem:[%s11134_s4 + $0x90] ss:$8 sps:$4 sm:$0xff]  }
 0x258   : > { %v2179_v25 = vrot.slane %v1996_v45, 1  ;;  %v1998_v28 = vmax.f32 %v11409_v41, %v6651_v36  ;;  %v1872_v58 = vsel %vm1842_vm7, %v6650_v7, %v6651_v36  ;;  %v11419_v49 = vmax.f32 %v11418_v63, 0.0  ;;  %v7114_v63 = vld [vmem:[%s11134_s4 + $0xc0] ss:$8 sps:$4 sm:$0xff]  }
 0x259   : > { %v2177_v43 = vrot.slane %v1995_v12, 1  ;;  %v1997_v48 = vmax.f32 %v11411_v53, %v1872_v58  ;;  %2485 = vmatpush1.bf16.msra.mxu1 %v2345_v5  ;;  %v7335_v44 = vmov 65535   ;;  %v7057_v58 = vld [vmem:[%s11133_s3] ss:$8 sps:$4 sm:$0xff]  }
 0x25a   : > { %v2180_v55 = vsel %vm506_vm0, %v2175_v29, %v2179_v25  ;;  %v2183_v23 = vrot.slane %v1998_v28, 1  ;;  %v2452_v2 = vsel %vm826_vm1, 4294967295, %v7335_v44  ;;  %v7065_v53 = vld [vmem:[%s11133_s3 + $0x20] ss:$8 sps:$4 sm:$0xff]  }
 0x25b   : > { %v6654_v16 = vpop.permute.xlu0 %6653  ;;  %v2312_v46 = vmax.f32 %v1994_v56, %v2180_v55  ;;  %v2178_v19 = vsel %vm506_vm0, %v2173_v3, %v2177_v43  ;;  %v2181_v21 = vrot.slane %v1997_v48, 1  ;;  %v7068_v55 = vld [vmem:[%s11133_s3 + $0x30] ss:$8 sps:$4 sm:$0xff]  }
 0x25c   : > { %v6656_v38 = vunpack.i.h.bf16 %v6654_v16  ;;  %v6655_v0 = vunpack.i.l.bf16 %v6654_v16  ;;  %v2311_v8 = vmax.f32 %v1993_v33, %v2178_v19  ;;  %v2184_v6 = vsel %vm506_vm0, %v2179_v25, %v2183_v23  ;;  %v7071_v16 = vld [vmem:[%s11133_s3 + $0x40] ss:$8 sps:$4 sm:$0xff]   ;;  %v7075_v19 = vld [vmem:[%s11133_s3 + $0x64] ss:$8 sps:$4 sm:$0xff]  }
 0x25d   : > { %v6659_v59 = vpop.permute.xlu1 %6658  ;;  %v2348_v47 = vpack.c.bf16 %v2312_v46, %v2310_v14  ;;  %v2182_v34 = vsel %vm506_vm0, %v2177_v43, %v2181_v21  ;;  %v2314_v3 = vmax.f32 %v1996_v45, %v2184_v6  ;;  %v8609_v25 = vsel %vm666_vm2, %v2452_v2, 0  ;;  %v7062_v43 = vld [vmem:[%s11133_s3 + $0x10] ss:$8 sps:$4 sm:$0xff]   ;;  %v7072_v14 = vld [vmem:[%s11133_s3 + $0x54] ss:$8 sps:$4 sm:$0xff]  }
 0x25e   : > { %v2000_v37 = vmax.f32 %v11413_v20, %v6656_v38  ;;  %v1873_v42 = vsel %vm1842_vm7, %v6655_v0, %v6656_v38  ;;  %v6661_v62 = vunpack.i.h.bf16 %v6659_v59  ;;  %v6660_v9 = vunpack.i.l.bf16 %v6659_v59  ;;  %11420 = vst [vmem:[#allocation3_spill] sm:$0xff] %v8609_v25  ;;  %v7074_v46 = vld [vmem:[%s11133_s3 + $0x50] ss:$8 sps:$4 sm:$0xff]   ;;  %v7078_v38 = vld [vmem:[%s11134_s4] ss:$8 sps:$4 sm:$0xff]  }
 0x25f   : > { %v1999_v56 = vmax.f32 %v11415_v18, %v1873_v42  ;;  %2486 = vmatprep.subr.bf16.mxu1 %v2348_v47  ;;  %v2347_v24 = vpack.c.bf16 %v2311_v8, %v2309_v15  ;;  %v2313_v11 = vmax.f32 %v1995_v12, %v2182_v34  ;;  %v7080_v0 = vld [vmem:[%s11134_s4 + $0x4] ss:$8 sps:$4 sm:$0xff]   ;;  %v7081_v8 = vld [vmem:[%s11134_s4 + $0x10] ss:$8 sps:$4 sm:$0xff]   ;;  %v7084_v59 = vld [vmem:[%s11134_s4 + $0x20] ss:$8 sps:$4 sm:$0xff]  }
 0x260   : > { %v2187_v26 = vrot.slane %v2000_v37, 1  ;;  %v2002_v39 = vmax.f32 %v11417_v61, %v6661_v62  ;;  %v1874_v33 = vsel %vm1842_vm7, %v6660_v9, %v6661_v62  ;;  %v7086_v47 = vld [vmem:[%s11134_s4 + $0x24] ss:$8 sps:$4 sm:$0xff]   ;;  %v7087_v15 = vld [vmem:[%s11134_s4 + $0x30] ss:$8 sps:$4 sm:$0xff]  }
 0x261   : > { %v2185_v10 = vrot.slane %v1999_v56, 1  ;;  %v2001_v30 = vmax.f32 %v11419_v49, %v1874_v33  ;;  %2487 = vmatpush1.bf16.msra.mxu1 %v2347_v24  ;;  %v7090_v20 = vld [vmem:[%s11134_s4 + $0x40] ss:$8 sps:$4 sm:$0xff]   ;;  %v7093_v42 = vld [vmem:[%s11134_s4 + $0x50] ss:$8 sps:$4 sm:$0xff]  }
 0x262   : > { %v2191_v4 = vrot.slane %v2002_v39, 1  ;;  %v2188_v29 = vsel %vm506_vm0, %v2183_v23, %v2187_v26  ;;  %v7077_v23 = vld [vmem:[%s11133_s3 + $0x60] ss:$8 sps:$4 sm:$0xff]   ;;  %v7095_v62 = vld [vmem:[%s11134_s4 + $0x54] ss:$8 sps:$4 sm:$0xff]  }
 0x263   : > { %v2189_v31 = vrot.slane %v2001_v30, 1  ;;  %v2316_v50 = vmax.f32 %v1998_v28, %v2188_v29  ;;  %v2186_v22 = vsel %vm506_vm0, %v2181_v21, %v2185_v10  ;;  %v7083_v21 = vld [vmem:[%s11134_s4 + $0x14] ss:$8 sps:$4 sm:$0xff]   ;;  %v7096_v9 = vld [vmem:[%s11134_s4 + $0x60] ss:$8 sps:$4 sm:$0xff]  }
 0x264   : > { %v2320_v52 = vmax.f32 %v2002_v39, %v2191_v4  ;;  %v2315_v1 = vmax.f32 %v1997_v48, %v2186_v22  ;;  %v2192_v54 = vsel %vm506_vm0, %v2187_v26, %v2191_v4  ;;  %v7066_v48 = vld [vmem:[%s11133_s3 + $0x34] ss:$8 sps:$4 sm:$0xff]   ;;  %v7099_v18 = vld [vmem:[%s11134_s4 + $0x70] ss:$8 sps:$4 sm:$0xff]   ;;  %v7102_v24 = vld [vmem:[%s11134_s4 + $0x80] ss:$8 sps:$4 sm:$0xff]  }
 0x265   : > { %v2350_v36 = vpack.c.bf16 %v2316_v50, %v2314_v3  ;;  %v2318_v7 = vmax.f32 %v2000_v37, %v2192_v54  ;;  %v2190_v27 = vsel %vm506_vm0, %v2185_v10, %v2189_v31  ;;  %v2319_v32 = vmax.f32 %v2001_v30, %v2189_v31  ;;  %v7092_v37 = vld [vmem:[%s11134_s4 + $0x44] ss:$8 sps:$4 sm:$0xff]   ;;  %v7107_v61 = vld [vmem:[%s11134_s4 + $0x94] ss:$8 sps:$4 sm:$0xff]   ;;  %v7108_v39 = vld [vmem:[%s11134_s4 + $0xa0] ss:$8 sps:$4 sm:$0xff]  }
 0x266   : > { %v2349_v5 = vpack.c.bf16 %v2315_v1, %v2313_v11  ;;  %v2317_v60 = vmax.f32 %v1999_v56, %v2190_v27  ;;  %v7101_v56 = vld [vmem:[%s11134_s4 + $0x74] ss:$8 sps:$4 sm:$0xff]   ;;  %v7104_v26 = vld [vmem:[%s11134_s4 + $0x84] ss:$8 sps:$4 sm:$0xff]   ;;  %v7111_v6 = vld [vmem:[%s11134_s4 + $0xb0] ss:$8 sps:$4 sm:$0xff]  }
 0x267   : > { %2488 = vmatprep.subr.bf16.mxu1 %v2350_v36  ;;  %v2352_v45 = vpack.c.bf16 %v2320_v52, %v2318_v7  ;;  %v7110_v33 = vld [vmem:[%s11134_s4 + $0xa4] ss:$8 sps:$4 sm:$0xff]   ;;  %v7113_v10 = vld [vmem:[%s11134_s4 + $0xb4] ss:$8 sps:$4 sm:$0xff]   ;;  %v7117_v30 = vld [vmem:[%s11134_s4 + $0xd0] ss:$8 sps:$4 sm:$0xff]  }
 0x268   : > { %2489 = vmatpush1.bf16.msra.mxu1 %v2349_v5  ;;  %v2351_v41 = vpack.c.bf16 %v2319_v32, %v2317_v60  ;;  %v7116_v49 = vld [vmem:[%s11134_s4 + $0xc4] ss:$8 sps:$4 sm:$0xff]   ;;  %v7119_v34 = vld [vmem:[%s11134_s4 + $0xd4] ss:$8 sps:$4 sm:$0xff]   ;;  %v7120_v4 = vld [vmem:[%s11134_s4 + $0xe0] ss:$8 sps:$4 sm:$0xff]  }
 0x269   : > { %v2458_v28 = vand.u32 %v8609_v25, %v2352_v45  ;;  %v7122_v29 = vld [vmem:[%s11134_s4 + $0xe4] ss:$8 sps:$4 sm:$0xff]  }
 0x26a   : > { %v2455_v12 = vand.u32 %v8609_v25, %v2351_v41 }
 0x26b   : > { %2490 = vmatprep.subr.bf16.mxu1 %v2458_v28 }
 0x26c   : > { %2491 = vmatpush1.bf16.msra.mxu1 %v2455_v12 }
 0x26d   : > { %3972 = vmatprep.subr.bf16.mxu1 %v7080_v0 }
 0x26f   : > { %2493 = vmatmul.mubr.bf16.vlgmr.msra.gmra.mrb[0].mxu1 %v7057_v58  ;;  %v7123_v58 = vld [vmem:[%s11134_s4 + $0xf0] ss:$8 sps:$4 sm:$0xff]  }
 0x270   : > { %5833 = vmatprep.mubr.msk.bf16.mxu1 %vm2430_vm8, %v7060_v57  ;;  %3973 = vmatpush1.bf16.msra.mxu1 %v7078_v38  ;;  %v7128_v38 = vld [vmem:[%s11134_s4 + $0x104] ss:$8 sps:$4 sm:$0xff]  }
 0x271   : > { %3974 = vmatprep.subr.bf16.mxu1 %v7083_v21 }
 0x274   : > { %3975 = vmatpush1.bf16.msra.mxu1 %v7081_v8 }
 0x275   : > { %3976 = vmatprep.subr.bf16.mxu1 %v7086_v47 }
 0x277   : > { %2503 = vmatmul.mubr.bf16.gmra.mrb[4].mxu1 %v7062_v43 }
 0x278   : > { %5834 = vmatprep.mubr.msk.bf16.mxu1 %vm2430_vm8, %v7063_v17  ;;  %3977 = vmatpush1.bf16.msra.mxu1 %v7084_v59 }
 0x279   : > { %3978 = vmatprep.subr.bf16.mxu1 %v7089_v35 }
 0x27c   : > { %3979 = vmatpush1.bf16.msra.mxu1 %v7087_v15 }
 0x27d   : > { %3980 = vmatprep.subr.bf16.mxu1 %v7092_v37 }
 0x27f   : > { %2513 = vmatmul.mubr.bf16.gmra.mrb[8].mxu1 %v7065_v53 }
 0x280   : > { %5835 = vmatprep.mubr.msk.bf16.mxu1 %vm2430_vm8, %v7066_v48  ;;  %3981 = vmatpush1.bf16.msra.mxu1 %v7090_v20  ;;  %v7125_v48 = vld [vmem:[%s11134_s4 + $0xf4] ss:$8 sps:$4 sm:$0xff]  }
 0x281   : > { %3982 = vmatprep.subr.bf16.mxu1 %v7095_v62 }
 0x284   : > { %3983 = vmatpush1.bf16.msra.mxu1 %v7093_v42 }
 0x285   : > { %3984 = vmatprep.subr.bf16.mxu1 %v7098_v40 }
 0x287   : > { %2523 = vmatmul.mubr.bf16.gmra.mrb[12].mxu1 %v7068_v55 }
 0x288   : > { %5836 = vmatprep.mubr.msk.bf16.mxu1 %vm2430_vm8, %v7069_v13  ;;  %3985 = vmatpush1.bf16.msra.mxu1 %v7096_v9 }
 0x289   : > { %3986 = vmatprep.subr.bf16.mxu1 %v7101_v56 }
 0x28c   : > { %3987 = vmatpush1.bf16.msra.mxu1 %v7099_v18 }
 0x28d   : > { %3988 = vmatprep.subr.bf16.mxu1 %v7104_v26 }
 0x28f   : > { %2533 = vmatmul.mubr.bf16.gmra.mrb[16].mxu1 %v7071_v16 }
 0x290   : > { %5837 = vmatprep.mubr.msk.bf16.mxu1 %vm2430_vm8, %v7072_v14  ;;  %3989 = vmatpush1.bf16.msra.mxu1 %v7102_v24 }
 0x291   : > { %3990 = vmatprep.subr.bf16.mxu1 %v7107_v61 }
 0x294   : > { %3991 = vmatpush1.bf16.msra.mxu1 %v7105_v51 }
 0x295   : > { %3992 = vmatprep.subr.bf16.mxu1 %v7110_v33 }
 0x297   : > { %2543 = vmatmul.mubr.bf16.gmra.mrb[20].mxu1 %v7074_v46 }
 0x298   : > { %5838 = vmatprep.mubr.msk.bf16.mxu1 %vm2430_vm8, %v7075_v19  ;;  %3993 = vmatpush1.bf16.msra.mxu1 %v7108_v39 }
 0x299   : > { %3994 = vmatprep.subr.bf16.mxu1 %v7113_v10 }
 0x29c   : > { %3995 = vmatpush1.bf16.msra.mxu1 %v7111_v6 }
 0x29d   : > { %3996 = vmatprep.subr.bf16.mxu1 %v7116_v49 }
 0x29f   : > { %2553 = vmatmul.mubr.bf16.gmra.mrb[24].mxu1 %v7077_v23 }
 0x2a0   : > { %3997 = vmatpush1.bf16.msra.mxu1 %v7114_v63 }
 0x2a1   : > { %3998 = vmatprep.subr.bf16.mxu1 %v7119_v34 }
 0x2a4   : > { %3999 = vmatpush1.bf16.msra.mxu1 %v7117_v30 }
 0x2a5   : > { %4000 = vmatprep.subr.bf16.mxu1 %v7122_v29 }
 0x2a8   : > { %4001 = vmatpush1.bf16.msra.mxu1 %v7120_v4 }
 0x2a9   : > { %4002 = vmatprep.subr.bf16.mxu1 %v7125_v48 }
 0x2ac   : > { %4003 = vmatpush1.bf16.msra.mxu1 %v7123_v58 }
 0x2ad   : > { %4075 = vmatprep.subr.bf16.mxu1 %v7128_v38 }
 0x342   : > { %v8748_v44 = vpop.f32.mrb[0].mxu1 }
 0x343   : > { %11421 = vst [vmem:[#allocation5_spill] sm:$0xff] %v8748_v44  ;;  %v2591_v2 = vrot.slane %v8748_v44, 1  ;;  %v2744_v31 = vrot.slane %v8748_v44, 2  ;;  %v2897_v3 = vrot.slane %v8748_v44, 3  ;;  %v3064_v50 = vrot.slane %v8748_v44, 4  ;;  %v8754_v22 = vpop.f32.mrb[1].mxu1 }
 0x344   : > { %11422 = vst [vmem:[#allocation4_spill] sm:$0xff] %v8754_v22  ;;  %v2594_v52 = vrot.slane %v8754_v22, 1  ;;  %v2747_v11 = vrot.slane %v8754_v22, 2  ;;  %v2900_v1 = vrot.slane %v8754_v22, 3  ;;  %v3067_v54 = vrot.slane %v8754_v22, 4  ;;  %v8760_v36 = vpop.f32.mrb[2].mxu1 }
 0x345   : > { %11423 = vst [vmem:[#allocation7_spill] sm:$0xff] %v8760_v36  ;;  %v2592_v7 = vrot.slane %v8760_v36, 1  ;;  %v2745_v27 = vrot.slane %v8760_v36, 2  ;;  %v2898_v32 = vrot.slane %v8760_v36, 3  ;;  %v11237_v5 = vrot.slane %v8760_v36, 4  ;;  %v8766_v60 = vpop.f32.mrb[3].mxu1 }
 0x346   : > { %v2595_v41 = vrot.slane %v8766_v60, 1  ;;  %v2748_v28 = vrot.slane %v8766_v60, 2  ;;  %v2901_v12 = vrot.slane %v8766_v60, 3  ;;  %v11235_v57 = vrot.slane %v8766_v60, 4 }
 0x347   : > { %v2593_v43 = vsel %vm506_vm0, %v2591_v2, %v2592_v7  ;;  %v8779_v17 = vsel %vm666_vm2, %v2744_v31, %v2745_v27  ;;  %v8782_v53 = vsel %vm826_vm1, %v2897_v3, %v2898_v32  ;;  %v8799_v14 = vsel %vm986_vm4, %v3064_v50, %v11237_v5 }
 0x348   : > { %v8788_v55 = vsel %vm666_vm2, %v2747_v11, %v2748_v28  ;;  %v8791_v13 = vsel %vm506_vm0, %v2594_v52, %v2595_v41  ;;  %v8794_v16 = vsel %vm826_vm1, %v2900_v1, %v2901_v12  ;;  %11425 = vst [vmem:[#allocation9_spill] sm:$0xff] %v8799_v14  ;;  %v8806_v19 = vsel %vm986_vm4, %v3067_v54, %v11235_v57 }
 0x349   : > { %11424 = vst [vmem:[#allocation6_spill] sm:$0xff] %v8794_v16 }
 0x34a   : > { %v8808_v23 = vpop.f32.mrb[4].mxu1 }
 0x34b   : > { %v2597_v0 = vrot.slane %v8808_v23, 1  ;;  %v2750_v8 = vrot.slane %v8808_v23, 2  ;;  %v8815_v21 = vpop.f32.mrb[5].mxu1  ;;  %v2903_v59 = vrot.slane %v8808_v23, 3  ;;  %v11243_v20 = vrot.slane %v8808_v23, 4 }
 0x34c   : > { %v2599_v47 = vrot.slane %v8815_v21, 1  ;;  %v2752_v15 = vrot.slane %v8815_v21, 2  ;;  %v8820_v35 = vpop.f32.mrb[6].mxu1  ;;  %v11236_v37 = vrot.slane %v8815_v21, 3 }
 0x34d   : > { %v2601_v42 = vrot.slane %v8820_v35, 1  ;;  %v2754_v62 = vrot.slane %v8820_v35, 2  ;;  %v8826_v9 = vpop.f32.mrb[7].mxu1  ;;  %v2907_v18 = vrot.slane %v8820_v35, 3  ;;  %v2598_v26 = vsel %vm506_vm0, %v2592_v7, %v2597_v0 }
 0x34e   : > { %v2603_v56 = vrot.slane %v8826_v9, 1  ;;  %v2756_v24 = vrot.slane %v8826_v9, 2  ;;  %v8835_v61 = vsel %vm666_vm2, %v2745_v27, %v2750_v8  ;;  %v8838_v39 = vsel %vm666_vm2, %v2748_v28, %v2752_v15 }
 0x34f   : > { %v2602_v51 = vsel %vm506_vm0, %v2597_v0, %v2601_v42  ;;  %v6662_v33 = vpack.i.bf16 %v2598_v26, %v2593_v43  ;;  %v8843_v10 = vsel %vm506_vm0, %v2595_v41, %v2599_v47  ;;  %v8846_v63 = vsel %vm826_vm1, %v2898_v32, %v2903_v59 }
 0x350   : > { %v8853_v34 = vsel %vm666_vm2, %v2750_v8, %v2754_v62  ;;  %v8856_v4 = vsel %vm666_vm2, %v2752_v15, %v2756_v24  ;;  %v8864_v31 = vsel %vm506_vm0, %v2599_v47, %v2603_v56  ;;  %v8867_v3 = vsel %vm826_vm1, %v2903_v59, %v2907_v18 }
 0x351   : > { %6663 = vrot.lane.b32.xlu0 %v6662_v33, %s7336_s29  ;;  %11426 = vst [vmem:[#allocation8_spill] sm:$0xff] %v8864_v31  ;;  %11427 = vst [vmem:[#allocation11_spill] sm:$0xff] %v8867_v3  ;;  %v8872_v50 = vsel %vm826_vm1, %v2901_v12, %v11236_v37 }
 0x352   : > { %v8859_v29 = vpop.f32.mrb[8].mxu1  ;;  %11428 = vst [vmem:[#allocation10_spill] sm:$0xff] %v8872_v50 }
 0x353   : > { %v2605_v1 = vrot.slane %v8859_v29, 1  ;;  %v2758_v54 = vrot.slane %v8859_v29, 2  ;;  %v8878_v7 = vpop.f32.mrb[9].mxu1  ;;  %v2911_v32 = vrot.slane %v8859_v29, 3 }
 0x354   : > { %v2607_v41 = vrot.slane %v8878_v7, 1  ;;  %v2760_v28 = vrot.slane %v8878_v7, 2  ;;  %v8884_v12 = vpop.f32.mrb[10].mxu1 }
 0x355   : > { %v2606_v43 = vsel %vm506_vm0, %v2601_v42, %v2605_v1  ;;  %v2609_v48 = vrot.slane %v8884_v12, 1  ;;  %v2762_v38 = vrot.slane %v8884_v12, 2  ;;  %v8890_v0 = vpop.f32.mrb[11].mxu1  ;;  %v2915_v59 = vrot.slane %v8884_v12, 3 }
 0x356   : > { %11429 = vst [vmem:[#allocation13_spill] sm:$0xff] %v8890_v0  ;;  %v6667_v8 = vpack.i.bf16 %v2606_v43, %v2602_v51  ;;  %v2611_v47 = vrot.slane %v8890_v0, 1  ;;  %v2764_v15 = vrot.slane %v8890_v0, 2  ;;  %v8899_v42 = vsel %vm666_vm2, %v2754_v62, %v2758_v54 }
 0x357   : > { %v2610_v45 = vsel %vm506_vm0, %v2605_v1, %v2609_v48  ;;  %v8903_v27 = vsel %vm666_vm2, %v2756_v24, %v2760_v28  ;;  %v8906_v51 = vsel %vm506_vm0, %v2603_v56, %v2607_v41  ;;  %v8909_v43 = vsel %vm826_vm1, %v2907_v18, %v2911_v32 }
 0x358   : > { %6668 = vrot.lane.b32.xlu1 %v6667_v8, %s7336_s29  ;;  %11430 = vst [vmem:[#allocation12_spill] sm:$0xff] %v8909_v43  ;;  %v8912_v57 = vsel %vm666_vm2, %v2758_v54, %v2762_v38  ;;  %v8921_v24 = vsel %vm666_vm2, %v2760_v28, %v2764_v15  ;;  %v8928_v54 = vsel %vm506_vm0, %v2607_v41, %v2611_v47 }
 0x359   : > { %11431 = vst [vmem:[#allocation15_spill] sm:$0xff] %v8912_v57  ;;  %11432 = vst [vmem:[#allocation14_spill] sm:$0xff] %v8921_v24  ;;  %v8931_v33 = vsel %vm826_vm1, %v2911_v32, %v2915_v59 }
 0x35a   : > { %v8923_v56 = vpop.f32.mrb[12].mxu1  ;;  %11433 = vst [vmem:[#allocation17_spill] sm:$0xff] %v8928_v54  ;;  %11434 = vst [vmem:[#allocation16_spill] sm:$0xff] %v8931_v33 }
 0x35b   : > { %v2613_v28 = vrot.slane %v8923_v56, 1  ;;  %v2766_v40 = vrot.slane %v8923_v56, 2  ;;  %v8939_v2 = vpop.f32.mrb[13].mxu1  ;;  %v2919_v41 = vrot.slane %v8923_v56, 3 }
 0x35c   : > { %v2615_v32 = vrot.slane %v8939_v2, 1  ;;  %v2768_v30 = vrot.slane %v8939_v2, 2  ;;  %v8945_v49 = vpop.f32.mrb[14].mxu1 }
 0x35d   : > { %v2614_v6 = vsel %vm506_vm0, %v2609_v48, %v2613_v28  ;;  %v2617_v1 = vrot.slane %v8945_v49, 1  ;;  %v2770_v8 = vrot.slane %v8945_v49, 2  ;;  %v8951_v58 = vpop.f32.mrb[15].mxu1  ;;  %v2923_v18 = vrot.slane %v8945_v49, 3 }
 0x35e   : > { %11435 = vst [vmem:[#allocation19_spill] sm:$0xff] %v8951_v58  ;;  %v6672_v46 = vpack.i.bf16 %v2614_v6, %v2610_v45  ;;  %v2619_v52 = vrot.slane %v8951_v58, 1  ;;  %v2772_v26 = vrot.slane %v8951_v58, 2  ;;  %v8960_v48 = vsel %vm666_vm2, %v2762_v38, %v2766_v40 }
 0x35f   : > { %v2618_v62 = vsel %vm506_vm0, %v2613_v28, %v2617_v1  ;;  %11436 = vst [vmem:[#allocation18_spill] sm:$0xff] %v8960_v48  ;;  %v8964_v5 = vsel %vm666_vm2, %v2764_v15, %v2768_v30  ;;  %v8967_v45 = vsel %vm506_vm0, %v2611_v47, %v2615_v32  ;;  %v8970_v6 = vsel %vm826_vm1, %v2915_v59, %v2919_v41 }
 0x360   : > { %6673 = vrot.lane.b32.xlu0 %v6672_v46, %s7336_s29  ;;  %11437 = vst [vmem:[#allocation21_spill] sm:$0xff] %v8964_v5  ;;  %11438 = vst [vmem:[#allocation20_spill] sm:$0xff] %v8967_v45  ;;  %v8973_v37 = vsel %vm666_vm2, %v2766_v40, %v2770_v8  ;;  %v8982_v15 = vsel %vm666_vm2, %v2768_v30, %v2772_v26  ;;  %v8989_v40 = vsel %vm506_vm0, %v2615_v32, %v2619_v52 }
 0x361   : > { %11439 = vst [vmem:[#allocation23_spill] sm:$0xff] %v8970_v6  ;;  %11440 = vst [vmem:[#allocation22_spill] sm:$0xff] %v8973_v37  ;;  %v8992_v11 = vsel %vm826_vm1, %v2919_v41, %v2923_v18  ;;  %v11444_v38 = vrot.slane %v8760_v36, 4 }
 0x362   : > { %11441 = vst [vmem:[#allocation25_spill] sm:$0xff] %v8982_v15  ;;  %v8984_v47 = vpop.f32.mrb[16].mxu1  ;;  %11442 = vst [vmem:[#allocation24_spill] sm:$0xff] %v8989_v40 }
 0x363   : > { %11443 = vst [vmem:[#allocation26_spill] sm:$0xff] %v8992_v11  ;;  %v8999_v46 = vsel %vm986_vm4, %v11444_v38, %v11243_v20  ;;  %v2621_v25 = vrot.slane %v8984_v47, 1  ;;  %v2774_v59 = vrot.slane %v8984_v47, 2  ;;  %v9005_v32 = vpop.f32.mrb[17].mxu1  ;;  %v2927_v44 = vrot.slane %v8984_v47, 3 }
 0x364   : > { %11445 = vst [vmem:[#allocation27_spill] sm:$0xff] %v8999_v46  ;;  %v2623_v22 = vrot.slane %v9005_v32, 1  ;;  %v2776_v36 = vrot.slane %v9005_v32, 2  ;;  %v9011_v38 = vpop.f32.mrb[18].mxu1 }
 0x365   : > { %v2622_v28 = vsel %vm506_vm0, %v2617_v1, %v2621_v25  ;;  %v2625_v20 = vrot.slane %v9011_v38, 1  ;;  %v2778_v16 = vrot.slane %v9011_v38, 2  ;;  %v9017_v50 = vpop.f32.mrb[19].mxu1  ;;  %v2931_v41 = vrot.slane %v9011_v38, 3 }
 0x366   : > { %11446 = vst [vmem:[#allocation28_spill] sm:$0xff] %v9017_v50  ;;  %v6677_v37 = vpack.i.bf16 %v2622_v28, %v2618_v62  ;;  %v2627_v15 = vrot.slane %v9017_v50, 1  ;;  %v2780_v33 = vrot.slane %v9017_v50, 2  ;;  %v9026_v1 = vsel %vm666_vm2, %v2770_v8, %v2774_v59 }
 0x367   : > { %v2626_v30 = vsel %vm506_vm0, %v2621_v25, %v2625_v20  ;;  %11447 = vst [vmem:[#allocation29_spill] sm:$0xff] %v9026_v1  ;;  %v9030_v45 = vsel %vm666_vm2, %v2772_v26, %v2776_v36  ;;  %v9033_v62 = vsel %vm506_vm0, %v2619_v52, %v2623_v22  ;;  %v9036_v28 = vsel %vm826_vm1, %v2923_v18, %v2927_v44 }
 0x368   : > { %6678 = vrot.lane.b32.xlu1 %v6677_v37, %s7336_s29  ;;  %11448 = vst [vmem:[#allocation30_spill] sm:$0xff] %v9030_v45  ;;  %11449 = vst [vmem:[#allocation31_spill] sm:$0xff] %v9033_v62  ;;  %v9039_v6 = vsel %vm666_vm2, %v2774_v59, %v2778_v16  ;;  %v9048_v26 = vsel %vm666_vm2, %v2776_v36, %v2780_v33  ;;  %v9055_v59 = vsel %vm506_vm0, %v2623_v22, %v2627_v15 }
 0x369   : > { %11450 = vst [vmem:[#allocation32_spill] sm:$0xff] %v9036_v28  ;;  %11451 = vst [vmem:[#allocation33_spill] sm:$0xff] %v9039_v6  ;;  %v9058_v54 = vsel %vm826_vm1, %v2927_v44, %v2931_v41 }
 0x36a   : > { %11452 = vst [vmem:[#allocation34_spill] sm:$0xff] %v9048_v26  ;;  %v9050_v52 = vpop.f32.mrb[20].mxu1  ;;  %11454 = vst [vmem:[#allocation36_spill] sm:$0xff] %v9055_v59 }
 0x36b   : > { %11453 = vst [vmem:[#allocation35_spill] sm:$0xff] %v9050_v52  ;;  %11455 = vst [vmem:[#allocation37_spill] sm:$0xff] %v9058_v54  ;;  %v2629_v36 = vrot.slane %v9050_v52, 1  ;;  %v2782_v11 = vrot.slane %v9050_v52, 2  ;;  %v9066_v28 = vpop.f32.mrb[21].mxu1  ;;  %v2935_v22 = vrot.slane %v9050_v52, 3 }
 0x36c   : > { %v2631_v44 = vrot.slane %v9066_v28, 1  ;;  %v2784_v6 = vrot.slane %v9066_v28, 2  ;;  %v9072_v26 = vpop.f32.mrb[22].mxu1 }
 0x36d   : > { %11456 = vst [vmem:[#allocation38_spill] sm:$0xff] %v9072_v26  ;;  %v2630_v25 = vsel %vm506_vm0, %v2625_v20, %v2629_v36  ;;  %v2633_v37 = vrot.slane %v9072_v26, 1  ;;  %v2786_v14 = vrot.slane %v9072_v26, 2  ;;  %v9078_v46 = vpop.f32.mrb[23].mxu1  ;;  %v2939_v18 = vrot.slane %v9072_v26, 3 }
 0x36e   : > { %11457 = vst [vmem:[#allocation39_spill] sm:$0xff] %v9078_v46  ;;  %v6682_v40 = vpack.i.bf16 %v2630_v25, %v2626_v30  ;;  %v2635_v62 = vrot.slane %v9078_v46, 1  ;;  %v2788_v1 = vrot.slane %v9078_v46, 2  ;;  %v9087_v20 = vsel %vm666_vm2, %v2778_v16, %v2782_v11 }
 0x36f   : > { %v2634_v8 = vsel %vm506_vm0, %v2629_v36, %v2633_v37  ;;  %11458 = vst [vmem:[#allocation40_spill] sm:$0xff] %v9087_v20  ;;  %v9091_v5 = vsel %vm666_vm2, %v2780_v33, %v2784_v6  ;;  %v9094_v30 = vsel %vm506_vm0, %v2627_v15, %v2631_v44  ;;  %v9097_v25 = vsel %vm826_vm1, %v2931_v41, %v2935_v22 }
 0x370   : > { %6683 = vrot.lane.b32.xlu0 %v6682_v40, %s7336_s29  ;;  %11459 = vst [vmem:[#allocation41_spill] sm:$0xff] %v9091_v5  ;;  %11460 = vst [vmem:[#allocation42_spill] sm:$0xff] %v9094_v30  ;;  %v9100_v45 = vsel %vm666_vm2, %v2782_v11, %v2786_v14  ;;  %v9109_v33 = vsel %vm666_vm2, %v2784_v6, %v2788_v1  ;;  %v9116_v11 = vsel %vm506_vm0, %v2631_v44, %v2635_v62 }
 0x371   : > { %11461 = vst [vmem:[#allocation43_spill] sm:$0xff] %v9097_v25  ;;  %11462 = vst [vmem:[#allocation44_spill] sm:$0xff] %v9100_v45  ;;  %v9119_v48 = vsel %vm826_vm1, %v2935_v22, %v2939_v18  ;;  %v11466_v36 = vrot.slane %v8826_v9, 3  ;;  %v11467_v16 = vrot.slane %v8815_v21, 3 }
 0x372   : > { %11463 = vst [vmem:[#allocation45_spill] sm:$0xff] %v9109_v33  ;;  %v9111_v15 = vpop.f32.mrb[24].mxu1  ;;  %11465 = vst [vmem:[#allocation47_spill] sm:$0xff] %v9116_v11  ;;  %v11472_v11 = vrot.slane %v8826_v9, 3 }
 0x373   : > { %11464 = vst [vmem:[#allocation46_spill] sm:$0xff] %v9111_v15  ;;  %v9126_v40 = vsel %vm826_vm1, %v11467_v16, %v11466_v36  ;;  %v2637_v25 = vrot.slane %v9111_v15, 1  ;;  %v2790_v41 = vrot.slane %v9111_v15, 2  ;;  %v9132_v44 = vpop.f32.mrb[25].mxu1  ;;  %v2943_v45 = vrot.slane %v9111_v15, 3 }
 0x374   : > { %11468 = vst [vmem:[#allocation48_spill] sm:$0xff] %v9132_v44  ;;  %v2639_v33 = vrot.slane %v9132_v44, 1  ;;  %v2792_v59 = vrot.slane %v9132_v44, 2  ;;  %v9138_v36 = vpop.f32.mrb[26].mxu1 }
 0x375   : > { %v2794_v54 = vrot.slane %v9138_v36, 2  ;;  %v2638_v30 = vsel %vm506_vm0, %v2633_v37, %v2637_v25  ;;  %v9144_v20 = vpop.f32.mrb[27].mxu1  ;;  %v2947_v22 = vrot.slane %v9138_v36, 3  ;;  %v2641_v43 = vrot.slane %v9138_v36, 1 }
 0x376   : > { %11469 = vst [vmem:[#allocation49_spill] sm:$0xff] %v9144_v20  ;;  %v6687_v5 = vpack.i.bf16 %v2638_v30, %v2634_v8  ;;  %v2643_v57 = vrot.slane %v9144_v20, 1  ;;  %v2796_v24 = vrot.slane %v9144_v20, 2  ;;  %v9152_v16 = vsel %vm666_vm2, %v2786_v14, %v2790_v41 }
 0x377   : > { %11470 = vst [vmem:[#allocation50_spill] sm:$0xff] %v9152_v16  ;;  %v9155_v6 = vsel %vm666_vm2, %v2788_v1, %v2792_v59  ;;  %v9161_v8 = vsel %vm506_vm0, %v2635_v62, %v2639_v33  ;;  %v9164_v30 = vsel %vm826_vm1, %v2939_v18, %v2943_v45  ;;  %v9167_v3 = vsel %vm666_vm2, %v2790_v41, %v2794_v54 }
 0x378   : > { %6688 = vrot.lane.b32.xlu1 %v6687_v5, %s7336_s29  ;;  %v2642_v14 = vsel %vm506_vm0, %v2637_v25, %v2641_v43  ;;  %v9175_v31 = vsel %vm666_vm2, %v2792_v59, %v2796_v24  ;;  %v9179_v18 = vpack.i.bf16 %v2796_v24, %v2794_v54  ;;  %v2644_v41 = vsel %vm506_vm0, %v2639_v33, %v2643_v57 }
 0x379   : > { %v6697_v37 = vpack.i.bf16 %v2641_v43, %v2642_v14  ;;  %v9182_v16 = vpack.i.bf16 %v2643_v57, %v2644_v41  ;;  %v2948_v25 = vsel %vm826_vm1, %v2943_v45, %v2947_v22  ;;  %v11471_v1 = vrot.slane %v8878_v7, 3 }
 0x37a   : > { %v11473_v43 = vrot.slane %v8820_v35, 4  ;;  %v11474_v59 = vrot.slane %v8808_v23, 4  ;;  %v2949_v54 = vrot.slane %v9144_v20, 3  ;;  %v11475_v57 = vpack.i.bf16 %v8788_v55, %v8779_v17 }
 0x37b   : > { %v9190_v5 = vsel %vm826_vm1, %v11472_v11, %v11471_v1  ;;  %6698 = vrot.lane.b32.xlu0 %v6697_v37, %s7336_s29  ;;  %v9205_v45 = vpack.i.bf16 %v2947_v22, %v2948_v25  ;;  %v11476_v11 = vrot.slane %v8859_v29, 4  ;;  %v11478_v41 = vrot.slane %v8890_v0, 3 }
 0x37c   : > { %v9197_v24 = vsel %vm986_vm4, %v11474_v59, %v11473_v43  ;;  %6693 = vrot.lane.b32.xlu1 %v11475_v57, %s7337_s27  ;;  %v11477_v14 = vmov %v11473_v43  ;;  %v11479_v17 = vrot.slane %v8878_v7, 3  ;;  %v11481_v22 = vrot.slane %v8939_v2, 3 }
 0x37d   : > { %v9214_v1 = vsel %vm986_vm4, %v11477_v14, %v11476_v11  ;;  %v11482_v25 = vmov %v11478_v41  ;;  %v11484_v59 = vrot.slane %v8884_v12, 4  ;;  %v11485_v57 = vmov %v11476_v11 }
 0x37e   : > { %v9223_v55 = vsel %vm826_vm1, %v11479_v17, %v11478_v41  ;;  %v9230_v43 = vsel %vm826_vm1, %v11482_v25, %v11481_v22  ;;  %v11486_v41 = vrot.slane %v8923_v56, 4  ;;  %v11488_v22 = vrot.slane %v8951_v58, 3 }
 0x37f   : > { %11480 = vst [vmem:[#allocation51_spill] sm:$0xff] %v9223_v55  ;;  %11483 = vst [vmem:[#allocation52_spill] sm:$0xff] %v9230_v43  ;;  %v9237_v11 = vsel %vm986_vm4, %v11485_v57, %v11484_v59  ;;  %v11487_v17 = vmov %v11484_v59  ;;  %v11489_v25 = vrot.slane %v8939_v2, 3  ;;  %v11491_v59 = vrot.slane %v9005_v32, 3 }
 0x380   : > { %v9246_v37 = vsel %vm986_vm4, %v11487_v17, %v11486_v41  ;;  %v11492_v57 = vmov %v11488_v22  ;;  %v11494_v17 = vrot.slane %v8945_v49, 4  ;;  %v11495_v55 = vmov %v11486_v41 }
 0x381   : > { %v9253_v33 = vsel %vm826_vm1, %v11489_v25, %v11488_v22  ;;  %v9260_v14 = vsel %vm826_vm1, %v11492_v57, %v11491_v59  ;;  %v11497_v25 = vrot.slane %v8984_v47, 4  ;;  %v3112_v57 = vrot.slane %v9132_v44, 4 }
 0x382   : > { %11490 = vst [vmem:[#allocation53_spill] sm:$0xff] %v9253_v33  ;;  %11493 = vst [vmem:[#allocation54_spill] sm:$0xff] %v9260_v14  ;;  %v9271_v22 = vsel %vm986_vm4, %v11495_v55, %v11494_v17  ;;  %v11498_v43 = vmov %v11494_v17  ;;  %v11500_v41 = vpack.i.bf16 %v8838_v39, %v8835_v61  ;;  %v11501_v62 = vpack.i.bf16 %v8843_v10, %v8791_v13 }
 0x383   : > { %11496 = vst [vmem:[#allocation55_spill] sm:$0xff] %v9271_v22  ;;  %v9278_v59 = vsel %vm986_vm4, %v11498_v43, %v11497_v25  ;;  %v11502_v17 = vrot.slane %v9017_v50, 3  ;;  %v11503_v43 = vrot.slane %v9005_v32, 3  ;;  %v11505_v33 = vrot.slane %v9066_v28, 3 }
 0x384   : > { %11499 = vst [vmem:[#allocation56_spill] sm:$0xff] %v9278_v59  ;;  %6703 = vrot.lane.b32.xlu0 %v11500_v41, %s7337_s27  ;;  %6708 = vrot.lane.b32.xlu1 %v11501_v62, %s7336_s29  ;;  %v11508_v10 = vrot.slane %v9011_v38, 4  ;;  %v11509_v62 = vrot.slane %v8984_v47, 4  ;;  %v3116_v14 = vrot.slane %v9144_v20, 4  ;;  %vm5370_vm2 = vcmask 654336  }
 0x385   : > { %v9296_v25 = vsel %vm826_vm1, %v11503_v43, %v11502_v17  ;;  %v11506_v61 = vmov %v11502_v17  ;;  %v11511_v17 = vrot.slane %v9050_v52, 4 }
 0x386   : > { %11504 = vst [vmem:[#allocation57_spill] sm:$0xff] %v9296_v25  ;;  %v9303_v39 = vsel %vm826_vm1, %v11506_v61, %v11505_v33  ;;  %v9312_v41 = vsel %vm986_vm4, %v11509_v62, %v11508_v10  ;;  %v11512_v43 = vmov %v11508_v10  ;;  %v11514_v33 = vrot.slane %v9078_v46, 3 }
 0x387   : > { %11507 = vst [vmem:[#allocation58_spill] sm:$0xff] %v9303_v39  ;;  %11510 = vst [vmem:[#allocation59_spill] sm:$0xff] %v9312_v41  ;;  %v9319_v55 = vsel %vm986_vm4, %v11512_v43, %v11511_v17  ;;  %v11515_v61 = vrot.slane %v9066_v28, 3  ;;  %v11516_v10 = vrot.slane %v9132_v44, 3  ;;  %v11518_v17 = vrot.slane %v9072_v26, 4 }
 0x388   : > { %11513 = vst [vmem:[#allocation60_spill] sm:$0xff] %v9319_v55  ;;  %v11517_v62 = vmov %v11514_v33  ;;  %v11519_v43 = vrot.slane %v9050_v52, 4  ;;  %v11562_v52 = vld [vmem:[#allocation17_spill] sm:$0xff] }
 0x389   : > { %v9326_v13 = vsel %vm826_vm1, %v11515_v61, %v11514_v33  ;;  %v9335_v39 = vsel %vm826_vm1, %v11517_v62, %v11516_v10  ;;  %v11520_v33 = vrot.slane %v9111_v15, 4  ;;  %v11521_v61 = vmov %v11518_v17  ;;  %v11565_v15 = vld [vmem:[#allocation16_spill] sm:$0xff] }
 0x38a   : > { %v9342_v22 = vsel %vm986_vm4, %v11519_v43, %v11518_v17  ;;  %v11522_v62 = vmov %v11516_v10  ;;  %v11523_v17 = vrot.slane %v9138_v36, 4 }
 0x38b   : > { %v9349_v25 = vsel %vm986_vm4, %v11521_v61, %v11520_v33  ;;  %v2950_v55 = vsel %vm826_vm1, %v11522_v62, %v2949_v54  ;;  %v11524_v43 = vmov %v11520_v33  ;;  %v11525_v33 = vpack.i.bf16 %v8846_v63, %v8782_v53 }
 0x38c   : > { %v3115_v59 = vsel %vm986_vm4, %v11524_v43, %v11523_v17  ;;  %v11526_v61 = vpack.i.bf16 %v8856_v4, %v8853_v34  ;;  %v9372_v62 = vpack.i.bf16 %v2949_v54, %v2950_v55  ;;  %v11527_v10 = vmov %v11523_v17 }
 0x38d   : > { %6713 = vrot.lane.b32.xlu0 %v11525_v33, %s7338_s30  ;;  %v9376_v41 = vpack.i.bf16 %v11527_v10, %v3115_v59  ;;  %v11528_v17 = vrot.slane %v8815_v21, 4  ;;  %v11529_v43 = vrot.slane %v8766_v60, 4  ;;  %v11530_v34 = vrot.slane %v8826_v9, 4 }
 0x38e   : > { %6718 = vrot.lane.b32.xlu1 %v11526_v61, %s7337_s27  ;;  %v11532_v59 = vrot.slane %v8878_v7, 4  ;;  %v11534_v61 = vrot.slane %v8890_v0, 4 }
 0x38f   : > { %v9383_v20 = vsel %vm986_vm4, %v11529_v43, %v11528_v17  ;;  %v11531_v4 = vmov %v11528_v17  ;;  %v11533_v55 = vmov %v11530_v34 }
 0x390   : > { %v9394_v54 = vsel %vm986_vm4, %v11531_v4, %v11530_v34  ;;  %v9401_v10 = vsel %vm986_vm4, %v11533_v55, %v11532_v59  ;;  %v11535_v17 = vmov %v11532_v59  ;;  %v11536_v34 = vrot.slane %v8939_v2, 4 }
 0x391   : > { %v9410_v43 = vsel %vm986_vm4, %v11535_v17, %v11534_v61  ;;  %v11537_v4 = vmov %v11534_v61  ;;  %v11538_v59 = vrot.slane %v8951_v58, 4  ;;  %v11540_v61 = vrot.slane %v9005_v32, 4 }
 0x392   : > { %v9417_v63 = vsel %vm986_vm4, %v11537_v4, %v11536_v34  ;;  %v11539_v55 = vmov %v11536_v34  ;;  %v11542_v34 = vrot.slane %v9017_v50, 4  ;;  %v11546_v58 = vpack.i.bf16 %v8903_v27, %v8899_v42 }
 0x393   : > { %v9424_v33 = vsel %vm986_vm4, %v11539_v55, %v11538_v59  ;;  %v11541_v17 = vmov %v11538_v59  ;;  %v11543_v4 = vmov %v11540_v61  ;;  %v11544_v59 = vrot.slane %v9066_v28, 4 }
 0x394   : > { %v9433_v44 = vsel %vm986_vm4, %v11541_v17, %v11540_v61  ;;  %v9440_v0 = vsel %vm986_vm4, %v11543_v4, %v11542_v34  ;;  %v11545_v55 = vmov %v11542_v34  ;;  %6723 = vrot.lane.b32.xlu0 %v11546_v58, %s7337_s27  ;;  %v11547_v61 = vld [vmem:[#allocation8_spill] sm:$0xff] }
 0x395   : > { %v9447_v53 = vsel %vm986_vm4, %v11545_v55, %v11544_v59  ;;  %v11548_v17 = vpack.i.bf16 %v8906_v51, %v11547_v61  ;;  %v11549_v55 = vrot.slane %v9078_v46, 4  ;;  %v11550_v50 = vmov %v11544_v59  ;;  %v11555_v61 = vld [vmem:[#allocation14_spill] sm:$0xff]  ;;  %v11556_v46 = vld [vmem:[#allocation15_spill] sm:$0xff] }
 0x396   : > { %v3117_v51 = vsel %vm986_vm4, %v3112_v57, %v3116_v14 }
 0x397   : > { %6728 = vrot.lane.b32.xlu1 %v11548_v17, %s7336_s29  ;;  %v9468_v27 = vsel %vm986_vm4, %v11550_v50, %v11549_v55  ;;  %v11551_v58 = vmov %v11549_v55  ;;  %v9480_v59 = vpack.i.bf16 %v3116_v14, %v3117_v51  ;;  %v11557_v17 = vpack.i.bf16 %v11555_v61, %v11556_v46  ;;  %v11558_v14 = vld [vmem:[#allocation21_spill] sm:$0xff]  ;;  %v11559_v51 = vld [vmem:[#allocation18_spill] sm:$0xff]  ;;  %v11561_v50 = vld [vmem:[#allocation20_spill] sm:$0xff] }
 0x398   : > { %v9473_v42 = vsel %vm986_vm4, %v11551_v58, %v3112_v57  ;;  %v11552_v58 = vld [vmem:[#allocation12_spill] sm:$0xff]  ;;  %v11553_v57 = vld [vmem:[#allocation11_spill] sm:$0xff]  ;;  %v11560_v4 = vpack.i.bf16 %v11558_v14, %v11559_v51  ;;  %v11563_v26 = vpack.i.bf16 %v11561_v50, %v11562_v52  ;;  %v11570_v61 = vld [vmem:[#allocation30_spill] sm:$0xff] }
 0x399   : > { %v11554_v34 = vpack.i.bf16 %v11552_v58, %v11553_v57  ;;  %v11564_v55 = vld [vmem:[#allocation23_spill] sm:$0xff]  ;;  %v11568_v57 = vld [vmem:[#allocation22_spill] sm:$0xff]  ;;  %v11574_v51 = vld [vmem:[#allocation24_spill] sm:$0xff] }
 0x39a   : > { %v11566_v58 = vpack.i.bf16 %v11564_v55, %v11565_v15  ;;  %v11577_v50 = vld [vmem:[#allocation26_spill] sm:$0xff] }
 0x39b   : > { %6733 = vrot.lane.b32.xlu0 %v11554_v34, %s7338_s30  ;;  %6738 = vrot.lane.b32.xlu1 %v11557_v17, %s7337_s27  ;;  %v11567_v34 = vld [vmem:[#allocation25_spill] sm:$0xff]  ;;  %v11579_v55 = vld [vmem:[#allocation34_spill] sm:$0xff] }
 0x39c   : > { %v11569_v46 = vpack.i.bf16 %v11567_v34, %v11568_v57  ;;  %v11571_v17 = vld [vmem:[#allocation29_spill] sm:$0xff] }
 0x39d   : > { %v11572_v14 = vpack.i.bf16 %v11570_v61, %v11571_v17  ;;  %v11582_v57 = vld [vmem:[#allocation41_spill] sm:$0xff]  ;;  %v11585_v17 = vld [vmem:[#allocation42_spill] sm:$0xff] }
 0x39f   : > { %6743 = vrot.lane.b32.xlu0 %v11560_v4, %s7337_s27  ;;  %6748 = vrot.lane.b32.xlu1 %v11563_v26, %s7336_s29  ;;  %v11573_v4 = vld [vmem:[#allocation31_spill] sm:$0xff]  ;;  %v11576_v26 = vld [vmem:[#allocation32_spill] sm:$0xff] }
 0x3a0   : > { %v11575_v52 = vpack.i.bf16 %v11573_v4, %v11574_v51  ;;  %v11578_v15 = vpack.i.bf16 %v11576_v26, %v11577_v50  ;;  %v11588_v51 = vld [vmem:[#allocation43_spill] sm:$0xff]  ;;  %v11591_v50 = vld [vmem:[#allocation45_spill] sm:$0xff] }
 0x3a3   : > { %6753 = vrot.lane.b32.xlu0 %v11566_v58, %s7338_s30  ;;  %6758 = vrot.lane.b32.xlu1 %v11569_v46, %s7337_s27  ;;  %v11580_v58 = vld [vmem:[#allocation33_spill] sm:$0xff]  ;;  %v11583_v46 = vld [vmem:[#allocation40_spill] sm:$0xff] }
 0x3a4   : > { %v11581_v34 = vpack.i.bf16 %v11579_v55, %v11580_v58  ;;  %v11584_v61 = vpack.i.bf16 %v11582_v57, %v11583_v46  ;;  %v11594_v58 = vld [vmem:[#allocation50_spill] sm:$0xff]  ;;  %v11596_v57 = vld [vmem:[#allocation47_spill] sm:$0xff] }
 0x3a5   : > { %v11597_v46 = vpack.i.bf16 %v9161_v8, %v11596_v57  ;;  %v11601_v8 = vld [vmem:[#allocation6_spill] sm:$0xff] }
 0x3a7   : > { %6763 = vrot.lane.b32.xlu0 %v11572_v14, %s7337_s27  ;;  %6768 = vrot.lane.b32.xlu1 %v11575_v52, %s7336_s29  ;;  %v11586_v14 = vld [vmem:[#allocation36_spill] sm:$0xff]  ;;  %v11589_v52 = vld [vmem:[#allocation37_spill] sm:$0xff] }
 0x3a8   : > { %v11587_v4 = vpack.i.bf16 %v11585_v17, %v11586_v14  ;;  %v11590_v26 = vpack.i.bf16 %v11588_v51, %v11589_v52  ;;  %v11599_v17 = vpack.i.bf16 %v9175_v31, %v9167_v3  ;;  %v11606_v3 = vpack.i.bf16 %v9190_v5, %v9126_v40  ;;  %v11612_v52 = vld [vmem:[#allocation54_spill] sm:$0xff] }
 0x3a9   : > { %v11611_v51 = vpack.i.bf16 %v9246_v37, %v9237_v11 }
 0x3ab   : > { %6773 = vrot.lane.b32.xlu0 %v11578_v15, %s7338_s30  ;;  %6778 = vrot.lane.b32.xlu1 %v11581_v34, %s7337_s27  ;;  %v11592_v15 = vld [vmem:[#allocation44_spill] sm:$0xff]  ;;  %v11595_v34 = vpack.i.bf16 %v9155_v6, %v11594_v58  ;;  %v11600_v6 = vld [vmem:[#allocation10_spill] sm:$0xff] }
 0x3ac   : > { %v11593_v55 = vpack.i.bf16 %v11591_v50, %v11592_v15  ;;  %v11602_v14 = vpack.i.bf16 %v11600_v6, %v11601_v8  ;;  %v11618_v15 = vld [vmem:[#allocation58_spill] sm:$0xff] }
 0x3af   : > { %6783 = vrot.lane.b32.xlu0 %v11584_v61, %s7337_s27  ;;  %6788 = vrot.lane.b32.xlu1 %v11587_v4, %s7336_s29  ;;  %v11598_v61 = vpack.i.bf16 %v9164_v30, %v9119_v48  ;;  %v11603_v48 = vld [vmem:[#allocation27_spill] sm:$0xff]  ;;  %v11604_v30 = vld [vmem:[#allocation9_spill] sm:$0xff] }
 0x3b0   : > { %v11605_v31 = vpack.i.bf16 %v11603_v48, %v11604_v30  ;;  %v11625_v48 = vpack.i.bf16 %v9335_v39, %v9326_v13  ;;  %v7131_v30 = vld [vmem:[%s11134_s4 + $0x114] ss:$8 sps:$4 sm:$0xff]   ;;  %v11629_v39 = vpack.i.bf16 %v9349_v25, %v9342_v22  ;;  %v7129_v13 = vld [vmem:[%s11134_s4 + $0x110] ss:$8 sps:$4 sm:$0xff]   ;;  %v7134_v22 = vld [vmem:[%s11134_s4 + $0x124] ss:$8 sps:$4 sm:$0xff]  }
 0x3b3   : > { %6793 = vrot.lane.b32.xlu0 %v11590_v26, %s7338_s30  ;;  %6798 = vrot.lane.b32.xlu1 %v11593_v55, %s7337_s27  ;;  %v11613_v26 = vld [vmem:[#allocation53_spill] sm:$0xff] }
 0x3b4   : > { %v11614_v40 = vpack.i.bf16 %v11612_v52, %v11613_v26  ;;  %v11619_v55 = vld [vmem:[#allocation57_spill] sm:$0xff] }
 0x3b5   : > { %v11620_v58 = vpack.i.bf16 %v11618_v15, %v11619_v55  ;;  %v7143_v15 = vld [vmem:[%s11134_s4 + $0x154] ss:$8 sps:$4 sm:$0xff]  }
 0x3b7   : > { %6803 = vrot.lane.b32.xlu0 %v11595_v34, %s7337_s27  ;;  %6808 = vrot.lane.b32.xlu1 %v11597_v46, %s7336_s29  ;;  %v11621_v34 = vld [vmem:[#allocation4_spill] sm:$0xff] }
 0x3bb   : > { %6813 = vrot.lane.b32.xlu0 %v11598_v61, %s7338_s30  ;;  %6823 = vrot.lane.b32.xlu1 %v11599_v17, %s7337_s27  ;;  %v11622_v61 = vld [vmem:[#allocation60_spill] sm:$0xff]  ;;  %v11623_v17 = vld [vmem:[#allocation59_spill] sm:$0xff] }
 0x3bc   : > { %v11624_v6 = vpack.i.bf16 %v11622_v61, %v11623_v17  ;;  %v7147_v17 = vld [vmem:[%s11134_s4 + $0x170] ss:$8 sps:$4 sm:$0xff]  }
 0x3bf   : > { %6818 = vrot.lane.b32.xlu0 %v9179_v18, %s7337_s27  ;;  %6828 = vrot.lane.b32.xlu1 %v9182_v16, %s7336_s29  ;;  %v11607_v16 = vpack.i.bf16 %v9214_v1, %v9197_v24  ;;  %v11608_v18 = vld [vmem:[#allocation52_spill] sm:$0xff]  ;;  %v11616_v1 = vld [vmem:[#allocation55_spill] sm:$0xff]  ;;  %s7343_s29 = smov 48  }
 0x3c0   : > { %v11615_v24 = vld [vmem:[#allocation56_spill] sm:$0xff] }
 0x3c1   : > { %v11617_v50 = vpack.i.bf16 %v11615_v24, %v11616_v1  ;;  %v11632_v24 = vpack.i.bf16 %v9401_v10, %v9394_v54  ;;  %v7140_v54 = vld [vmem:[%s11134_s4 + $0x144] ss:$8 sps:$4 sm:$0xff]   ;;  %v11634_v10 = vpack.i.bf16 %v9417_v63, %v9410_v43  ;;  %v11636_v63 = vpack.i.bf16 %v9447_v53, %v9440_v0  ;;  %v7141_v0 = vld [vmem:[%s11134_s4 + $0x150] ss:$8 sps:$4 sm:$0xff]  }
 0x3c3   : > { %6833 = vrot.lane.b32.xlu0 %v9205_v45, %s7338_s30  ;;  %6838 = vrot.lane.b32.xlu1 %v11602_v14, %s7338_s30  ;;  %v11609_v45 = vld [vmem:[#allocation51_spill] sm:$0xff]  ;;  %v9594_v5 = vpop.permute.xlu0 %6663 }
 0x3c4   : > { %v11610_v4 = vpack.i.bf16 %v11608_v18, %v11609_v45  ;;  %v6666_v37 = vunpack.i.h.bf16 %v9594_v5  ;;  %v6665_v11 = vunpack.i.l.bf16 %v9594_v5  ;;  %v7126_v14 = vld [vmem:[%s11134_s4 + $0x100] ss:$8 sps:$4 sm:$0xff]  }
 0x3c6   : > { %v3217_v57 = vsel %vm2701_vm9, %v11621_v34, %v6665_v11  ;;  %v3218_v46 = vsel %vm2701_vm9, %v8766_v60, %v6666_v37  ;;  %v7144_v34 = vld [vmem:[%s11134_s4 + $0x160] ss:$8 sps:$4 sm:$0xff]  }
 0x3c7   : > { %6843 = vrot.lane.b32.xlu0 %v11605_v31, %s7339_s14  ;;  %6848 = vrot.lane.b32.xlu1 %v11606_v3, %s7338_s30  ;;  %v3274_v8 = vpack.c.bf16 %v3218_v46, %v3217_v57  ;;  %v11626_v31 = vld [vmem:[#allocation7_spill] sm:$0xff]  ;;  %v11627_v3 = vld [vmem:[#allocation5_spill] sm:$0xff]  ;;  %v11640_v46 = vpack.c.bf16 %v8945_v49, %v8923_v56 }
 0x3c8   : > { %v7152_v56 = vld [vmem:[%s11134_s4 + $0x184] ss:$8 sps:$4 sm:$0xff]  }
 0x3c9   : > { %4004 = vmatprep.mubr.bf16.mxu1 %v3274_v8  ;;  %v11641_v8 = vld [vmem:[#allocation28_spill] sm:$0xff] }
 0x3ca   : > { %v9628_v60 = vpop.permute.xlu1 %6668 }
 0x3cb   : > { %6853 = vrot.lane.b32.xlu0 %v11607_v16, %s7339_s14  ;;  %6858 = vrot.lane.b32.xlu1 %v11610_v4, %s7338_s30  ;;  %v11628_v16 = vpack.c.bf16 %v11626_v31, %v11627_v3  ;;  %v6671_v18 = vunpack.i.h.bf16 %v9628_v60  ;;  %v6670_v45 = vunpack.i.l.bf16 %v9628_v60  ;;  %v11642_v31 = vpack.c.bf16 %v9011_v38, %v8984_v47  ;;  %v7158_v38 = vld [vmem:[%s11134_s4 + $0x1a4] ss:$8 sps:$4 sm:$0xff]   ;;  %v7168_v60 = vld [vmem:[%s11134_s4 + $0x1e0] ss:$8 sps:$4 sm:$0xff]  }
 0x3cd   : > { %4005 = vmatmul.mubr.bf16.vlgmr.msra.gmra.mrb[28].mxu1 %v11628_v16  ;;  %v3219_v4 = vsel %vm2701_vm9, %v8815_v21, %v6670_v45  ;;  %v7137_v21 = vld [vmem:[%s11134_s4 + $0x134] ss:$8 sps:$4 sm:$0xff]  }
 0x3ce   : > { %4076 = vmatpush1.bf16.msra.mxu1 %v7126_v14 }
 0x3cf   : > { %6863 = vrot.lane.b32.xlu0 %v11611_v51, %s7339_s14  ;;  %6868 = vrot.lane.b32.xlu1 %v11614_v40, %s7338_s30  ;;  %v3220_v51 = vsel %vm2701_vm9, %v8826_v9, %v6671_v18  ;;  %v11630_v9 = vpack.i.bf16 %v9383_v20, %v8806_v19  ;;  %v7135_v19 = vld [vmem:[%s11134_s4 + $0x130] ss:$8 sps:$4 sm:$0xff]  }
 0x3d0   : > { %4077 = vmatprep.subr.bf16.mxu1 %v7131_v30  ;;  %v3281_v25 = vpack.c.bf16 %v3220_v51, %v3219_v4  ;;  %v11643_v4 = vld [vmem:[#allocation39_spill] sm:$0xff] }
 0x3d2   : > { %4078 = vmatpush1.bf16.msra.mxu1 %v7129_v13  ;;  %4014 = vmatprep.mubr.bf16.mxu1 %v3281_v25  ;;  %v9667_v52 = vpop.permute.xlu0 %6673 }
 0x3d3   : > { %6873 = vrot.lane.b32.xlu0 %v11617_v50, %s7339_s14  ;;  %6878 = vrot.lane.b32.xlu1 %v11620_v58, %s7338_s30  ;;  %v6676_v26 = vunpack.i.h.bf16 %v9667_v52  ;;  %v6675_v40 = vunpack.i.l.bf16 %v9667_v52  ;;  %v7138_v50 = vld [vmem:[%s11134_s4 + $0x140] ss:$8 sps:$4 sm:$0xff]   ;;  %v11638_v58 = vpack.i.bf16 %v9473_v42, %v9468_v27  ;;  %v7146_v27 = vld [vmem:[%s11134_s4 + $0x164] ss:$8 sps:$4 sm:$0xff]  }
 0x3d4   : > { %4079 = vmatprep.subr.bf16.mxu1 %v7134_v22 }
 0x3d7   : > { %6883 = vrot.lane.b32.xlu0 %v11624_v6, %s7339_s14  ;;  %6888 = vrot.lane.b32.xlu1 %v11625_v48, %s7338_s30  ;;  %v7150_v48 = vld [vmem:[%s11134_s4 + $0x180] ss:$8 sps:$4 sm:$0xff]  }
 0x3da   : > { %v9710_v43 = vpop.permute.xlu1 %6678 }
 0x3db   : > { %6893 = vrot.lane.b32.xlu0 %v11629_v39, %s7339_s14  ;;  %6898 = vrot.lane.b32.xlu1 %v9372_v62, %s7338_s30  ;;  %v7132_v62 = vld [vmem:[%s11134_s4 + $0x120] ss:$8 sps:$4 sm:$0xff]   ;;  %v6680_v55 = vunpack.i.l.bf16 %v9710_v43  ;;  %v7153_v39 = vld [vmem:[%s11134_s4 + $0x190] ss:$8 sps:$4 sm:$0xff]   ;;  %s7341_s30 = smov 112  }
 0x3dc   : > { %4080 = vmatpush1.bf16.msra.mxu1 %v7132_v62 }
 0x3dd   : > { %4081 = vmatprep.subr.bf16.mxu1 %v7137_v21 }
 0x3df   : > { %6903 = vrot.lane.b32.xlu0 %v9376_v41, %s7339_s14  ;;  %6908 = vrot.lane.b32.xlu1 %v11630_v9, %s7339_s14  ;;  %v11631_v41 = vpack.c.bf16 %v8820_v35, %v8808_v23  ;;  %v3221_v23 = vsel %vm2701_vm9, %v8878_v7, %v6675_v40  ;;  %v11633_v35 = vld [vmem:[#allocation13_spill] sm:$0xff]  ;;  %v11635_v7 = vpack.i.bf16 %v9433_v44, %v9424_v33  ;;  %v6681_v33 = vunpack.i.h.bf16 %v9710_v43  ;;  %v11644_v9 = vld [vmem:[#allocation48_spill] sm:$0xff] }
 0x3e0   : > { %v3222_v20 = vsel %vm2701_vm9, %v11633_v35, %v6676_v26  ;;  %4082 = vmatpush1.bf16.msra.mxu1 %v7135_v19  ;;  %v11637_v44 = vpack.c.bf16 %v8884_v12, %v8859_v29  ;;  %v3223_v29 = vsel %vm2701_vm9, %v8939_v2, %v6680_v55  ;;  %v11639_v12 = vld [vmem:[#allocation19_spill] sm:$0xff]  ;;  %v7149_v2 = vld [vmem:[%s11134_s4 + $0x174] ss:$8 sps:$4 sm:$0xff]  }
 0x3e1   : > { %4015 = vmatmul.mubr.bf16.gmra.mrb[32].mxu1 %v11631_v41  ;;  %v3288_v1 = vpack.c.bf16 %v3222_v20, %v3221_v23  ;;  %4083 = vmatprep.subr.bf16.mxu1 %v7140_v54  ;;  %v3224_v53 = vsel %vm2701_vm9, %v11639_v12, %v6681_v33  ;;  %v7161_v23 = vld [vmem:[%s11134_s4 + $0x1b4] ss:$8 sps:$4 sm:$0xff]  }
 0x3e2   : > { %v3295_v42 = vpack.c.bf16 %v3224_v53, %v3223_v29  ;;  %v9743_v57 = vpop.permute.xlu0 %6683  ;;  %v7159_v29 = vld [vmem:[%s11134_s4 + $0x1b0] ss:$8 sps:$4 sm:$0xff]  }
 0x3e3   : > { %6913 = vrot.lane.b32.xlu0 %v11632_v24, %s7339_s14  ;;  %6918 = vrot.lane.b32.xlu1 %v11634_v10, %s7339_s14  ;;  %v6685_v61 = vunpack.i.l.bf16 %v9743_v57  ;;  %v11645_v24 = vld [vmem:[#allocation49_spill] sm:$0xff]  ;;  %v11646_v10 = vld [vmem:[#allocation38_spill] sm:$0xff] }
 0x3e4   : > { %4024 = vmatprep.mubr.bf16.mxu1 %v3288_v1  ;;  %4084 = vmatpush1.bf16.msra.mxu1 %v7138_v50  ;;  %v11647_v1 = vld [vmem:[#allocation35_spill] sm:$0xff] }
 0x3e5   : > { %4085 = vmatprep.subr.bf16.mxu1 %v7143_v15  ;;  %v3225_v6 = vsel %vm2701_vm9, %v9005_v32, %v6685_v61  ;;  %v7155_v32 = vld [vmem:[%s11134_s4 + $0x194] ss:$8 sps:$4 sm:$0xff]  }
 0x3e7   : > { %6923 = vrot.lane.b32.xlu0 %v11635_v7, %s7339_s14  ;;  %6928 = vrot.lane.b32.xlu1 %v11636_v63, %s7339_s14  ;;  %v11648_v7 = vpack.c.bf16 %v11646_v10, %v11647_v1 }
 0x3e8   : > { %4086 = vmatpush1.bf16.msra.mxu1 %v7141_v0 }
 0x3e9   : > { %4025 = vmatmul.mubr.bf16.gmra.mrb[36].mxu1 %v11637_v44  ;;  %4087 = vmatprep.subr.bf16.mxu1 %v7146_v27  ;;  %v7164_v27 = vld [vmem:[%s11134_s4 + $0x1c4] ss:$8 sps:$4 sm:$0xff]  }
 0x3ea   : > { %4034 = vmatprep.mubr.bf16.mxu1 %v3295_v42  ;;  %v9770_v30 = vpop.permute.xlu1 %6688 }
 0x3eb   : > { %6933 = vrot.lane.b32.xlu0 %v11638_v58, %s7339_s14  ;;  %6938 = vrot.lane.b32.xlu1 %v9480_v59, %s7339_s14  ;;  %v6686_v59 = vunpack.i.h.bf16 %v9743_v57  ;;  %v6691_v3 = vunpack.i.h.bf16 %v9770_v30  ;;  %v6690_v16 = vunpack.i.l.bf16 %v9770_v30 }
 0x3ec   : > { %4088 = vmatpush1.bf16.msra.mxu1 %v7144_v34 }
 0x3ed   : > { %4089 = vmatprep.subr.bf16.mxu1 %v7149_v2  ;;  %v3226_v49 = vsel %vm2701_vm9, %v11641_v8, %v6686_v59  ;;  %v3227_v13 = vsel %vm2701_vm9, %v9066_v28, %v6690_v16  ;;  %v3228_v47 = vsel %vm2701_vm9, %v11643_v4, %v6691_v3  ;;  %v9791_v51 = vpop.permute.xlu0 %6698  ;;  %v7156_v28 = vld [vmem:[%s11134_s4 + $0x1a0] ss:$8 sps:$4 sm:$0xff]  }
 0x3ee   : > { %v3302_v14 = vpack.c.bf16 %v3226_v49, %v3225_v6  ;;  %v6694_v22 = vpop.permute.xlu1 %6693  ;;  %v3309_v25 = vpack.c.bf16 %v3228_v47, %v3227_v13  ;;  %v6701_v62 = vunpack.i.h.bf16 %v9791_v51  ;;  %v6700_v21 = vunpack.i.l.bf16 %v9791_v51  ;;  %v7162_v8 = vld [vmem:[%s11134_s4 + $0x1c0] ss:$8 sps:$4 sm:$0xff]  }
 0x3ef   : > { %v6696_v63 = vunpack.i.h.bf16 %v6694_v22  ;;  %v6695_v44 = vunpack.i.l.bf16 %v6694_v22 }
 0x3f0   : > { %4090 = vmatpush1.bf16.msra.mxu1 %v7147_v17  ;;  %v3229_v41 = vsel %vm2701_vm9, %v11644_v9, %v6700_v21  ;;  %v3230_v19 = vsel %vm2701_vm9, %v11645_v24, %v6701_v62 }
 0x3f1   : > { %4035 = vmatmul.mubr.bf16.gmra.mrb[40].mxu1 %v11640_v46  ;;  %4091 = vmatprep.subr.bf16.mxu1 %v7152_v56  ;;  %v3316_v54 = vpack.c.bf16 %v3230_v19, %v3229_v41  ;;  %v2855_v17 = vsel %vm2854_vm10, %v6695_v44, %v6696_v63 }
 0x3f2   : > { %4044 = vmatprep.mubr.bf16.mxu1 %v3302_v14  ;;  %v7167_v14 = vld [vmem:[%s11134_s4 + $0x1d4] ss:$8 sps:$4 sm:$0xff]  }
 0x3f4   : > { %4092 = vmatpush1.bf16.msra.mxu1 %v7150_v48 }
 0x3f5   : > { %4093 = vmatprep.subr.bf16.mxu1 %v7155_v32 }
 0x3f6   : > { %v6704_v35 = vpop.permute.xlu0 %6703  ;;  %v6709_v20 = vpop.permute.xlu1 %6708 }
 0x3f7   : > { %v6711_v50 = vunpack.i.h.bf16 %v6709_v20  ;;  %v6710_v15 = vunpack.i.l.bf16 %v6709_v20  ;;  %v6706_v58 = vunpack.i.h.bf16 %v6704_v35  ;;  %v6705_v0 = vunpack.i.l.bf16 %v6704_v35 }
 0x3f8   : > { %4094 = vmatpush1.bf16.msra.mxu1 %v7153_v39  ;;  %v11649_v39 = vld [vmem:[#allocation46_spill] sm:$0xff]  ;;  %v11299_v35 = vmov 0  }
 0x3f9   : > { %4045 = vmatmul.mubr.bf16.gmra.mrb[44].mxu1 %v11642_v31  ;;  %4095 = vmatprep.subr.bf16.mxu1 %v7158_v38  ;;  %v2703_v12 = vsel %vm2701_vm9, %v6666_v37, %v6711_v50  ;;  %v2702_v53 = vsel %vm2701_vm9, %v6665_v11, %v6710_v15  ;;  %v2856_v6 = vsel %vm2854_vm10, %v6705_v0, %v6706_v58 }
 0x3fa   : > { %4054 = vmatprep.mubr.bf16.mxu1 %v3309_v25  ;;  %v9825_v42 = vsel %vm2854_vm10, %v2702_v53, %v6695_v44  ;;  %v9828_v34 = vsel %vm2854_vm10, %v2703_v12, %v6705_v0  ;;  %v11650_v13 = vpack.c.bf16 %v9138_v36, %v11649_v39  ;;  %v7165_v25 = vld [vmem:[%s11134_s4 + $0x1d0] ss:$8 sps:$4 sm:$0xff]   ;;  %v7170_v36 = vld [vmem:[%s11134_s4 + $0x1e4] ss:$8 sps:$4 sm:$0xff]   ;;  %4762 = vmatprep.mubr.bf16.mxu0 %v11299_v35 }
 0x3fb   : > { %v3275_v5 = vpack.c.bf16 %v9828_v34, %v9825_v42  ;;  %v7171_v0 = vld [vmem:[%s11134_s4 + $0x1f0] ss:$8 sps:$4 sm:$0xff]   ;;  %v7176_v53 = vld [vmem:[%s11134_s4 + $0x204] ss:$8 sps:$4 sm:$0xff]  }
 0x3fc   : > { %4096 = vmatpush1.bf16.msra.mxu1 %v7156_v28  ;;  %v7182_v34 = vld [vmem:[%s11134_s4 + $0x224] ss:$8 sps:$4 sm:$0xff]  }
 0x3fd   : > { %4097 = vmatprep.subr.bf16.mxu1 %v7161_v23 }
 0x3ff   : > { %v9830_v2 = vpop.permute.xlu0 %6713 }
 0x400   : > { %v6719_v46 = vpop.permute.xlu1 %6718  ;;  %v6716_v37 = vunpack.i.h.bf16 %v9830_v2  ;;  %v6715_v11 = vunpack.i.l.bf16 %v9830_v2  ;;  %4098 = vmatpush1.bf16.msra.mxu1 %v7159_v29 }
 0x401   : > { %4055 = vmatmul.mubr.bf16.gmra.mrb[48].mxu1 %v11648_v7  ;;  %4099 = vmatprep.subr.bf16.mxu1 %v7164_v27  ;;  %v6720_v38 = vunpack.i.l.bf16 %v6719_v46  ;;  %v6721_v20 = vunpack.i.h.bf16 %v6719_v46 }
 0x402   : > { %4064 = vmatprep.mubr.bf16.mxu1 %v3316_v54  ;;  %v3245_v49 = vsel %vm3007_vm11, %v2855_v17, %v6715_v11  ;;  %v3246_v56 = vsel %vm3007_vm11, %v2856_v6, %v6716_v37 }
 0x403   : > { %v3276_v31 = vpack.c.bf16 %v3246_v56, %v3245_v49  ;;  %v2857_v27 = vsel %vm2854_vm10, %v6720_v38, %v6721_v20  ;;  %v7174_v49 = vld [vmem:[%s11134_s4 + $0x200] ss:$8 sps:$4 sm:$0xff]  }
 0x404   : > { %4100 = vmatpush1.bf16.msra.mxu1 %v7162_v8 }
 0x405   : > { %4101 = vmatprep.subr.bf16.mxu1 %v7167_v14  ;;  %v7179_v14 = vld [vmem:[%s11134_s4 + $0x214] ss:$8 sps:$4 sm:$0xff]  }
 0x406   : > { %v6724_v48 = vpop.permute.xlu0 %6723 }
 0x407   : > { %v6725_v22 = vunpack.i.l.bf16 %v6724_v48  ;;  %v6726_v54 = vunpack.i.h.bf16 %v6724_v48 }
 0x408   : > { %4102 = vmatpush1.bf16.msra.mxu1 %v7165_v25 }
 0x409   : > { %v6729_v32 = vpop.permute.xlu1 %6728  ;;  %4065 = vmatmul.mubr.bf16.gmra.mrb[52].mxu1 %v11650_v13  ;;  %4103 = vmatprep.subr.bf16.mxu1 %v7170_v36  ;;  %v2858_v46 = vsel %vm2854_vm10, %v6725_v22, %v6726_v54  ;;  %v7180_v54 = vld [vmem:[%s11134_s4 + $0x220] ss:$8 sps:$4 sm:$0xff]  }
 0x40a   : > { %v6731_v4 = vunpack.i.h.bf16 %v6729_v32  ;;  %v6730_v47 = vunpack.i.l.bf16 %v6729_v32  ;;  %4107 = vmatprep.mubr.bf16.mxu1 %v3276_v31 }
 0x40c   : > { %v2705_v28 = vsel %vm2701_vm9, %v6671_v18, %v6731_v4  ;;  %v2704_v9 = vsel %vm2701_vm9, %v6670_v45, %v6730_v47  ;;  %v7173_v45 = vld [vmem:[%s11134_s4 + $0x1f4] ss:$8 sps:$4 sm:$0xff]   ;;  %4104 = vmatpush1.bf16.msra.mxu1 %v7168_v60 }
 0x40d   : > { %v9865_v41 = vpop.permute.xlu0 %6733  ;;  %v6739_v24 = vpop.permute.xlu1 %6738  ;;  %v9868_v19 = vsel %vm2854_vm10, %v2704_v9, %v6720_v38  ;;  %v9871_v23 = vsel %vm2854_vm10, %v2705_v28, %v6725_v22  ;;  %4105 = vmatprep.subr.bf16.mxu1 %v7173_v45  ;;  %v7177_v9 = vld [vmem:[%s11134_s4 + $0x210] ss:$8 sps:$4 sm:$0xff]  }
 0x40e   : > { %v3282_v18 = vpack.c.bf16 %v9871_v23, %v9868_v19  ;;  %v6736_v7 = vunpack.i.h.bf16 %v9865_v41  ;;  %v6735_v50 = vunpack.i.l.bf16 %v9865_v41  ;;  %v6740_v44 = vunpack.i.l.bf16 %v6739_v24  ;;  %v7188_v23 = vld [vmem:[%s11134_s4 + $0x244] ss:$8 sps:$4 sm:$0xff]  }
 0x40f   : > { %v6741_v48 = vunpack.i.h.bf16 %v6739_v24 }
 0x410   : > { %4106 = vmatpush1.bf16.msra.mxu1 %v7171_v0 }
 0x411   : > { %v6744_v10 = vpop.permute.xlu0 %6743  ;;  %v6749_v1 = vpop.permute.xlu1 %6748  ;;  %4178 = vmatprep.subr.bf16.mxu1 %v7176_v53 }
 0x412   : > { %v6751_v15 = vunpack.i.h.bf16 %v6749_v1  ;;  %v6750_v63 = vunpack.i.l.bf16 %v6749_v1  ;;  %v6745_v58 = vunpack.i.l.bf16 %v6744_v10  ;;  %v6746_v32 = vunpack.i.h.bf16 %v6744_v10  ;;  %v7185_v1 = vld [vmem:[%s11134_s4 + $0x234] ss:$8 sps:$4 sm:$0xff]  }
 0x413   : > { %4108 = vmatmul.mubr.bf16.vlgmr.msra.gmra.mrb[28].mxu1 %v3275_v5  ;;  %v2859_v5 = vsel %vm2854_vm10, %v6740_v44, %v6741_v48 }
 0x414   : > { %v2707_v29 = vsel %vm2701_vm9, %v6676_v26, %v6751_v15  ;;  %v2706_v12 = vsel %vm2701_vm9, %v6675_v40, %v6750_v63  ;;  %v3247_v26 = vsel %vm3007_vm11, %v2857_v27, %v6735_v50  ;;  %v3248_v40 = vsel %vm3007_vm11, %v2858_v46, %v6736_v7  ;;  %4179 = vmatpush1.bf16.msra.mxu1 %v7174_v49 }
 0x415   : > { %v9898_v17 = vpop.permute.xlu0 %6753  ;;  %v9900_v6 = vpop.permute.xlu1 %6758  ;;  %v9903_v8 = vsel %vm2854_vm10, %v2706_v12, %v6740_v44  ;;  %v9906_v52 = vsel %vm2854_vm10, %v2707_v29, %v6745_v58  ;;  %v3283_v39 = vpack.c.bf16 %v3248_v40, %v3247_v26  ;;  %4180 = vmatprep.subr.bf16.mxu1 %v7179_v14  ;;  %v2860_v24 = vsel %vm2854_vm10, %v6745_v58, %v6746_v32 }
 0x416   : > { %v3289_v56 = vpack.c.bf16 %v9906_v52, %v9903_v8  ;;  %v6756_v4 = vunpack.i.h.bf16 %v9898_v17  ;;  %v6755_v47 = vunpack.i.l.bf16 %v9898_v17  ;;  %v6760_v25 = vunpack.i.l.bf16 %v9900_v6  ;;  %v7194_v52 = vld [vmem:[%s11134_s4 + $0x264] ss:$8 sps:$4 sm:$0xff]  }
 0x417   : > { %4117 = vmatprep.mubr.bf16.mxu1 %v3283_v39  ;;  %v6761_v15 = vunpack.i.h.bf16 %v9900_v6  ;;  %v7183_v6 = vld [vmem:[%s11134_s4 + $0x230] ss:$8 sps:$4 sm:$0xff]  }
 0x418   : > { %4181 = vmatpush1.bf16.msra.mxu1 %v7177_v9 }
 0x419   : > { %v6764_v31 = vpop.permute.xlu0 %6763  ;;  %v6769_v13 = vpop.permute.xlu1 %6768  ;;  %4182 = vmatprep.subr.bf16.mxu1 %v7182_v34 }
 0x41a   : > { %v6771_v38 = vunpack.i.h.bf16 %v6769_v13  ;;  %v6770_v22 = vunpack.i.l.bf16 %v6769_v13  ;;  %v6765_v28 = vunpack.i.l.bf16 %v6764_v31  ;;  %v6766_v63 = vunpack.i.h.bf16 %v6764_v31  ;;  %v7186_v31 = vld [vmem:[%s11134_s4 + $0x240] ss:$8 sps:$4 sm:$0xff]   ;;  %v7191_v13 = vld [vmem:[%s11134_s4 + $0x254] ss:$8 sps:$4 sm:$0xff]  }
 0x41b   : > { %4118 = vmatmul.mubr.bf16.gmra.mrb[32].mxu1 %v3282_v18  ;;  %v2861_v18 = vsel %vm2854_vm10, %v6760_v25, %v6761_v15 }
 0x41c   : > { %v2709_v36 = vsel %vm2701_vm9, %v6681_v33, %v6771_v38  ;;  %v2708_v42 = vsel %vm2701_vm9, %v6680_v55, %v6770_v22  ;;  %v3249_v33 = vsel %vm3007_vm11, %v2859_v5, %v6755_v47  ;;  %v3250_v55 = vsel %vm3007_vm11, %v2860_v24, %v6756_v4  ;;  %4183 = vmatpush1.bf16.msra.mxu1 %v7180_v54 }
 0x41d   : > { %v9942_v60 = vpop.permute.xlu0 %6773  ;;  %v9944_v45 = vpop.permute.xlu1 %6778  ;;  %v9947_v20 = vsel %vm2854_vm10, %v2708_v42, %v6760_v25  ;;  %v9950_v43 = vsel %vm2854_vm10, %v2709_v36, %v6765_v28  ;;  %v3290_v58 = vpack.c.bf16 %v3250_v55, %v3249_v33  ;;  %4184 = vmatprep.subr.bf16.mxu1 %v7185_v1  ;;  %v2862_v49 = vsel %vm2854_vm10, %v6765_v28, %v6766_v63 }
 0x41e   : > { %v3296_v10 = vpack.c.bf16 %v9950_v43, %v9947_v20  ;;  %v6776_v29 = vunpack.i.h.bf16 %v9942_v60  ;;  %v6775_v12 = vunpack.i.l.bf16 %v9942_v60  ;;  %v6780_v46 = vunpack.i.l.bf16 %v9944_v45  ;;  %v7200_v43 = vld [vmem:[%s11134_s4 + $0x284] ss:$8 sps:$4 sm:$0xff]  }
 0x41f   : > { %4127 = vmatprep.mubr.bf16.mxu1 %v3290_v58  ;;  %v6781_v38 = vunpack.i.h.bf16 %v9944_v45  ;;  %v7189_v45 = vld [vmem:[%s11134_s4 + $0x250] ss:$8 sps:$4 sm:$0xff]  }
 0x420   : > { %4185 = vmatpush1.bf16.msra.mxu1 %v7183_v6 }
 0x421   : > { %v6784_v44 = vpop.permute.xlu0 %6783  ;;  %v6789_v0 = vpop.permute.xlu1 %6788  ;;  %4186 = vmatprep.subr.bf16.mxu1 %v7188_v23 }
 0x422   : > { %v6791_v53 = vunpack.i.h.bf16 %v6789_v0  ;;  %v6790_v27 = vunpack.i.l.bf16 %v6789_v0  ;;  %v6785_v26 = vunpack.i.l.bf16 %v6784_v44  ;;  %v6786_v22 = vunpack.i.h.bf16 %v6784_v44  ;;  %v7192_v44 = vld [vmem:[%s11134_s4 + $0x260] ss:$8 sps:$4 sm:$0xff]   ;;  %v7197_v0 = vld [vmem:[%s11134_s4 + $0x274] ss:$8 sps:$4 sm:$0xff]  }
 0x423   : > { %4128 = vmatmul.mubr.bf16.gmra.mrb[36].mxu1 %v3289_v56  ;;  %v2863_v56 = vsel %vm2854_vm10, %v6780_v46, %v6781_v38 }
 0x424   : > { %v2711_v40 = vsel %vm2701_vm9, %v6686_v59, %v6791_v53  ;;  %v2710_v19 = vsel %vm2701_vm9, %v6685_v61, %v6790_v27  ;;  %v3251_v59 = vsel %vm3007_vm11, %v2861_v18, %v6775_v12  ;;  %v3252_v61 = vsel %vm3007_vm11, %v2862_v49, %v6776_v29  ;;  %4187 = vmatpush1.bf16.msra.mxu1 %v7186_v31 }
 0x425   : > { %v9987_v14 = vpop.permute.xlu0 %6793  ;;  %v9989_v48 = vpop.permute.xlu1 %6798  ;;  %v9992_v32 = vsel %vm2854_vm10, %v2710_v19, %v6780_v46  ;;  %v9995_v57 = vsel %vm2854_vm10, %v2711_v40, %v6785_v26  ;;  %v3297_v28 = vpack.c.bf16 %v3252_v61, %v3251_v59  ;;  %4188 = vmatprep.subr.bf16.mxu1 %v7191_v13  ;;  %v2864_v54 = vsel %vm2854_vm10, %v6785_v26, %v6786_v22 }
 0x426   : > { %v3303_v39 = vpack.c.bf16 %v9995_v57, %v9992_v32  ;;  %v6796_v36 = vunpack.i.h.bf16 %v9987_v14  ;;  %v6795_v42 = vunpack.i.l.bf16 %v9987_v14  ;;  %v6800_v24 = vunpack.i.l.bf16 %v9989_v48  ;;  %v7213_v14 = vld [vmem:[%s11134_s4 + $0x2d0] ss:$8 sps:$4 sm:$0xff]  }
 0x427   : > { %4137 = vmatprep.mubr.bf16.mxu1 %v3297_v28  ;;  %v6801_v53 = vunpack.i.h.bf16 %v9989_v48  ;;  %v7195_v48 = vld [vmem:[%s11134_s4 + $0x270] ss:$8 sps:$4 sm:$0xff]  }
 0x428   : > { %4189 = vmatpush1.bf16.msra.mxu1 %v7189_v45 }
 0x429   : > { %v6804_v25 = vpop.permute.xlu0 %6803  ;;  %v6809_v9 = vpop.permute.xlu1 %6808  ;;  %4190 = vmatprep.subr.bf16.mxu1 %v7194_v52 }
 0x42a   : > { %v6811_v34 = vunpack.i.h.bf16 %v6809_v9  ;;  %v6810_v5 = vunpack.i.l.bf16 %v6809_v9  ;;  %v6805_v33 = vunpack.i.l.bf16 %v6804_v25  ;;  %v6806_v27 = vunpack.i.h.bf16 %v6804_v25  ;;  %v7198_v9 = vld [vmem:[%s11134_s4 + $0x280] ss:$8 sps:$4 sm:$0xff]  }
 0x42b   : > { %4138 = vmatmul.mubr.bf16.gmra.mrb[40].mxu1 %v3296_v10  ;;  %v2865_v10 = vsel %vm2854_vm10, %v6800_v24, %v6801_v53 }
 0x42c   : > { %v2713_v55 = vsel %vm2701_vm9, %v6691_v3, %v6811_v34  ;;  %v2712_v8 = vsel %vm2701_vm9, %v6690_v16, %v6810_v5  ;;  %v3253_v3 = vsel %vm3007_vm11, %v2863_v56, %v6795_v42  ;;  %v3254_v16 = vsel %vm3007_vm11, %v2864_v54, %v6796_v36  ;;  %4191 = vmatpush1.bf16.msra.mxu1 %v7192_v44 }
 0x42d   : > { %v10032_v1 = vpop.permute.xlu0 %6813  ;;  %v10034_v15 = vpop.permute.xlu1 %6823  ;;  %v10037_v63 = vsel %vm2854_vm10, %v2712_v8, %v6800_v24  ;;  %v10040_v30 = vsel %vm2854_vm10, %v2713_v55, %v6805_v33  ;;  %v3304_v26 = vpack.c.bf16 %v3254_v16, %v3253_v3  ;;  %4192 = vmatprep.subr.bf16.mxu1 %v7197_v0  ;;  %v2866_v31 = vsel %vm2854_vm10, %v6805_v33, %v6806_v27  ;;  %v7203_v33 = vld [vmem:[%s11134_s4 + $0x294] ss:$8 sps:$4 sm:$0xff]   ;;  %v7201_v3 = vld [vmem:[%s11134_s4 + $0x290] ss:$8 sps:$4 sm:$0xff]   ;;  %v7206_v16 = vld [vmem:[%s11134_s4 + $0x2a4] ss:$8 sps:$4 sm:$0xff]  }
 0x42e   : > { %v3310_v58 = vpack.c.bf16 %v10040_v30, %v10037_v63  ;;  %v6816_v40 = vunpack.i.h.bf16 %v10032_v1  ;;  %v6815_v19 = vunpack.i.l.bf16 %v10032_v1  ;;  %v6825_v49 = vunpack.i.l.bf16 %v10034_v15  ;;  %v7221_v1 = vld [vmem:[%s11134_s4 + $0x2f4] ss:$8 sps:$4 sm:$0xff]  }
 0x42f   : > { %4147 = vmatprep.mubr.bf16.mxu1 %v3304_v26  ;;  %v6826_v45 = vunpack.i.h.bf16 %v10034_v15  ;;  %v7204_v26 = vld [vmem:[%s11134_s4 + $0x2a0] ss:$8 sps:$4 sm:$0xff]  }
 0x430   : > { %v3255_v25 = vsel %vm3007_vm11, %v2865_v10, %v6815_v19  ;;  %v3256_v28 = vsel %vm3007_vm11, %v2866_v31, %v6816_v40  ;;  %4193 = vmatpush1.bf16.msra.mxu1 %v7195_v48  ;;  %v7212_v10 = vld [vmem:[%s11134_s4 + $0x2c4] ss:$8 sps:$4 sm:$0xff]  }
 0x431   : > { %v6819_v46 = vpop.permute.xlu0 %6818  ;;  %v6829_v6 = vpop.permute.xlu1 %6828  ;;  %4194 = vmatprep.subr.bf16.mxu1 %v7200_v43  ;;  %v3311_v52 = vpack.c.bf16 %v3256_v28, %v3255_v25  ;;  %v7207_v43 = vld [vmem:[%s11134_s4 + $0x2b0] ss:$8 sps:$4 sm:$0xff]  }
 0x432   : > { %v6831_v23 = vunpack.i.h.bf16 %v6829_v6  ;;  %v6830_v18 = vunpack.i.l.bf16 %v6829_v6  ;;  %v6820_v59 = vunpack.i.l.bf16 %v6819_v46  ;;  %v6821_v55 = vunpack.i.h.bf16 %v6819_v46  ;;  %v7209_v6 = vld [vmem:[%s11134_s4 + $0x2b4] ss:$8 sps:$4 sm:$0xff]  }
 0x433   : > { %4148 = vmatmul.mubr.bf16.gmra.mrb[44].mxu1 %v3303_v39  ;;  %v2867_v39 = vsel %vm2854_vm10, %v6825_v49, %v6826_v45 }
 0x434   : > { %v2715_v61 = vsel %vm2701_vm9, %v6701_v62, %v6831_v23  ;;  %v2714_v20 = vsel %vm2701_vm9, %v6700_v21, %v6830_v18  ;;  %4157 = vmatprep.mubr.bf16.mxu1 %v3311_v52  ;;  %4195 = vmatpush1.bf16.msra.mxu1 %v7198_v9  ;;  %v2868_v44 = vsel %vm2854_vm10, %v6820_v59, %v6821_v55 }
 0x435   : > { %v10077_v13 = vpop.permute.xlu0 %6833  ;;  %v10079_v38 = vpop.permute.xlu1 %6838  ;;  %v10082_v22 = vsel %vm2854_vm10, %v2714_v20, %v6825_v49  ;;  %v10085_v51 = vsel %vm2854_vm10, %v2715_v61, %v6820_v59  ;;  %4196 = vmatprep.subr.bf16.mxu1 %v7203_v33  ;;  %v7215_v33 = vld [vmem:[%s11134_s4 + $0x2d4] ss:$8 sps:$4 sm:$0xff]  }
 0x436   : > { %v6841_v62 = vunpack.i.h.bf16 %v10079_v38  ;;  %v6840_v21 = vunpack.i.l.bf16 %v10079_v38  ;;  %v3317_v34 = vpack.c.bf16 %v10085_v51, %v10082_v22  ;;  %v6836_v2 = vunpack.i.h.bf16 %v10077_v13 }
 0x438   : > { %v10105_v5 = vsel %vm3007_vm11, %v6716_v37, %v6841_v62  ;;  %v10112_v24 = vsel %vm3007_vm11, %v6715_v11, %v6840_v21  ;;  %v6835_v11 = vunpack.i.l.bf16 %v10077_v13  ;;  %4197 = vmatpush1.bf16.msra.mxu1 %v7201_v3 }
 0x439   : > { %v3277_v8 = vpack.c.bf16 %v10105_v5, %v10112_v24  ;;  %v10120_v37 = vpop.permute.xlu0 %6843  ;;  %v10122_v56 = vpop.permute.xlu1 %6848  ;;  %4198 = vmatprep.subr.bf16.mxu1 %v7206_v16  ;;  %v7230_v5 = vld [vmem:[%s11134_s4 + $0x320] ss:$8 sps:$4 sm:$0x1f]  }
 0x43a   : > { %v6851_v54 = vunpack.i.h.bf16 %v10122_v56  ;;  %v6850_v15 = vunpack.i.l.bf16 %v10122_v56  ;;  %v3257_v41 = vsel %vm3007_vm11, %v2867_v39, %v6835_v11  ;;  %v6846_v20 = vunpack.i.h.bf16 %v10120_v37 }
 0x43b   : > { %4158 = vmatmul.mubr.bf16.gmra.mrb[48].mxu1 %v3310_v58 }
 0x43c   : > { %v10142_v32 = vsel %vm3007_vm11, %v6735_v50, %v6850_v15  ;;  %v10149_v57 = vsel %vm3007_vm11, %v6736_v7, %v6851_v54  ;;  %v3258_v7 = vsel %vm3007_vm11, %v2868_v44, %v6836_v2  ;;  %4199 = vmatpush1.bf16.msra.mxu1 %v7204_v26 }
 0x43d   : > { %v10153_v0 = vpop.permute.xlu0 %6853  ;;  %v10155_v53 = vpop.permute.xlu1 %6858  ;;  %v3284_v27 = vpack.c.bf16 %v10149_v57, %v10142_v32  ;;  %v3318_v59 = vpack.c.bf16 %v3258_v7, %v3257_v41  ;;  %4200 = vmatprep.subr.bf16.mxu1 %v7209_v6  ;;  %v7216_v41 = vld [vmem:[%s11134_s4 + $0x2e0] ss:$8 sps:$4 sm:$0xff]  }
 0x43e   : > { %v6861_v50 = vunpack.i.h.bf16 %v10155_v53  ;;  %v6860_v46 = vunpack.i.l.bf16 %v10155_v53  ;;  %v6855_v7 = vunpack.i.l.bf16 %v10153_v0 }
 0x43f   : > { %4167 = vmatprep.mubr.bf16.mxu1 %v3318_v59 }
 0x440   : > { %v10178_v23 = vsel %vm3007_vm11, %v6755_v47, %v6860_v46  ;;  %v10185_v18 = vsel %vm3007_vm11, %v6756_v4, %v6861_v50  ;;  %v6845_v47 = vunpack.i.l.bf16 %v10120_v37  ;;  %4201 = vmatpush1.bf16.msra.mxu1 %v7207_v43 }
 0x441   : > { %v10187_v49 = vpop.permute.xlu0 %6863  ;;  %v10189_v48 = vpop.permute.xlu1 %6868  ;;  %v3291_v61 = vpack.c.bf16 %v10185_v18, %v10178_v23  ;;  %4202 = vmatprep.subr.bf16.mxu1 %v7212_v10  ;;  %v7219_v10 = vld [vmem:[%s11134_s4 + $0x2f0] ss:$8 sps:$4 sm:$0xff]  }
 0x442   : > { %v6871_v17 = vunpack.i.h.bf16 %v10189_v48  ;;  %v6870_v4 = vunpack.i.l.bf16 %v10189_v48  ;;  %v3259_v60 = vsel %vm3174_vm12, %v6840_v21, %v6845_v47 }
 0x443   : > { %4168 = vmatmul.mubr.bf16.gmra.mrb[52].mxu1 %v3317_v34 }
 0x444   : > { %v10211_v63 = vsel %vm3007_vm11, %v6775_v12, %v6870_v4  ;;  %v10218_v30 = vsel %vm3007_vm11, %v6776_v29, %v6871_v17  ;;  %v3260_v29 = vsel %vm3174_vm12, %v6841_v62, %v6846_v20  ;;  %v7210_v12 = vld [vmem:[%s11134_s4 + $0x2c0] ss:$8 sps:$4 sm:$0xff]  }
 0x445   : > { %v10220_v58 = vpop.permute.xlu0 %6873  ;;  %v10222_v31 = vpop.permute.xlu1 %6878  ;;  %v3298_v25 = vpack.c.bf16 %v10218_v30, %v10211_v63  ;;  %v3278_v45 = vpack.c.bf16 %v3260_v29, %v3259_v60  ;;  %4203 = vmatpush1.bf16.msra.mxu1 %v7210_v12 }
 0x446   : > { %v6881_v28 = vunpack.i.h.bf16 %v10222_v31  ;;  %v6880_v9 = vunpack.i.l.bf16 %v10222_v31  ;;  %4204 = vmatprep.subr.bf16.mxu1 %v7215_v33 }
 0x447   : > { %4210 = vmatprep.mubr.bf16.mxu1 %v3278_v45 }
 0x448   : > { %v10249_v21 = vsel %vm3007_vm11, %v6795_v42, %v6880_v9  ;;  %v10256_v38 = vsel %vm3007_vm11, %v6796_v36, %v6881_v28  ;;  %v7218_v36 = vld [vmem:[%s11134_s4 + $0x2e4] ss:$8 sps:$4 sm:$0xff]  }
 0x449   : > { %v10258_v62 = vpop.permute.xlu0 %6883  ;;  %v10260_v55 = vpop.permute.xlu1 %6888  ;;  %v3305_v52 = vpack.c.bf16 %v10256_v38, %v10249_v21  ;;  %4205 = vmatpush1.bf16.msra.mxu1 %v7213_v14  ;;  %v3424_v21 = vld [vmem:[%s11135_s5] sm:$0x3] }
 0x44a   : > { %v6891_v42 = vunpack.i.h.bf16 %v10260_v55  ;;  %v6890_v3 = vunpack.i.l.bf16 %v10260_v55  ;;  %4206 = vmatprep.subr.bf16.mxu1 %v7218_v36  ;;  %v11657_v38 = vld [vmem:[#allocation2_spill] sm:$0xff] }
 0x44b   : > { %v11658_v55 = vsub.s32 0, %v11657_v38 }
 0x44c   : > { %v10280_v22 = vsel %vm3007_vm11, %v6815_v19, %v6890_v3  ;;  %v10287_v51 = vsel %vm3007_vm11, %v6816_v40, %v6891_v42  ;;  %v6856_v40 = vunpack.i.h.bf16 %v10153_v0 }
 0x44d   : > { %v10289_v34 = vpop.permute.xlu0 %6893  ;;  %v10293_v39 = vpop.permute.xlu1 %6898  ;;  %4207 = vmatpush1.bf16.msra.mxu1 %v7216_v41  ;;  %v6866_v41 = vunpack.i.h.bf16 %v10187_v49  ;;  %v11652_v30 = vpack.c.bf16 %v10287_v51, %v10280_v22 }
 0x44e   : > { %v11298_v44 = vunpack.i.h.bf16 %v10293_v39  ;;  %v6900_v19 = vunpack.i.l.bf16 %v10293_v39  ;;  %4208 = vmatprep.subr.bf16.mxu1 %v7221_v1  ;;  %v3262_v12 = vsel %vm3174_vm12, %v6851_v54, %v6856_v40 }
 0x450   : > { %v10312_v6 = vsel %vm3007_vm11, %v6835_v11, %v6900_v19  ;;  %v10319_v59 = vsel %vm3007_vm11, %v6836_v2, %v11298_v44  ;;  %v7224_v11 = vld [vmem:[%s11134_s4 + $0x304] ss:$8 sps:$4 sm:$0xff]   ;;  %v3261_v2 = vsel %vm3174_vm12, %v6850_v15, %v6855_v7  ;;  %v6865_v15 = vunpack.i.l.bf16 %v10187_v49  ;;  %v7227_v49 = vld [vmem:[%s11134_s4 + $0x314] ss:$8 sps:$4 sm:$0xff]  }
 0x451   : > { %v10305_v26 = vpop.permute.xlu0 %6903  ;;  %v6909_v0 = vpop.permute.xlu1 %6908  ;;  %4209 = vmatpush1.bf16.msra.mxu1 %v7219_v10  ;;  %v6876_v10 = vunpack.i.h.bf16 %v10220_v58  ;;  %v11653_v31 = vpack.c.bf16 %v10319_v59, %v10312_v6 }
 0x452   : > { %v6911_v60 = vunpack.i.h.bf16 %v6909_v0  ;;  %v6910_v29 = vunpack.i.l.bf16 %v6909_v0  ;;  %4281 = vmatprep.subr.bf16.mxu1 %v7224_v11  ;;  %v6906_v56 = vunpack.i.h.bf16 %v10305_v26  ;;  %v6905_v43 = vunpack.i.l.bf16 %v10305_v26 }
 0x454   : > { %v10338_v33 = vsel %vm3174_vm12, %v6846_v20, %v6911_v60  ;;  %v10343_v45 = vsel %vm3174_vm12, %v6845_v47, %v6910_v29  ;;  %v7222_v20 = vld [vmem:[%s11134_s4 + $0x300] ss:$8 sps:$4 sm:$0xff]   ;;  %v6875_v60 = vunpack.i.l.bf16 %v10220_v58  ;;  %4211 = vmatmul.mubr.bf16.vlgmr.msra.gmra.mrb[28].mxu1 %v3277_v8  ;;  %v6885_v58 = vunpack.i.l.bf16 %v10258_v62 }
 0x455   : > { %v6914_v13 = vpop.permute.xlu0 %6913  ;;  %v6919_v54 = vpop.permute.xlu1 %6918  ;;  %4282 = vmatpush1.bf16.msra.mxu1 %v7222_v20  ;;  %v6895_v20 = vunpack.i.l.bf16 %v10289_v34 }
 0x456   : > { %v6916_v14 = vunpack.i.h.bf16 %v6914_v13  ;;  %v6915_v36 = vunpack.i.l.bf16 %v6914_v13  ;;  %v6921_v1 = vunpack.i.h.bf16 %v6919_v54  ;;  %v6920_v0 = vunpack.i.l.bf16 %v6919_v54  ;;  %4283 = vmatprep.subr.bf16.mxu1 %v7227_v49 }
 0x457   : > { %v6886_v54 = vunpack.i.h.bf16 %v10258_v62  ;;  %v3267_v32 = vsel %vm3174_vm12, %v6880_v9, %v6885_v58  ;;  %v3269_v23 = vsel %vm3174_vm12, %v6890_v3, %v6895_v20 }
 0x458   : > { %v10353_v37 = vsel %vm3174_vm12, %v6855_v7, %v6915_v36  ;;  %v10356_v47 = vsel %vm3174_vm12, %v6856_v40, %v6916_v14  ;;  %v3285_v7 = vpack.c.bf16 %v3262_v12, %v3261_v2  ;;  %v10366_v36 = vsel %vm3174_vm12, %v6866_v41, %v6921_v1  ;;  %v7225_v1 = vld [vmem:[%s11134_s4 + $0x310] ss:$8 sps:$4 sm:$0xff]  }
 0x459   : > { %v6924_v13 = vpop.permute.xlu0 %6923  ;;  %v10369_v40 = vsel %vm3174_vm12, %v6865_v15, %v6920_v0  ;;  %v6929_v2 = vpop.permute.xlu1 %6928  ;;  %v3263_v12 = vsel %vm3174_vm12, %v6860_v46, %v6865_v15  ;;  %v7228_v46 = vld [vmem:[%s11134_s4 + $0x324] ss:$8 sps:$4 sm:$0x1f]   ;;  %v6896_v15 = vunpack.i.h.bf16 %v10289_v34  ;;  %4284 = vmatpush1.bf16.msra.mxu1 %v7225_v1  ;;  %v3268_v57 = vsel %vm3174_vm12, %v6881_v28, %v6886_v54 }
 0x45a   : > { %v6926_v11 = vunpack.i.h.bf16 %v6924_v13  ;;  %v6925_v14 = vunpack.i.l.bf16 %v6924_v13  ;;  %4220 = vmatprep.mubr.bf16.mxu1 %v3285_v7  ;;  %v6931_v62 = vunpack.i.h.bf16 %v6929_v2  ;;  %v6930_v0 = vunpack.i.l.bf16 %v6929_v2  ;;  %5941 = vmatprep.subr.msk.bf16.mxu1 %vm826_vm1, %v7228_v46 }
 0x45b   : > { %v3270_v18 = vsel %vm3174_vm12, %v6891_v42, %v6896_v15  ;;  %v11655_v28 = vpack.c.bf16 %v10356_v47, %v10353_v37  ;;  %v11656_v9 = vpack.c.bf16 %v10366_v36, %v10369_v40  ;;  %v11659_v42 = vsub.s32 1, %v11657_v38 }
 0x45c   : > { %v10388_v24 = vsel %vm3174_vm12, %v6875_v60, %v6925_v14  ;;  %v10391_v8 = vsel %vm3174_vm12, %v6876_v10, %v6926_v11  ;;  %v3264_v11 = vsel %vm3174_vm12, %v6861_v50, %v6866_v41  ;;  %v3184_v14 = vsel %vm3174_vm12, %v6886_v54, %v6931_v62  ;;  %4221 = vmatmul.mubr.bf16.gmra.mrb[32].mxu1 %v3284_v27 }
 0x45d   : > { %v3300_v13 = vpack.c.bf16 %v10391_v8, %v10388_v24  ;;  %v6934_v7 = vpop.permute.xlu0 %6933  ;;  %v3183_v49 = vsel %vm3174_vm12, %v6885_v58, %v6930_v0  ;;  %v6939_v34 = vpop.permute.xlu1 %6938  ;;  %v3967_v24 = vsel %vm826_vm1, %v7230_v5, 0  ;;  %v3292_v0 = vpack.c.bf16 %v3264_v11, %v3263_v12 }
 0x45e   : > { %v6936_v2 = vunpack.i.h.bf16 %v6934_v7  ;;  %v6935_v29 = vunpack.i.l.bf16 %v6934_v7  ;;  %v3307_v16 = vpack.c.bf16 %v3184_v14, %v3183_v49  ;;  %v6941_v50 = vunpack.i.h.bf16 %v6939_v34  ;;  %4286 = vmatpush1.bf16.msra.mxu1 %v3967_v24 }
 0x45f   : > { %v6940_v41 = vunpack.i.l.bf16 %v6939_v34  ;;  %4230 = vmatprep.mubr.bf16.mxu1 %v3292_v0  ;;  %5454 = vmatprep.subr.bf16.mxu1 %v11299_v35  ;;  %v3266_v12 = vsel %vm3174_vm12, %v6871_v17, %v6876_v10  ;;  %v3306_v27 = vpack.c.bf16 %v3268_v57, %v3267_v32  ;;  %v3313_v48 = vpack.c.bf16 %v3270_v18, %v3269_v23 }
 0x460   : > { %v3185_v8 = vsel %vm3174_vm12, %v6895_v20, %v6935_v29  ;;  %v3186_v53 = vsel %vm3174_vm12, %v6896_v15, %v6936_v2  ;;  %v3188_v7 = vsel %vm3174_vm12, %v6906_v56, %v6941_v50  ;;  %v3265_v29 = vsel %vm3174_vm12, %v6870_v4, %v6875_v60 }
 0x461   : > { %v3314_v62 = vpack.c.bf16 %v3186_v53, %v3185_v8  ;;  %v3187_v44 = vsel %vm3174_vm12, %v6905_v43, %v6940_v41  ;;  %v3299_v1 = vpack.c.bf16 %v3266_v12, %v3265_v29  ;;  %v11651_v17 = vunpack.i.h.bf16 %v10293_v39 }
 0x462   : > { %v3321_v26 = vpack.c.bf16 %v3188_v7, %v3187_v44  ;;  %v10481_v3 = vrot.slane %v3424_v21, %v11659_v42  ;;  %vm4980_vm1 = vcmask 392192  }
 0x463   : > { %v3272_v4 = vsel %vm3174_vm12, %v11651_v17, %v6906_v56 }
 0x464   : > { %4231 = vmatmul.mubr.bf16.gmra.mrb[36].mxu1 %v3291_v61  ;;  %v3271_v61 = vsel %vm3174_vm12, %v6900_v19, %v6905_v43 }
 0x465   : > { %4240 = vmatprep.mubr.bf16.mxu1 %v3299_v1  ;;  %v3320_v63 = vpack.c.bf16 %v3272_v4, %v3271_v61 }
 0x46c   : > { %4241 = vmatmul.mubr.bf16.gmra.mrb[40].mxu1 %v3298_v25  ;;  %v11654_v25 = vpack.c.bf16 %v10338_v33, %v10343_v45 }
 0x46d   : > { %4250 = vmatprep.mubr.bf16.mxu1 %v3306_v27 }
 0x474   : > { %4251 = vmatmul.mubr.bf16.gmra.mrb[44].mxu1 %v3305_v52  ;;  %v10477_v52 = vrot.slane %v3424_v21, %v11658_v55 }
 0x475   : > { %4260 = vmatprep.mubr.bf16.mxu1 %v3313_v48 }
 0x47c   : > { %4261 = vmatmul.mubr.bf16.gmra.mrb[48].mxu1 %v11652_v30 }
 0x47d   : > { %4270 = vmatprep.mubr.bf16.mxu1 %v3320_v63 }
 0x484   : > { %4271 = vmatmul.mubr.bf16.gmra.mrb[52].mxu1 %v11653_v31 }
 0x485   : > { %4313 = vmatprep.mubr.bf16.mxu1 %v11299_v35 }
 0x48c   : > { %5942 = vmatmul.mubr.msk.bf16.vlgmr.msra.gmra.mrb[28].mxu1 %vm3944_vm13, %v11654_v25 }
 0x48d   : > { %4323 = vmatprep.mubr.bf16.mxu1 %v11299_v35 }
 0x494   : > { %5943 = vmatmul.mubr.msk.bf16.gmra.mrb[32].mxu1 %vm3944_vm13, %v11655_v28 }
 0x495   : > { %4333 = vmatprep.mubr.bf16.mxu1 %v11299_v35 }
 0x49c   : > { %5944 = vmatmul.mubr.msk.bf16.gmra.mrb[36].mxu1 %vm3944_vm13, %v11656_v9 }
 0x49d   : > { %4343 = vmatprep.mubr.bf16.mxu1 %v11299_v35 }
 0x4a4   : > { %5945 = vmatmul.mubr.msk.bf16.gmra.mrb[40].mxu1 %vm3944_vm13, %v3300_v13 }
 0x4a5   : > { %4353 = vmatprep.mubr.bf16.mxu1 %v11299_v35 }
 0x4ac   : > { %5946 = vmatmul.mubr.msk.bf16.gmra.mrb[44].mxu1 %vm3944_vm13, %v3307_v16 }
 0x4ad   : > { %4363 = vmatprep.mubr.bf16.mxu1 %v11299_v35 }
 0x4b4   : > { %5947 = vmatmul.mubr.msk.bf16.gmra.mrb[48].mxu1 %vm3944_vm13, %v3314_v62 }
 0x4b5   : > { %4373 = vmatprep.mubr.bf16.mxu1 %v11299_v35 }
 0x4bc   : > { %5948 = vmatmul.mubr.msk.bf16.gmra.mrb[52].mxu1 %vm3944_vm13, %v3321_v26 }
 0x55f   : > { %v4315_v22 = vpop.f32.mrb[28].mxu1 }
 0x560   : > { %v10484_v51 = vadd.f32 %v4315_v22, %v10477_v52  ;;  %v4317_v16 = vpop.f32.mrb[29].mxu1 }
 0x561   : > { %v10487_v39 = vadd.f32 %v4317_v16, %v10481_v3  ;;  %v4319_v44 = vpop.f32.mrb[30].mxu1 }
 0x562   : > { %v4384_v19 = vmax.f32 %v10484_v51, 0.0  ;;  %v10491_v6 = vadd.f32 %v4319_v44, %v10477_v52  ;;  %v4321_v59 = vpop.f32.mrb[31].mxu1 }
 0x563   : > { %v4385_v43 = vmax.f32 %v10487_v39, 0.0  ;;  %v10495_v33 = vadd.f32 %v4321_v59, %v10481_v3 }
 0x564   : > { %v4386_v45 = vmax.f32 %v10491_v6, 0.0 }
 0x565   : > { %v6942_v56 = vpack.i.bf16 %v4385_v43, %v4384_v19  ;;  %v4387_v37 = vmax.f32 %v10495_v33, 0.0 }
 0x567   : > { %v6947_v47 = vpack.i.bf16 %v4387_v37, %v4386_v45  ;;  %v4325_v10 = vpop.f32.mrb[32].mxu1  ;;  %6943 = vrot.lane.b32.xlu0 %v6942_v56, %s7341_s30 }
 0x568   : > { %v10509_v60 = vadd.f32 %v4325_v10, %v10477_v52  ;;  %v4327_v36 = vpop.f32.mrb[33].mxu1 }
 0x569   : > { %v10512_v40 = vadd.f32 %v4327_v36, %v10481_v3  ;;  %v4329_v54 = vpop.f32.mrb[34].mxu1  ;;  %6948 = vrot.lane.b32.xlu1 %v6947_v47, %s7341_s30 }
 0x56a   : > { %v4388_v58 = vmax.f32 %v10509_v60, 0.0  ;;  %v10517_v5 = vadd.f32 %v4329_v54, %v10477_v52  ;;  %v4331_v46 = vpop.f32.mrb[35].mxu1 }
 0x56b   : > { %v4389_v15 = vmax.f32 %v10512_v40, 0.0  ;;  %v10521_v20 = vadd.f32 %v4331_v46, %v10481_v3 }
 0x56c   : > { %v4390_v13 = vmax.f32 %v10517_v5, 0.0 }
 0x56d   : > { %v6952_v11 = vpack.i.bf16 %v4389_v15, %v4388_v58  ;;  %v4391_v14 = vmax.f32 %v10521_v20, 0.0 }
 0x56f   : > { %v6957_v49 = vpack.i.bf16 %v4391_v14, %v4390_v13  ;;  %v4335_v2 = vpop.f32.mrb[36].mxu1  ;;  %6953 = vrot.lane.b32.xlu0 %v6952_v11, %s7341_s30 }
 0x570   : > { %v10535_v34 = vadd.f32 %v4335_v2, %v10477_v52  ;;  %v4337_v24 = vpop.f32.mrb[37].mxu1 }
 0x571   : > { %v10538_v8 = vadd.f32 %v4337_v24, %v10481_v3  ;;  %v4339_v53 = vpop.f32.mrb[38].mxu1  ;;  %6958 = vrot.lane.b32.xlu1 %v6957_v49, %s7341_s30 }
 0x572   : > { %v4392_v50 = vmax.f32 %v10535_v34, 0.0  ;;  %v10543_v41 = vadd.f32 %v4339_v53, %v10477_v52  ;;  %v4341_v62 = vpop.f32.mrb[39].mxu1 }
 0x573   : > { %v4393_v0 = vmax.f32 %v10538_v8, 0.0  ;;  %v10547_v7 = vadd.f32 %v4341_v62, %v10481_v3 }
 0x574   : > { %v4394_v26 = vmax.f32 %v10543_v41, 0.0 }
 0x575   : > { %v6962_v29 = vpack.i.bf16 %v4393_v0, %v4392_v50  ;;  %v4395_v12 = vmax.f32 %v10547_v7, 0.0 }
 0x577   : > { %v6967_v1 = vpack.i.bf16 %v4395_v12, %v4394_v26  ;;  %v4345_v32 = vpop.f32.mrb[40].mxu1  ;;  %6963 = vrot.lane.b32.xlu0 %v6962_v29, %s7341_s30 }
 0x578   : > { %v10561_v57 = vadd.f32 %v4345_v32, %v10477_v52  ;;  %v4347_v27 = vpop.f32.mrb[41].mxu1 }
 0x579   : > { %v10564_v23 = vadd.f32 %v4347_v27, %v10481_v3  ;;  %v4349_v18 = vpop.f32.mrb[42].mxu1  ;;  %6968 = vrot.lane.b32.xlu1 %v6967_v1, %s7341_s30 }
 0x57a   : > { %v4396_v48 = vmax.f32 %v10561_v57, 0.0  ;;  %v10569_v61 = vadd.f32 %v4349_v18, %v10477_v52  ;;  %v4351_v17 = vpop.f32.mrb[43].mxu1 }
 0x57b   : > { %v4397_v4 = vmax.f32 %v10564_v23, 0.0  ;;  %v10573_v63 = vadd.f32 %v4351_v17, %v10481_v3 }
 0x57c   : > { %v4398_v30 = vmax.f32 %v10569_v61, 0.0 }
 0x57d   : > { %v6972_v31 = vpack.i.bf16 %v4397_v4, %v4396_v48  ;;  %v4399_v25 = vmax.f32 %v10573_v63, 0.0 }
 0x57f   : > { %v6977_v28 = vpack.i.bf16 %v4399_v25, %v4398_v30  ;;  %v4355_v9 = vpop.f32.mrb[44].mxu1  ;;  %6973 = vrot.lane.b32.xlu0 %v6972_v31, %s7341_s30 }
 0x580   : > { %v10587_v21 = vadd.f32 %v4355_v9, %v10477_v52  ;;  %v4357_v38 = vpop.f32.mrb[45].mxu1 }
 0x581   : > { %v10590_v55 = vadd.f32 %v4357_v38, %v10481_v3  ;;  %v4359_v42 = vpop.f32.mrb[46].mxu1  ;;  %6978 = vrot.lane.b32.xlu1 %v6977_v28, %s7341_s30 }
 0x582   : > { %v4400_v22 = vmax.f32 %v10587_v21, 0.0  ;;  %v10595_v16 = vadd.f32 %v4359_v42, %v10477_v52  ;;  %v4361_v44 = vpop.f32.mrb[47].mxu1 }
 0x583   : > { %v4401_v59 = vmax.f32 %v10590_v55, 0.0  ;;  %v10599_v56 = vadd.f32 %v4361_v44, %v10481_v3 }
 0x584   : > { %v4402_v47 = vmax.f32 %v10595_v16, 0.0 }
 0x585   : > { %v6982_v10 = vpack.i.bf16 %v4401_v59, %v4400_v22  ;;  %v4403_v36 = vmax.f32 %v10599_v56, 0.0 }
 0x587   : > { %v6987_v54 = vpack.i.bf16 %v4403_v36, %v4402_v47  ;;  %v4365_v46 = vpop.f32.mrb[48].mxu1  ;;  %6983 = vrot.lane.b32.xlu0 %v6982_v10, %s7341_s30 }
 0x588   : > { %v10613_v11 = vadd.f32 %v4365_v46, %v10477_v52  ;;  %v4367_v49 = vpop.f32.mrb[49].mxu1 }
 0x589   : > { %v10616_v2 = vadd.f32 %v4367_v49, %v10481_v3  ;;  %v4369_v24 = vpop.f32.mrb[50].mxu1  ;;  %6988 = vrot.lane.b32.xlu1 %v6987_v54, %s7341_s30 }
 0x58a   : > { %v11307_v53 = vmax.f32 %v10613_v11, 0.0  ;;  %v10621_v62 = vadd.f32 %v4369_v24, %v10477_v52  ;;  %v4371_v29 = vpop.f32.mrb[51].mxu1 }
 0x58b   : > { %v11308_v1 = vmax.f32 %v10616_v2, 0.0  ;;  %v10625_v32 = vadd.f32 %v4371_v29, %v10481_v3 }
 0x58c   : > { %v11303_v27 = vmax.f32 %v10621_v62, 0.0 }
 0x58d   : > { %v6992_v18 = vpack.i.bf16 %v11308_v1, %v11307_v53  ;;  %v11306_v17 = vmax.f32 %v10625_v32, 0.0 }
 0x58f   : > { %v6997_v31 = vpack.i.bf16 %v11306_v17, %v11303_v27  ;;  %v4375_v28 = vpop.f32.mrb[52].mxu1  ;;  %6993 = vrot.lane.b32.xlu0 %v6992_v18, %s7341_s30 }
 0x590   : > { %v10639_v9 = vadd.f32 %v4375_v28, %v10477_v52  ;;  %v4377_v38 = vpop.f32.mrb[53].mxu1 }
 0x591   : > { %v10642_v42 = vadd.f32 %v4377_v38, %v10481_v3  ;;  %v4379_v44 = vpop.f32.mrb[54].mxu1  ;;  %6998 = vrot.lane.b32.xlu1 %v6997_v31, %s7341_s30 }
 0x592   : > { %v11301_v10 = vmax.f32 %v10639_v9, 0.0  ;;  %v10647_v54 = vadd.f32 %v4379_v44, %v10477_v52  ;;  %v4381_v46 = vpop.f32.mrb[55].mxu1 }
 0x593   : > { %v11302_v49 = vmax.f32 %v10642_v42, 0.0  ;;  %v10651_v24 = vadd.f32 %v4381_v46, %v10481_v3 }
 0x594   : > { %v11304_v29 = vmax.f32 %v10647_v54, 0.0 }
 0x595   : > { %v7002_v18 = vpack.i.bf16 %v11302_v49, %v11301_v10  ;;  %v11305_v31 = vmax.f32 %v10651_v24, 0.0 }
 0x597   : > { %v7007_v52 = vpack.i.bf16 %v11305_v31, %v11304_v29  ;;  %7003 = vrot.lane.b32.xlu0 %v7002_v18, %s7341_s30 }
 0x599   : > { %7008 = vrot.lane.b32.xlu1 %v7007_v52, %s7341_s30 }
 0x5d9   : > { %v6944_v3 = vpop.permute.xlu0 %6943 }
 0x5da   : > { %v6946_v28 = vunpack.i.h.bf16 %v6944_v3  ;;  %v6945_v38 = vunpack.i.l.bf16 %v6944_v3 }
 0x5db   : > { %v6949_v44 = vpop.permute.xlu1 %6948 }
 0x5dc   : > { %v6951_v46 = vunpack.i.h.bf16 %v6949_v44  ;;  %v6950_v35 = vunpack.i.l.bf16 %v6949_v44  ;;  %v4497_v10 = vsel %vm4496_vm14, %v6945_v38, %v6946_v28  ;;  %v4540_v29 = vmax.f32 %v4385_v43, %v6946_v28 }
 0x5dd   : > { %v4539_v52 = vmax.f32 %v4384_v19, %v4497_v10 }
 0x5de   : > { %v4542_v49 = vmax.f32 %v4387_v37, %v6951_v46  ;;  %v4498_v27 = vsel %vm4496_vm14, %v6950_v35, %v6951_v46  ;;  %v4598_v53 = vrot.slane %v4540_v29, 1 }
 0x5df   : > { %v4541_v18 = vmax.f32 %v4386_v45, %v4498_v27  ;;  %v4595_v37 = vrot.slane %v4539_v52, 1 }
 0x5e0   : > { %v4599_v31 = vrot.slane %v4542_v49, 1 }
 0x5e1   : > { %v6954_v3 = vpop.permute.xlu0 %6953  ;;  %v4596_v38 = vrot.slane %v4541_v18, 1 }
 0x5e2   : > { %v6956_v17 = vunpack.i.h.bf16 %v6954_v3  ;;  %v6955_v44 = vunpack.i.l.bf16 %v6954_v3  ;;  %v4600_v51 = vsel %vm506_vm0, %v4598_v53, %v4599_v31 }
 0x5e3   : > { %v6959_v1 = vpop.permute.xlu1 %6958 }
 0x5e4   : > { %v4544_v33 = vmax.f32 %v4389_v15, %v6956_v17  ;;  %v4499_v35 = vsel %vm4496_vm14, %v6955_v44, %v6956_v17  ;;  %v6961_v39 = vunpack.i.h.bf16 %v6959_v1  ;;  %v6960_v43 = vunpack.i.l.bf16 %v6959_v1 }
 0x5e5   : > { %v4543_v6 = vmax.f32 %v4388_v58, %v4499_v35  ;;  %v4597_v15 = vsel %vm506_vm0, %v4595_v37, %v4596_v38  ;;  %v4678_v17 = vmax.f32 %v4540_v29, %v4600_v51 }
 0x5e6   : > { %v4603_v19 = vrot.slane %v4544_v33, 1  ;;  %v4546_v45 = vmax.f32 %v4391_v14, %v6961_v39  ;;  %v4500_v27 = vsel %vm4496_vm14, %v6960_v43, %v6961_v39  ;;  %v4677_v39 = vmax.f32 %v4539_v52, %v4597_v15 }
 0x5e7   : > { %v4601_v10 = vrot.slane %v4543_v6, 1  ;;  %v4545_v40 = vmax.f32 %v4390_v13, %v4500_v27 }
 0x5e8   : > { %v4604_v1 = vsel %vm506_vm0, %v4599_v31, %v4603_v19  ;;  %v4607_v53 = vrot.slane %v4546_v45, 1 }
 0x5e9   : > { %v4680_v28 = vmax.f32 %v4542_v49, %v4604_v1  ;;  %v4602_v60 = vsel %vm506_vm0, %v4596_v38, %v4601_v10  ;;  %v6964_v58 = vpop.permute.xlu0 %6963  ;;  %v4605_v14 = vrot.slane %v4545_v40, 1 }
 0x5ea   : > { %v6966_v46 = vunpack.i.h.bf16 %v6964_v58  ;;  %v6965_v3 = vunpack.i.l.bf16 %v6964_v58  ;;  %v4679_v20 = vmax.f32 %v4541_v18, %v4602_v60  ;;  %v4608_v18 = vsel %vm506_vm0, %v4603_v19, %v4607_v53 }
 0x5eb   : > { %v6969_v44 = vpop.permute.xlu1 %6968  ;;  %v10689_v35 = vpack.c.bf16 %v4680_v28, %v4678_v17  ;;  %v4606_v34 = vsel %vm506_vm0, %v4601_v10, %v4605_v14  ;;  %v4682_v51 = vmax.f32 %v4544_v33, %v4608_v18 }
 0x5ec   : > { %v4548_v5 = vmax.f32 %v4393_v0, %v6966_v46  ;;  %v4501_v13 = vsel %vm4496_vm14, %v6965_v3, %v6966_v46  ;;  %v6971_v31 = vunpack.i.h.bf16 %v6969_v44  ;;  %v6970_v29 = vunpack.i.l.bf16 %v6969_v44 }
 0x5ed   : > { %v4547_v49 = vmax.f32 %v4392_v50, %v4501_v13  ;;  %4730 = vmatprep.subr.bf16.mxu0 %v10689_v35  ;;  %v10697_v38 = vpack.c.bf16 %v4679_v20, %v4677_v39  ;;  %v4681_v41 = vmax.f32 %v4543_v6, %v4606_v34 }
 0x5ee   : > { %v4611_v43 = vrot.slane %v4548_v5, 1  ;;  %v4550_v52 = vmax.f32 %v4395_v12, %v6971_v31  ;;  %v4502_v8 = vsel %vm4496_vm14, %v6970_v29, %v6971_v31 }
 0x5ef   : > { %v4609_v0 = vrot.slane %v4547_v49, 1  ;;  %v4549_v37 = vmax.f32 %v4394_v26, %v4502_v8  ;;  %4731 = vmatpush1.bf16.msra.mxu0 %v10697_v38 }
 0x5f0   : > { %v4612_v50 = vsel %vm506_vm0, %v4607_v53, %v4611_v43  ;;  %v4615_v1 = vrot.slane %v4550_v52, 1 }
 0x5f1   : > { %v4684_v27 = vmax.f32 %v4546_v45, %v4612_v50  ;;  %v4610_v19 = vsel %vm506_vm0, %v4605_v14, %v4609_v0  ;;  %v6974_v15 = vpop.permute.xlu0 %6973  ;;  %v4613_v28 = vrot.slane %v4549_v37, 1 }
 0x5f2   : > { %v6976_v7 = vunpack.i.h.bf16 %v6974_v15  ;;  %v6975_v12 = vunpack.i.l.bf16 %v6974_v15  ;;  %v4683_v17 = vmax.f32 %v4545_v40, %v4610_v19  ;;  %v4616_v40 = vsel %vm506_vm0, %v4611_v43, %v4615_v1 }
 0x5f3   : > { %v6979_v60 = vpop.permute.xlu1 %6978  ;;  %v10709_v58 = vpack.c.bf16 %v4684_v27, %v4682_v51  ;;  %v4614_v57 = vsel %vm506_vm0, %v4609_v0, %v4613_v28  ;;  %v4686_v14 = vmax.f32 %v4548_v5, %v4616_v40  ;;  %v11661_v40 = vmax.f32 %v10613_v11, 0.0 }
 0x5f4   : > { %v4552_v26 = vmax.f32 %v4397_v4, %v6976_v7  ;;  %v4503_v10 = vsel %vm4496_vm14, %v6975_v12, %v6976_v7  ;;  %v6981_v53 = vunpack.i.h.bf16 %v6979_v60  ;;  %v6980_v33 = vunpack.i.l.bf16 %v6979_v60 }
 0x5f5   : > { %v4551_v45 = vmax.f32 %v4396_v48, %v4503_v10  ;;  %4732 = vmatprep.subr.bf16.mxu0 %v10709_v58  ;;  %v10717_v46 = vpack.c.bf16 %v4683_v17, %v4681_v41  ;;  %v4685_v61 = vmax.f32 %v4547_v49, %v4614_v57 }
 0x5f6   : > { %v4619_v3 = vrot.slane %v4552_v26, 1  ;;  %v4554_v6 = vmax.f32 %v4399_v25, %v6981_v53  ;;  %v4504_v23 = vsel %vm4496_vm14, %v6980_v33, %v6981_v53 }
 0x5f7   : > { %v4617_v4 = vrot.slane %v4551_v45, 1  ;;  %v4553_v20 = vmax.f32 %v4398_v30, %v4504_v23  ;;  %4733 = vmatpush1.bf16.msra.mxu0 %v10717_v46 }
 0x5f8   : > { %v4620_v48 = vsel %vm506_vm0, %v4615_v1, %v4619_v3  ;;  %v4623_v31 = vrot.slane %v4554_v6, 1 }
 0x5f9   : > { %v4688_v44 = vmax.f32 %v4550_v52, %v4620_v48  ;;  %v4618_v39 = vsel %vm506_vm0, %v4613_v28, %v4617_v4  ;;  %v6984_v13 = vpop.permute.xlu0 %6983  ;;  %v4621_v18 = vrot.slane %v4553_v20, 1  ;;  %v11663_v48 = vmax.f32 %v10621_v62, 0.0 }
 0x5fa   : > { %v6986_v63 = vunpack.i.h.bf16 %v6984_v13  ;;  %v6985_v25 = vunpack.i.l.bf16 %v6984_v13  ;;  %v4687_v29 = vmax.f32 %v4549_v37, %v4618_v39  ;;  %v4624_v37 = vsel %vm506_vm0, %v4619_v3, %v4623_v31 }
 0x5fb   : > { %v6989_v43 = vpop.permute.xlu1 %6988  ;;  %v10729_v8 = vpack.c.bf16 %v4688_v44, %v4686_v14  ;;  %v4622_v21 = vsel %vm506_vm0, %v4617_v4, %v4621_v18  ;;  %v4690_v19 = vmax.f32 %v4552_v26, %v4624_v37 }
 0x5fc   : > { %v4556_v30 = vmax.f32 %v4401_v59, %v6986_v63  ;;  %v4505_v0 = vsel %vm4496_vm14, %v6985_v25, %v6986_v63  ;;  %v6991_v34 = vunpack.i.h.bf16 %v6989_v43  ;;  %v6990_v5 = vunpack.i.l.bf16 %v6989_v43 }
 0x5fd   : > { %v4555_v52 = vmax.f32 %v4400_v22, %v4505_v0  ;;  %4734 = vmatprep.subr.bf16.mxu0 %v10729_v8  ;;  %v10737_v50 = vpack.c.bf16 %v4687_v29, %v4685_v61  ;;  %v4689_v16 = vmax.f32 %v4551_v45, %v4622_v21 }
 0x5fe   : > { %v4627_v51 = vrot.slane %v4556_v30, 1  ;;  %v4558_v49 = vmax.f32 %v4403_v36, %v6991_v34  ;;  %v4506_v55 = vsel %vm4496_vm14, %v6990_v5, %v6991_v34  ;;  %v11664_v34 = vmax.f32 %v10642_v42, 0.0 }
 0x5ff   : > { %v4625_v59 = vrot.slane %v4555_v52, 1  ;;  %v4557_v27 = vmax.f32 %v4402_v47, %v4506_v55  ;;  %4735 = vmatpush1.bf16.msra.mxu0 %v10737_v50  ;;  %v11660_v47 = vmax.f32 %v10616_v2, 0.0 }
 0x600   : > { %v4628_v22 = vsel %vm506_vm0, %v4623_v31, %v4627_v51  ;;  %v4631_v12 = vrot.slane %v4558_v49, 1 }
 0x601   : > { %v4692_v15 = vmax.f32 %v4554_v6, %v4628_v22  ;;  %v4626_v1 = vsel %vm506_vm0, %v4621_v18, %v4625_v59  ;;  %v6994_v7 = vpop.permute.xlu0 %6993  ;;  %v4629_v28 = vrot.slane %v4557_v27, 1  ;;  %v11666_v22 = vmax.f32 %v10651_v24, 0.0 }
 0x602   : > { %v6996_v56 = vunpack.i.h.bf16 %v6994_v7  ;;  %v6995_v36 = vunpack.i.l.bf16 %v6994_v7  ;;  %v4691_v17 = vmax.f32 %v4553_v20, %v4626_v1  ;;  %v4632_v23 = vsel %vm506_vm0, %v4627_v51, %v4631_v12 }
 0x603   : > { %v6999_v60 = vpop.permute.xlu1 %6998  ;;  %v10749_v41 = vpack.c.bf16 %v4692_v15, %v4690_v19  ;;  %v11662_v20 = vmax.f32 %v10625_v32, 0.0  ;;  %v4630_v11 = vsel %vm506_vm0, %v4625_v59, %v4629_v28  ;;  %v4694_v39 = vmax.f32 %v4556_v30, %v4632_v23 }
 0x604   : > { %v4560_v10 = vmax.f32 %v11660_v47, %v6996_v56  ;;  %v4507_v53 = vsel %vm4496_vm14, %v6995_v36, %v6996_v56  ;;  %v7001_v33 = vunpack.i.h.bf16 %v6999_v60  ;;  %v7000_v26 = vunpack.i.l.bf16 %v6999_v60 }
 0x605   : > { %v4559_v3 = vmax.f32 %v11661_v40, %v4507_v53  ;;  %4736 = vmatprep.subr.bf16.mxu0 %v10749_v41  ;;  %v10757_v6 = vpack.c.bf16 %v4691_v17, %v4689_v16  ;;  %v4693_v62 = vmax.f32 %v4555_v52, %v4630_v11  ;;  %v11667_v1 = vmax.f32 %v10647_v54, 0.0  ;;  %v5954_v11 = vld [vmem:[%s11136_s6 + $0xc] sm:$0xf] }
 0x606   : > { %v4635_v4 = vrot.slane %v4560_v10, 1  ;;  %v4562_v45 = vmax.f32 %v11662_v20, %v7001_v33  ;;  %v4508_v2 = vsel %vm4496_vm14, %v7000_v26, %v7001_v33  ;;  %v11668_v20 = vld [vmem:[#allocation3_spill] sm:$0xff] }
 0x607   : > { %v4633_v57 = vrot.slane %v4559_v3, 1  ;;  %v4561_v14 = vmax.f32 %v11663_v48, %v4508_v2  ;;  %4737 = vmatpush1.bf16.msra.mxu0 %v10757_v6  ;;  %v4719_v2 = vld [vmem:[%s11136_s6] sm:$0xf]  ;;  %v5950_v48 = vld [vmem:[%s11136_s6 + $0x4] sm:$0xf] }
 0x608   : > { %v4636_v44 = vsel %vm506_vm0, %v4631_v12, %v4635_v4  ;;  %v4639_v25 = vrot.slane %v4562_v45, 1 }
 0x609   : > { %v4696_v13 = vmax.f32 %v4558_v49, %v4636_v44  ;;  %v4634_v31 = vsel %vm506_vm0, %v4629_v28, %v4633_v57  ;;  %v7004_v63 = vpop.permute.xlu0 %7003  ;;  %v4637_v43 = vrot.slane %v4561_v14, 1  ;;  %v11665_v49 = vmax.f32 %v10639_v9, 0.0  ;;  %v7238_v44 = vld [vmem:[%s11137_s7 + $0x18] sm:$0xff]  }
 0x60a   : > { %v7006_v32 = vunpack.i.h.bf16 %v7004_v63  ;;  %v7005_v29 = vunpack.i.l.bf16 %v7004_v63  ;;  %v4695_v18 = vmax.f32 %v4557_v27, %v4634_v31  ;;  %v4640_v27 = vsel %vm506_vm0, %v4635_v4, %v4639_v25 }
 0x60b   : > { %v7009_v61 = vpop.permute.xlu1 %7008  ;;  %v10769_v0 = vpack.c.bf16 %v4696_v13, %v4694_v39  ;;  %v4638_v19 = vsel %vm506_vm0, %v4633_v57, %v4637_v43  ;;  %v4698_v56 = vmax.f32 %v4560_v10, %v4640_v27  ;;  %v11669_v57 = vmov 0   ;;  %v7239_v39 = vld [vmem:[%s11137_s7 + $0x60] sm:$0xff]   ;;  %v7262_v27 = vld [vmem:[%s11137_s7 + $0x118] sm:$0xff]  }
 0x60c   : > { %v4564_v5 = vmax.f32 %v11664_v34, %v7006_v32  ;;  %v4509_v37 = vsel %vm4496_vm14, %v7005_v29, %v7006_v32  ;;  %v7011_v51 = vunpack.i.h.bf16 %v7009_v61  ;;  %v7010_v30 = vunpack.i.l.bf16 %v7009_v61  ;;  %v7241_v29 = vld [vmem:[%s11137_s7 + $0x68] sm:$0xff]   ;;  %v7244_v61 = vld [vmem:[%s11137_s7 + $0x30] sm:$0xff]   ;;  %v7247_v34 = vld [vmem:[%s11137_s7 + $0xc0] sm:$0xff]  }
 0x60d   : > { %v4563_v55 = vmax.f32 %v11665_v49, %v4509_v37  ;;  %4738 = vmatprep.subr.bf16.mxu0 %v10769_v0  ;;  %v10777_v59 = vpack.c.bf16 %v4695_v18, %v4693_v62  ;;  %v4697_v16 = vmax.f32 %v4559_v3, %v4638_v19  ;;  %v7242_v18 = vld [vmem:[%s11137_s7 + $0x28] sm:$0xff]   ;;  %v7246_v62 = vld [vmem:[%s11137_s7 + $0x38] sm:$0xff]  }
 0x60e   : > { %v4643_v21 = vrot.slane %v4564_v5, 1  ;;  %v4566_v52 = vmax.f32 %v11666_v22, %v7011_v51  ;;  %v4510_v42 = vsel %vm4496_vm14, %v7010_v30, %v7011_v51  ;;  %v7253_v51 = vld [vmem:[%s11137_s7 + $0x100] sm:$0xff]  }
 0x60f   : > { %v4641_v15 = vrot.slane %v4563_v55, 1  ;;  %v4565_v7 = vmax.f32 %v11667_v1, %v4510_v42  ;;  %4739 = vmatpush1.bf16.msra.mxu0 %v10777_v59  ;;  %5455 = vmatpush1.bf16.msra.mxu1 %v7253_v51  ;;  %v7268_v1 = vld [vmem:[%s11137_s7 + $0x128] sm:$0xff]  }
 0x610   : > { %v4644_v9 = vsel %vm506_vm0, %v4639_v25, %v4643_v21  ;;  %v4647_v12 = vrot.slane %v4566_v52, 1  ;;  %v7240_v25 = vld [vmem:[%s11137_s7 + $0x20] sm:$0xff]   ;;  %5456 = vmatprep.subr.bf16.mxu1 %v11669_v57 }
 0x611   : > { %v4700_v36 = vmax.f32 %v4562_v45, %v4644_v9  ;;  %v4642_v17 = vsel %vm506_vm0, %v4637_v43, %v4641_v15  ;;  %v4645_v28 = vrot.slane %v4565_v7, 1  ;;  %v7243_v43 = vld [vmem:[%s11137_s7 + $0x70] sm:$0xff]   ;;  %v7270_v9 = vld [vmem:[%s11137_s7 + $0x138] sm:$0xff]  }
 0x612   : > { %v4704_v24 = vmax.f32 %v4566_v52, %v4647_v12  ;;  %v4648_v60 = vsel %vm506_vm0, %v4643_v21, %v4647_v12  ;;  %v4699_v47 = vmax.f32 %v4561_v14, %v4642_v17  ;;  %v5952_v14 = vld [vmem:[%s11136_s6 + $0x8] sm:$0xf]  ;;  %v7265_v21 = vld [vmem:[%s11137_s7 + $0x120] sm:$0xff]  }
 0x613   : > { %v4646_v53 = vsel %vm506_vm0, %v4641_v15, %v4645_v28  ;;  %v4702_v33 = vmax.f32 %v4564_v5, %v4648_v60  ;;  %v4703_v54 = vmax.f32 %v4565_v7, %v4645_v28  ;;  %v10791_v26 = vpack.c.bf16 %v4700_v36, %v4698_v56  ;;  %v7269_v7 = vld [vmem:[%s11137_s7 + $0x130] sm:$0xff]   ;;  %v7272_v60 = vld [vmem:[%s11137_s7 + $0x148] sm:$0xff]  }
 0x614   : > { %v4701_v40 = vmax.f32 %v4563_v55, %v4646_v53  ;;  %v10793_v23 = vpack.c.bf16 %v4699_v47, %v4697_v16  ;;  %v7256_v55 = vld [vmem:[%s11137_s7 + $0x108] sm:$0xff]   ;;  %v7273_v16 = vld [vmem:[%s11137_s7 + $0x150] sm:$0xff]   ;;  %v7274_v47 = vld [vmem:[%s11137_s7 + $0x158] sm:$0xff]   ;;  %vm4961_vm0 = vcmask 130048  }
 0x615   : > { %v4718_v4 = vpack.c.bf16 %v4704_v24, %v4702_v33  ;;  %4740 = vmatprep.subr.bf16.mxu0 %v10791_v26  ;;  %5457 = vmatpush1.bf16.msra.mxu1 %v7256_v55  ;;  %v7271_v24 = vld [vmem:[%s11137_s7 + $0x140] sm:$0xff]  }
 0x616   : > { %v4717_v10 = vpack.c.bf16 %v4703_v54, %v4701_v40  ;;  %4741 = vmatpush1.bf16.msra.mxu0 %v10793_v23  ;;  %5458 = vmatprep.subr.bf16.mxu1 %v11669_v57  ;;  %v7275_v53 = vld [vmem:[%s11137_s7 + $0x160] sm:$0xff]  }
 0x617   : > { %v10798_v45 = vand.u32 %v4718_v4, %v11668_v20 }
 0x618   : > { %v10801_v3 = vand.u32 %v4717_v10, %v11668_v20 }
 0x619   : > { %4742 = vmatprep.subr.bf16.mxu0 %v10798_v45 }
 0x61a   : > { %4743 = vmatpush1.bf16.msra.mxu0 %v10801_v3 }
 0x61b   : > { %4776 = vmatprep.subr.bf16.mxu0 %v10689_v35 }
 0x61d   : > { %5949 = vmatmul.mubr.msk.bf16.vlgmr.msra.gmra.mrb[64].mxu0 %vm4720_vm15, %v4719_v2  ;;  %v7249_v2 = vld [vmem:[%s11137_s7 + $0xc8] sm:$0xff]  }
 0x61e   : > { %4777 = vmatpush1.bf16.msra.mxu0 %v10697_v38  ;;  %4808 = vmatprep.mubr.bf16.mxu0 %v11669_v57 }
 0x61f   : > { %4778 = vmatprep.subr.bf16.mxu0 %v10709_v58 }
 0x622   : > { %4779 = vmatpush1.bf16.msra.mxu0 %v10717_v46 }
 0x623   : > { %4780 = vmatprep.subr.bf16.mxu0 %v10729_v8 }
 0x626   : > { %4781 = vmatpush1.bf16.msra.mxu0 %v10737_v50 }
 0x627   : > { %4782 = vmatprep.subr.bf16.mxu0 %v10749_v41 }
 0x62a   : > { %4783 = vmatpush1.bf16.msra.mxu0 %v10757_v6 }
 0x62b   : > { %4784 = vmatprep.subr.bf16.mxu0 %v10769_v0 }
 0x62e   : > { %4785 = vmatpush1.bf16.msra.mxu0 %v10777_v59 }
 0x62f   : > { %4786 = vmatprep.subr.bf16.mxu0 %v10791_v26 }
 0x632   : > { %4787 = vmatpush1.bf16.msra.mxu0 %v10793_v23 }
 0x633   : > { %4788 = vmatprep.subr.bf16.mxu0 %v10798_v45 }
 0x636   : > { %4789 = vmatpush1.bf16.msra.mxu0 %v10801_v3 }
 0x637   : > { %4822 = vmatprep.subr.bf16.mxu0 %v10689_v35 }
 0x639   : > { %5951 = vmatmul.mubr.msk.bf16.vlgmr.msra.gmra.mrb[68].mxu0 %vm4720_vm15, %v5950_v48  ;;  %v7251_v48 = vld [vmem:[%s11137_s7 + $0xd0] sm:$0xff]  }
 0x63a   : > { %4823 = vmatpush1.bf16.msra.mxu0 %v10697_v38  ;;  %4854 = vmatprep.mubr.bf16.mxu0 %v11669_v57 }
 0x63b   : > { %4824 = vmatprep.subr.bf16.mxu0 %v10709_v58 }
 0x63e   : > { %4825 = vmatpush1.bf16.msra.mxu0 %v10717_v46 }
 0x63f   : > { %4826 = vmatprep.subr.bf16.mxu0 %v10729_v8 }
 0x642   : > { %4827 = vmatpush1.bf16.msra.mxu0 %v10737_v50 }
 0x643   : > { %4828 = vmatprep.subr.bf16.mxu0 %v10749_v41 }
 0x646   : > { %4829 = vmatpush1.bf16.msra.mxu0 %v10757_v6 }
 0x647   : > { %4830 = vmatprep.subr.bf16.mxu0 %v10769_v0 }
 0x64a   : > { %4831 = vmatpush1.bf16.msra.mxu0 %v10777_v59 }
 0x64b   : > { %4832 = vmatprep.subr.bf16.mxu0 %v10791_v26 }
 0x64e   : > { %4833 = vmatpush1.bf16.msra.mxu0 %v10793_v23 }
 0x64f   : > { %4834 = vmatprep.subr.bf16.mxu0 %v10798_v45 }
 0x652   : > { %4835 = vmatpush1.bf16.msra.mxu0 %v10801_v3 }
 0x653   : > { %4868 = vmatprep.subr.bf16.mxu0 %v10689_v35 }
 0x655   : > { %5953 = vmatmul.mubr.msk.bf16.vlgmr.msra.gmra.mrb[72].mxu0 %vm4720_vm15, %v5952_v14  ;;  %v7252_v14 = vld [vmem:[%s11137_s7 + $0x90] sm:$0xff]  }
 0x656   : > { %4869 = vmatpush1.bf16.msra.mxu0 %v10697_v38  ;;  %4900 = vmatprep.mubr.bf16.mxu0 %v11669_v57 }
 0x657   : > { %4870 = vmatprep.subr.bf16.mxu0 %v10709_v58 }
 0x65a   : > { %4871 = vmatpush1.bf16.msra.mxu0 %v10717_v46 }
 0x65b   : > { %4872 = vmatprep.subr.bf16.mxu0 %v10729_v8 }
 0x65e   : > { %4873 = vmatpush1.bf16.msra.mxu0 %v10737_v50 }
 0x65f   : > { %4874 = vmatprep.subr.bf16.mxu0 %v10749_v41 }
 0x662   : > { %4875 = vmatpush1.bf16.msra.mxu0 %v10757_v6 }
 0x663   : > { %4876 = vmatprep.subr.bf16.mxu0 %v10769_v0 }
 0x666   : > { %4877 = vmatpush1.bf16.msra.mxu0 %v10777_v59 }
 0x667   : > { %4878 = vmatprep.subr.bf16.mxu0 %v10791_v26 }
 0x66a   : > { %4879 = vmatpush1.bf16.msra.mxu0 %v10793_v23 }
 0x66b   : > { %4880 = vmatprep.subr.bf16.mxu0 %v10798_v45 }
 0x66e   : > { %4881 = vmatpush1.bf16.msra.mxu0 %v10801_v3 }
 0x66f   : > { %4914 = vmatprep.subr.bf16.mxu0 %v10689_v35  ;;  %v5956_v35 = vld [vmem:[%s11136_s6 + $0x10] sm:$0xf] }
 0x671   : > { %5955 = vmatmul.mubr.msk.bf16.vlgmr.msra.gmra.mrb[76].mxu0 %vm4720_vm15, %v5954_v11  ;;  %v7254_v11 = vld [vmem:[%s11137_s7 + $0xd8] sm:$0xff]  }
 0x672   : > { %4915 = vmatpush1.bf16.msra.mxu0 %v10697_v38  ;;  %4946 = vmatprep.mubr.bf16.mxu0 %v11669_v57  ;;  %v7231_v38 = vld [vmem:[%s11137_s7 + $0x40] sm:$0xff]  }
 0x673   : > { %4916 = vmatprep.subr.bf16.mxu0 %v10709_v58  ;;  %v7232_v58 = vld [vmem:[%s11137_s7] sm:$0xff]  }
 0x676   : > { %4917 = vmatpush1.bf16.msra.mxu0 %v10717_v46  ;;  %v7233_v46 = vld [vmem:[%s11137_s7 + $0x48] sm:$0xff]  }
 0x677   : > { %4918 = vmatprep.subr.bf16.mxu0 %v10729_v8  ;;  %v7234_v8 = vld [vmem:[%s11137_s7 + $0x8] sm:$0xff]  }
 0x67a   : > { %4919 = vmatpush1.bf16.msra.mxu0 %v10737_v50  ;;  %v7235_v50 = vld [vmem:[%s11137_s7 + $0x50] sm:$0xff]  }
 0x67b   : > { %4920 = vmatprep.subr.bf16.mxu0 %v10749_v41  ;;  %v7236_v41 = vld [vmem:[%s11137_s7 + $0x10] sm:$0xff]  }
 0x67e   : > { %4921 = vmatpush1.bf16.msra.mxu0 %v10757_v6  ;;  %v7237_v6 = vld [vmem:[%s11137_s7 + $0x58] sm:$0xff]  }
 0x67f   : > { %4922 = vmatprep.subr.bf16.mxu0 %v10769_v0  ;;  %v7245_v0 = vld [vmem:[%s11137_s7 + $0x78] sm:$0xff]  }
 0x682   : > { %4923 = vmatpush1.bf16.msra.mxu0 %v10777_v59  ;;  %v7259_v59 = vld [vmem:[%s11137_s7 + $0x110] sm:$0xff]  }
 0x683   : > { %4924 = vmatprep.subr.bf16.mxu0 %v10791_v26  ;;  %5459 = vmatpush1.bf16.msra.mxu1 %v7259_v59 }
 0x684   : > { %5460 = vmatprep.subr.bf16.mxu1 %v11669_v57 }
 0x686   : > { %4925 = vmatpush1.bf16.msra.mxu0 %v10793_v23 }
 0x687   : > { %4926 = vmatprep.subr.bf16.mxu0 %v10798_v45  ;;  %5461 = vmatpush1.bf16.msra.mxu1 %v7262_v27  ;;  %v7248_v45 = vld [vmem:[%s11137_s7 + $0x80] sm:$0xff]  }
 0x688   : > { %5462 = vmatprep.subr.bf16.mxu1 %v11669_v57 }
 0x68a   : > { %4927 = vmatpush1.bf16.msra.mxu0 %v10801_v3 }
 0x68b   : > { %6025 = vmatprep.subr.bf16.mxu0 %v7231_v38  ;;  %5463 = vmatpush1.bf16.msra.mxu1 %v7265_v21  ;;  %v7257_v38 = vld [vmem:[%s11137_s7 + $0xe0] sm:$0xff]  }
 0x68c   : > { %5464 = vmatprep.subr.bf16.mxu1 %v11669_v57  ;;  %v7276_v21 = vld [vmem:[%s11139_s9] sm:$0xff]  }
 0x68d   : > { %5957 = vmatmul.mubr.msk.bf16.vlgmr.msra.gmra.mrb[80].mxu0 %vm4720_vm15, %v5956_v35  ;;  %v7255_v35 = vld [vmem:[%s11137_s7 + $0x98] sm:$0xff]  }
 0x68e   : > { %6026 = vmatpush3.bf16.msra.mxu0 %v7232_v58  ;;  %v7258_v58 = vld [vmem:[%s11137_s7 + $0xa0] sm:$0xff]  }
 0x68f   : > { %6027 = vmatprep.subr.bf16.mxu0 %v7233_v46  ;;  %5465 = vmatpush1.bf16.msra.mxu1 %v7268_v1  ;;  %v7260_v46 = vld [vmem:[%s11137_s7 + $0xe8] sm:$0xff]  }
 0x690   : > { %5466 = vmatprep.subr.bf16.mxu1 %v11669_v57  ;;  %v7281_v1 = vld [vmem:[%s11139_s9 + $0x28] sm:$0xff]  }
 0x692   : > { %6028 = vmatpush3.bf16.msra.mxu0 %v7234_v8  ;;  %v7261_v8 = vld [vmem:[%s11137_s7 + $0xa8] sm:$0xff]  }
 0x693   : > { %6029 = vmatprep.subr.bf16.mxu0 %v7235_v50  ;;  %5467 = vmatpush1.bf16.msra.mxu1 %v7269_v7  ;;  %v7263_v50 = vld [vmem:[%s11137_s7 + $0xf0] sm:$0xff]  }
 0x694   : > { %5468 = vmatprep.subr.bf16.mxu1 %v11669_v57  ;;  %v7282_v7 = vld [vmem:[%s11139_s9 + $0x30] sm:$0xff]  }
 0x696   : > { %6030 = vmatpush3.bf16.msra.mxu0 %v7236_v41  ;;  %v7264_v41 = vld [vmem:[%s11137_s7 + $0xb0] sm:$0xff]  }
 0x697   : > { %6031 = vmatprep.subr.bf16.mxu0 %v7237_v6  ;;  %5469 = vmatpush1.bf16.msra.mxu1 %v7270_v9  ;;  %v7266_v6 = vld [vmem:[%s11137_s7 + $0xf8] sm:$0xff]  }
 0x698   : > { %5470 = vmatprep.subr.bf16.mxu1 %v11669_v57  ;;  %v7283_v9 = vld [vmem:[%s11139_s9 + $0x38] sm:$0xff]  }
 0x69a   : > { %6032 = vmatpush3.bf16.msra.mxu0 %v7238_v44  ;;  %v7267_v44 = vld [vmem:[%s11137_s7 + $0xb8] sm:$0xff]  }
 0x69b   : > { %6033 = vmatprep.subr.bf16.mxu0 %v7239_v39  ;;  %5471 = vmatpush1.bf16.msra.mxu1 %v7271_v24  ;;  %v7289_v24 = vld [vmem:[%s11141_s11 + $0x28] sm:$0xff]  }
 0x69c   : > { %5472 = vmatprep.subr.bf16.mxu1 %v11669_v57 }
 0x69e   : > { %6034 = vmatpush3.bf16.msra.mxu0 %v7240_v25 }
 0x69f   : > { %6035 = vmatprep.subr.bf16.mxu0 %v7241_v29  ;;  %5473 = vmatpush1.bf16.msra.mxu1 %v7272_v60 }
 0x6a0   : > { %5474 = vmatprep.subr.bf16.mxu1 %v11669_v57 }
 0x6a2   : > { %6036 = vmatpush3.bf16.msra.mxu0 %v7242_v18 }
 0x6a3   : > { %6037 = vmatprep.subr.bf16.mxu0 %v7243_v43  ;;  %5475 = vmatpush1.bf16.msra.mxu1 %v7273_v16 }
 0x6a4   : > { %5476 = vmatprep.subr.bf16.mxu1 %v11669_v57 }
 0x6a6   : > { %6038 = vmatpush3.bf16.msra.mxu0 %v7244_v61 }
 0x6a7   : > { %6039 = vmatprep.subr.bf16.mxu0 %v7245_v0  ;;  %5477 = vmatpush1.bf16.msra.mxu1 %v7274_v47 }
 0x6a8   : > { %5478 = vmatprep.subr.bf16.mxu1 %v11669_v57  ;;  %v7250_v57 = vld [vmem:[%s11137_s7 + $0x88] sm:$0xff]  }
 0x6aa   : > { %6040 = vmatpush3.bf16.msra.mxu0 %v7246_v62 }
 0x6ab   : > { %6047 = vmatprep.subr.bf16.mxu0 %v7247_v34  ;;  %5479 = vmatpush1.bf16.msra.mxu1 %v7275_v53 }
 0x6f0   : > { %v10912_v13 = vpop.f32.mrb[64].mxu0 }
 0x6f1   : > { %v10914_v31 = vpop.f32.mrb[65].mxu0  ;;  %v4997_v3 = vpack.c.bf16 %v10912_v13, %v10912_v13 }
 0x6f2   : > { %v4768_v63 = vpop.f32.mrb[66].mxu0 }
 0x6f3   : > { %v4769_v32 = vpop.f32.mrb[67].mxu0 }
 0x70c   : > { %v4810_v5 = vpop.f32.mrb[68].mxu0 }
 0x70d   : > { %4957 = vrot.lane.b32.xlu0 %v4810_v5, %s7342_s19  ;;  %v4812_v37 = vpop.f32.mrb[69].mxu0 }
 0x70e   : > { %v4814_v30 = vpop.f32.mrb[70].mxu0 }
 0x70f   : > { %v4815_v49 = vpop.f32.mrb[71].mxu0 }
 0x711   : > { %4959 = vrot.lane.b32.xlu0 %v4812_v37, %s7342_s19 }
 0x728   : > { %v4856_v22 = vpop.f32.mrb[72].mxu0 }
 0x729   : > { %v4858_v52 = vpop.f32.mrb[73].mxu0 }
 0x72a   : > { %v7012_v42 = vpack.i.bf16 %v4858_v52, %v4856_v22  ;;  %v4860_v19 = vpop.f32.mrb[74].mxu0  ;;  %v7344_v22 = vmov 0.0   ;;  %v7277_v52 = vld [vmem:[%s11139_s9 + $0x8] sm:$0xff]  }
 0x72b   : > { %v4861_v15 = vpop.f32.mrb[75].mxu0  ;;  %6107 = vmatprep.subr.bf16.mxu1 %v7344_v22  ;;  %v7279_v19 = vld [vmem:[%s11139_s9 + $0x18] sm:$0xff]  }
 0x72c   : > { %7013 = vrot.lane.b32.xlu1 %v7012_v42, %s7331_s16  ;;  %v7278_v42 = vld [vmem:[%s11139_s9 + $0x10] sm:$0xff]   ;;  %v7280_v15 = vld [vmem:[%s11139_s9 + $0x20] sm:$0xff]  }
 0x744   : > { %v4902_v12 = vpop.f32.mrb[76].mxu0 }
 0x745   : > { %v4904_v56 = vpop.f32.mrb[77].mxu0 }
 0x746   : > { %v7017_v36 = vpack.i.bf16 %v4904_v56, %v4902_v12  ;;  %v4906_v17 = vpop.f32.mrb[78].mxu0  ;;  %v7284_v12 = vld [vmem:[%s11141_s11] sm:$0xff]   ;;  %v7285_v56 = vld [vmem:[%s11141_s11 + $0x8] sm:$0xff]  }
 0x747   : > { %v4907_v28 = vpop.f32.mrb[79].mxu0  ;;  %v7287_v17 = vld [vmem:[%s11141_s11 + $0x18] sm:$0xff]  }
 0x748   : > { %7018 = vrot.lane.b32.xlu1 %v7017_v36, %s7343_s29  ;;  %v7286_v36 = vld [vmem:[%s11141_s11 + $0x10] sm:$0xff]   ;;  %v7288_v28 = vld [vmem:[%s11141_s11 + $0x20] sm:$0xff]   ;;  %s5781_s29 = sshll.u32 %s11673_s26, 3 }
 0x749   : > { %s440_s18 = scalar_lea.vmem %s11143_s13, %s5781_s29 }
 0x760   : > { %v4948_v33 = vpop.f32.mrb[80].mxu0 }
 0x761   : > { %v4950_v54 = vpop.f32.mrb[81].mxu0 }
 0x762   : > { %v7022_v26 = vpack.i.bf16 %v4950_v54, %v4948_v33  ;;  %v4952_v40 = vpop.f32.mrb[82].mxu0  ;;  %v5958_v54 = vld [vmem:[%s11138_s8] ss:$0 sm:$0xff] }
 0x763   : > { %v4953_v23 = vpop.f32.mrb[83].mxu0 }
 0x764   : > { %7023 = vrot.lane.b32.xlu0 %v7022_v26, %s7333_s22 }
 0x77f   : > { %v4958_v4 = vpop.permute.xlu0 %4957 }
 0x780   : > { %v4993_v10 = vsel %vm4961_vm0, %v10914_v31, %v4958_v4 }
 0x781   : > { %v4998_v20 = vpack.c.bf16 %v4993_v10, %v4993_v10 }
 0x783   : > { %5406 = vmatprep.mubr.bf16.mxu0 %v4998_v20  ;;  %v4960_v63 = vpop.permute.xlu0 %4959 }
 0x784   : > { %5407 = vmatmul.mubr.bf16.vlgmr.msra.gmra.mrb[84].mxu0 %v4997_v3  ;;  %v4962_v29 = vsel %vm4961_vm0, %v4958_v4, %v4960_v63 }
 0x785   : > { %6048 = vmatpush3.bf16.msra.mxu0 %v7248_v45 }
 0x786   : > { %6049 = vmatprep.subr.bf16.mxu0 %v7249_v2 }
 0x789   : > { %6050 = vmatpush3.bf16.msra.mxu0 %v7250_v57 }
 0x78a   : > { %6051 = vmatprep.subr.bf16.mxu0 %v7251_v48 }
 0x78d   : > { %6052 = vmatpush3.bf16.msra.mxu0 %v7252_v14 }
 0x78e   : > { %6053 = vmatprep.subr.bf16.mxu0 %v7254_v11 }
 0x791   : > { %6054 = vmatpush3.bf16.msra.mxu0 %v7255_v35 }
 0x792   : > { %6055 = vmatprep.subr.bf16.mxu0 %v7257_v38  ;;  %v7290_v38 = vld [vmem:[%s11141_s11 + $0x30] sm:$0xff]  }
 0x795   : > { %6056 = vmatpush3.bf16.msra.mxu0 %v7258_v58  ;;  %v7291_v58 = vld [vmem:[%s11141_s11 + $0x38] sm:$0xff]  }
 0x796   : > { %6057 = vmatprep.subr.bf16.mxu0 %v7260_v46  ;;  %v6005_v46 = vld [vmem:[%s11140_s10] ss:$0 sm:$0xff] }
 0x799   : > { %6058 = vmatpush3.bf16.msra.mxu0 %v7261_v8 }
 0x79a   : > { %6059 = vmatprep.subr.bf16.mxu0 %v7263_v50 }
 0x79d   : > { %6060 = vmatpush3.bf16.msra.mxu0 %v7264_v41 }
 0x79e   : > { %6061 = vmatprep.subr.bf16.mxu0 %v7266_v6  ;;  %v7014_v39 = vpop.permute.xlu1 %7013 }
 0x79f   : > { %v7016_v13 = vunpack.i.h.bf16 %v7014_v39  ;;  %v7015_v31 = vunpack.i.l.bf16 %v7014_v39 }
 0x7a1   : > { %6062 = vmatpush3.bf16.msra.mxu0 %v7267_v44  ;;  %v4971_v18 = vsel %vm1082_vm3, %v7015_v31, %v7016_v13  ;;  %v4994_v43 = vsel %vm1082_vm3, %v4962_v29, %v7015_v31  ;;  %vm7345_vm3 = vmmov 0   ;;  %v6014_v31 = vld [vmem:[%s11142_s12] ss:$0 sm:$0xff] }
 0x7a2   : > { %v4999_v62 = vpack.c.bf16 %v4994_v43, %v4994_v43  ;;  %6087 = vmatprep.subr.bf16.mxu0 %v7344_v22 }
 0x7ba   : > { %v7019_v25 = vpop.permute.xlu1 %7018 }
 0x7bb   : > { %v7020_v32 = vunpack.i.l.bf16 %v7019_v25  ;;  %v7021_v34 = vunpack.i.h.bf16 %v7019_v25 }
 0x7bd   : > { %v4995_v61 = vsel %vm4980_vm1, %v4971_v18, %v7020_v32  ;;  %v4981_v30 = vsel %vm4980_vm1, %v7020_v32, %v7021_v34 }
 0x7be   : > { %v5000_v0 = vpack.c.bf16 %v4995_v61, %v4995_v61 }
 0x7c0   : > { %5446 = vmatprep.mubr.bf16.mxu0 %v5000_v0 }
 0x7c1   : > { %5447 = vmatmul.mubr.bf16.vlgmr.msra.gmra.mrb[88].mxu0 %v4999_v62 }
 0x7c2   : > { %6088 = vmatpush3.bf16.msra.mxu0 %v7276_v21  ;;  %6103 = vmatprep.mubr.msk.bf16.mxu0 %vm7345_vm3, %v7344_v22 }
 0x7c3   : > { %6089 = vmatprep.subr.bf16.mxu0 %v7344_v22 }
 0x7c6   : > { %6090 = vmatpush3.bf16.msra.mxu0 %v7277_v52 }
 0x7c7   : > { %6091 = vmatprep.subr.bf16.mxu0 %v7344_v22 }
 0x7ca   : > { %6092 = vmatpush3.bf16.msra.mxu0 %v7278_v42 }
 0x7cb   : > { %6093 = vmatprep.subr.bf16.mxu0 %v7344_v22 }
 0x7ce   : > { %6094 = vmatpush3.bf16.msra.mxu0 %v7279_v19 }
 0x7cf   : > { %6095 = vmatprep.subr.bf16.mxu0 %v7344_v22 }
 0x7d2   : > { %6096 = vmatpush3.bf16.msra.mxu0 %v7280_v15 }
 0x7d3   : > { %6097 = vmatprep.subr.bf16.mxu0 %v7344_v22 }
 0x7d6   : > { %v7024_v5 = vpop.permute.xlu0 %7023  ;;  %6098 = vmatpush3.bf16.msra.mxu0 %v7281_v1 }
 0x7d7   : > { %v7026_v37 = vunpack.i.h.bf16 %v7024_v5  ;;  %v7025_v51 = vunpack.i.l.bf16 %v7024_v5  ;;  %6099 = vmatprep.subr.bf16.mxu0 %v7344_v22 }
 0x7d9   : > { %v4990_v49 = vsel %vm1115_vm5, %v7025_v51, %v7026_v37  ;;  %v4996_v55 = vsel %vm1115_vm5, %v4981_v30, %v7025_v51 }
 0x7da   : > { %v5001_v59 = vpack.c.bf16 %v4996_v55, %v4996_v55  ;;  %v5002_v27 = vpack.c.bf16 %v4990_v49, %v4990_v49  ;;  %6100 = vmatpush3.bf16.msra.mxu0 %v7282_v7 }
 0x7db   : > { %6101 = vmatprep.subr.bf16.mxu0 %v7344_v22 }
 0x7dc   : > { %6004 = vmatprep.mubr.msk.bf16.mxu1 %vm5370_vm2, %v5002_v27 }
 0x7dd   : > { %5487 = vmatmul.mubr.bf16.vlgmr.msra.gmra.mrb[56].mxu1 %v5001_v59 }
 0x7de   : > { %6123 = vmatprep.mubr.msk.bf16.mxu1 %vm7345_vm3, %v7344_v22  ;;  %6108 = vmatpush3.bf16.msra.mxu1 %v7284_v12 }
 0x7df   : > { %6109 = vmatprep.subr.bf16.mxu1 %v7344_v22  ;;  %6102 = vmatpush3.bf16.msra.mxu0 %v7283_v9 }
 0x7e2   : > { %6110 = vmatpush3.bf16.msra.mxu1 %v7285_v56 }
 0x7e3   : > { %6111 = vmatprep.subr.bf16.mxu1 %v7344_v22 }
 0x7e6   : > { %6112 = vmatpush3.bf16.msra.mxu1 %v7286_v36 }
 0x7e7   : > { %6113 = vmatprep.subr.bf16.mxu1 %v7344_v22 }
 0x7ea   : > { %6114 = vmatpush3.bf16.msra.mxu1 %v7287_v17 }
 0x7eb   : > { %6115 = vmatprep.subr.bf16.mxu1 %v7344_v22 }
 0x7ee   : > { %6116 = vmatpush3.bf16.msra.mxu1 %v7288_v28 }
 0x7ef   : > { %6117 = vmatprep.subr.bf16.mxu1 %v7344_v22 }
 0x7f2   : > { %6118 = vmatpush3.bf16.msra.mxu1 %v7289_v24 }
 0x7f3   : > { %6119 = vmatprep.subr.bf16.mxu1 %v7344_v22 }
 0x7f6   : > { %6120 = vmatpush3.bf16.msra.mxu1 %v7290_v38 }
 0x7f7   : > { %6121 = vmatprep.subr.bf16.mxu1 %v7344_v22 }
 0x7fa   : > { %6122 = vmatpush3.bf16.msra.mxu1 %v7291_v58 }
 0x857   : > { %v6041_v60 = vpop.f32.mrb[84].mxu0 }
 0x858   : > { %v6042_v16 = vpop.f32.mrb[85].mxu0 }
 0x859   : > { %v6043_v47 = vadd.f32 %v6042_v16, %v6041_v60  ;;  %v6044_v53 = vpop.f32.mrb[86].mxu0 }
 0x85a   : > { %v6045_v33 = vpop.f32.mrb[87].mxu0 }
 0x85b   : > { %v5409_v23 = vadd.f32 %v6043_v47, %v5958_v54 }
 0x894   : > { %v6063_v26 = vpop.f32.mrb[88].mxu0 }
 0x895   : > { %v6064_v40 = vpop.f32.mrb[89].mxu0 }
 0x896   : > { %v6065_v4 = vadd.f32 %v6064_v40, %v6063_v26  ;;  %v6066_v10 = vpop.f32.mrb[90].mxu0 }
 0x897   : > { %v6067_v20 = vpop.f32.mrb[91].mxu0 }
 0x898   : > { %v5449_v45 = vadd.f32 %v6065_v4, %v5409_v23 }
 0x8b0   : > { %v5488_v3 = vpop.f32.mrb[56].mxu1 }
 0x8b1   : > { %v5489_v2 = vadd.f32 %v5488_v3, %v5449_v45  ;;  %v5490_v57 = vpop.f32.mrb[57].mxu1 }
 0x8b2   : > { %v5491_v48 = vpop.f32.mrb[58].mxu1 }
 0x8b3   : > { %v5494_v14 = vmax.f32 %v5489_v2, 0.0  ;;  %v5492_v11 = vpop.f32.mrb[59].mxu1 }
 0x8b5   : > { %v5495_v35 = vpack.c.bf16 %v5494_v14, %v5494_v14 }
 0x8b7   : > { %6104 = vmatmul.mubr.bf16.vlgmr.msra.gmra.mrb[92].mxu0 %v5495_v35 }
 0x98a   : > { %v5601_v8 = vpop.f32.mrb[92].mxu0 }
 0x98b   : > { %v5602_v50 = vadd.f32 %v6005_v46, %v5601_v8  ;;  %v6105_v41 = vpop.f32.mrb[93].mxu0 }
 0x98c   : > { %v5604_v6 = vpop.f32.mrb[94].mxu0 }
 0x98d   : > { %v5607_v44 = vmax.f32 %v5602_v50, 0.0  ;;  %v6106_v39 = vpop.f32.mrb[95].mxu0 }
 0x98f   : > { %v5608_v13 = vpack.c.bf16 %v5607_v44, %v5607_v44 }
 0x991   : > { %6124 = vmatmul.mubr.bf16.vlgmr.msra.gmra.mrb[60].mxu1 %v5608_v13 }
 0xa64   : > { %v5714_v63 = vpop.f32.mrb[60].mxu1 }
 0xa65   : > { %v5715_v25 = vadd.f32 %v6014_v31, %v5714_v63  ;;  %v6125_v32 = vpop.f32.mrb[61].mxu1 }
 0xa66   : > { %v5717_v29 = vpop.f32.mrb[62].mxu1 }
 0xa67   : > { %5720 = vst [vmem:[%s440_s18] sm:$0xff] %v5715_v25  ;;  %v6126_v18 = vpop.f32.mrb[63].mxu1 }
 0xa68 PF: > { %s23_s25 = sadd.s32 1, %s7329_s25  }
 0xa69   : > { %p20_p5 = scmp.ge.s32.totalorder %s23_s25, 6  }
 0xa6b   :  { %22 = sbr.rel (!%p20_p5) target bundleno = 1 (0x1), region = 106 }

</bundles_post_ra>
